<compile_context>
chip_gen: v7x
topology: tpu7x:2x2x1
jax: 0.10.0
libtpu: 0.0.40
codegen_flags: <defaults>
</compile_context>

<pallas_src>
import functools

import jax
import jax.numpy as jnp
from jax import lax
from jax.experimental import pallas as pl
from jax.experimental.pallas import tpu as pltpu


def _round_up(x, m):
    return ((x + m - 1) // m) * m


def _inconv_fused_kernel(p_ref, w1_ref, b1_ref, w2_ref, b2_ref, o_ref,
                         a1p_ref, im2_ref, *, H, W, G, pad):
    """conv1(+BN)+ReLU -> conv2(+BN)+ReLU for G packed batch elements, all in VMEM.

    p_ref  : (1, G*HW, 9*Cin)    bf16  im2col patches of the input (pad=1 folded in)
    w1_ref : (9*Cin, C1p)        bf16  layer-1 weights, BN1 scale folded, lane-padded
    b1_ref : (1, C1p)            f32   layer-1 folded bias
    w2_ref : (9*C1p, C2p)        bf16  layer-2 weights (rows = tap*C1p + c1), BN2 folded
    b2_ref : (1, C2p)            f32   layer-2 folded bias
    o_ref  : (1, G*HW, C2p)      bf16  lane-dense output block (written exactly once)
    a1p_ref: (G*(HW+2*pad), C1p) bf16  zero-row-padded layer-1 activation scratch
    im2_ref: (G*HW, 9*C1p)       bf16  im2col of the layer-1 activation (deep-K LHS)
    """
    HW = H * W
    C1p = w1_ref.shape[1]
    ROWP = HW + 2 * pad

    # ---- Layer 1: one tall-M bf16 MXU matmul (f32 accumulate) + bias + ReLU. ----
    a1 = jnp.dot(p_ref[0], w1_ref[...], preferred_element_type=jnp.float32)
    a1 = jnp.maximum(a1 + b1_ref[...], 0.0).astype(jnp.bfloat16)

    # Column-boundary masks (row boundaries are absorbed by the zero pad rows).
    col = lax.broadcasted_iota(jnp.int32, (HW, 1), 0) % W
    ok_left = col >= 1           # reading column w-1 is valid
    ok_right = col <= W - 2      # reading column w+1 is valid

    zeros_pad = jnp.zeros((pad, C1p), jnp.bfloat16)
    zero = jnp.zeros((), jnp.bfloat16)

    # Stage each image with `pad` zero rows above/below (absorbs the +-1-row taps).
    for b in range(G):
        base = b * ROWP
        a1p_ref[pl.ds(base, pad), :] = zeros_pad
        a1p_ref[pl.ds(base + pad + HW, pad), :] = zeros_pad
        a1p_ref[pl.ds(base + pad, HW), :] = a1[b * HW:(b + 1) * HW, :]

    # ---- Build layer-2 im2col: lane block t = kh*3+kw holds the (kh,kw) tap. ----
    for b in range(G):
        base = b * ROWP
        for kh in range(3):
            for kw in range(3):
                dh, dw = kh - 1, kw - 1
                t = kh * 3 + kw
                win = a1p_ref[pl.ds(base + pad + dh * W + dw, HW), :]
                if dw == -1:
                    win = jnp.where(ok_left, win, zero)
                elif dw == 1:
                    win = jnp.where(ok_right, win, zero)
                im2_ref[pl.ds(b * HW, HW), pl.ds(t * C1p, C1p)] = win

    # ---- Layer 2: ONE deep-K MXU matmul (K = 9*C1p), f32 accumulate in the MXU; ----
    # no per-tap read-modify-write of the output block.
    o = jnp.dot(im2_ref[...], w2_ref[...], preferred_element_type=jnp.float32)
    # TODO(synk): Dropout2d(p=0.1) is identity at inference; no stochastic path.
    o_ref[0] = jnp.maximum(o + b2_ref[...], 0.0).astype(o_ref.dtype)


def fold_bn(conv_bias, gamma, beta, running_mean, running_var, eps=1e-5):
    """Fold conv bias + BatchNorm(eval) into per-channel scale/bias."""
    inv_std = 1.0 / jnp.sqrt(running_var + eps)
    scale = gamma * inv_std
    bias = beta + scale * (conv_bias - running_mean)
    return scale, bias


def in_conv_forward(x_nchw, params1, params2, *, batch_tile=None):
    """InConv forward (inference). Input NCHW like PyTorch; output NCHW (f32)."""
    N, Cin, H, W = x_nchw.shape
    HW = H * W
    x = jnp.transpose(x_nchw, (0, 2, 3, 1)).astype(jnp.float32)   # NHWC

    w1, b1, g1, be1, rm1, rv1 = params1
    w2, b2, g2, be2, rm2, rv2 = params2
    C1 = w1.shape[-1]
    C2 = w2.shape[-1]
    C1p = max(128, _round_up(C1, 128))
    C2p = max(128, _round_up(C2, 128))

    # Pack several batch elements per grid step for tiny images (tall M per matmul).
    if batch_tile is None:
        batch_tile = N if N * HW <= 4096 else 1
    assert N % batch_tile == 0
    G = batch_tile
    NB = N // G

    # Fold BN scale into conv weights; bias absorbs conv bias + BN shift.  Weights go
    # to the MXU in bf16 (bf16-native on v5e/v6e/v7x); accumulation stays f32.
    s1, bb1 = fold_bn(b1, g1, be1, rm1, rv1)
    w1f = w1 * s1[None, None, None, :]
    # im2col channel order of conv_general_dilated_patches is c*9 + kh*3 + kw.
    w1m = jnp.transpose(w1f, (2, 0, 1, 3)).reshape(Cin * 9, C1)
    w1m = jnp.pad(w1m, ((0, 0), (0, C1p - C1))).astype(jnp.bfloat16)
    b1m = jnp.pad(bb1, (0, C1p - C1)).reshape(1, C1p).astype(jnp.float32)

    s2, bb2 = fold_bn(b2, g2, be2, rm2, rv2)
    w2f = w2 * s2[None, None, None, :]
    w2m = jnp.pad(w2f, ((0, 0), (0, 0), (0, C1p - C1), (0, C2p - C2)))
    w2m = w2m.reshape(9 * C1p, C2p).astype(jnp.bfloat16)   # row = (kh*3+kw)*C1p + c1
    b2m = jnp.pad(bb2, (0, C2p - C2)).reshape(1, C2p).astype(jnp.float32)

    # im2col of the input (includes the pad=1 halo), streamed in bf16 (halves HBM read).
    patches = lax.conv_general_dilated_patches(
        x, filter_shape=(3, 3), window_strides=(1, 1),
        padding=((1, 1), (1, 1)),
        dimension_numbers=("NHWC", "HWIO", "NHWC"))        # (N, H, W, Cin*9)
    K1 = Cin * 9
    patches = patches.reshape(NB, G * HW, K1).astype(jnp.bfloat16)

    # Zero pad rows around each image inside the scratch; 16-row alignment keeps the
    # bf16 staging stores sublane-aligned.  Must cover the +/-(W+1) diagonal taps.
    pad_rows = _round_up(W + 1, 16)
    assert pad_rows >= W + 1, "pad rows must absorb the +/-(W+1) row taps"
    rowp = HW + 2 * pad_rows

    kernel = functools.partial(_inconv_fused_kernel, H=H, W=W, G=G, pad=pad_rows)
    out = pl.pallas_call(
        kernel,
        out_shape=jax.ShapeDtypeStruct((NB, G * HW, C2p), jnp.bfloat16),
        grid_spec=pltpu.PrefetchScalarGridSpec(
            num_scalar_prefetch=0,
            grid=(NB,),
            in_specs=[
                pl.BlockSpec((1, G * HW, K1), lambda i: (i, 0, 0)),
                pl.BlockSpec((K1, C1p), lambda i: (0, 0)),
                pl.BlockSpec((1, C1p), lambda i: (0, 0)),
                pl.BlockSpec((9 * C1p, C2p), lambda i: (0, 0)),
                pl.BlockSpec((1, C2p), lambda i: (0, 0)),
            ],
            out_specs=pl.BlockSpec((1, G * HW, C2p), lambda i: (i, 0, 0)),
            scratch_shapes=[
                pltpu.VMEM((G * rowp, C1p), jnp.bfloat16),      # padded activation
                pltpu.VMEM((G * HW, 9 * C1p), jnp.bfloat16),    # layer-2 im2col
            ],
        ),
        compiler_params=pltpu.CompilerParams(
            dimension_semantics=("parallel",),
            vmem_limit_bytes=32 * 1024 * 1024),
    )(patches, w1m, b1m, w2m, b2m)

    y = out.reshape(N, HW, C2p)[:, :, :C2].astype(jnp.float32)   # drop lane padding
    y = y.reshape(N, H, W, C2)
    return jnp.transpose(y, (0, 3, 1, 2))                        # NHWC -> NCHW


def make_params(key, in_channels, out_channels):
    """Deterministic synthetic parameters for one Conv+BN layer."""
    k = jax.random.split(key, 6)
    w = 0.1 * jax.random.normal(k[0], (3, 3, in_channels, out_channels),
                                jnp.float32)                       # HWIO
    b = 0.1 * jax.random.normal(k[1], (out_channels,), jnp.float32)
    gamma = jax.random.uniform(k[2], (out_channels,), jnp.float32, 0.5, 1.5)
    beta = 0.1 * jax.random.normal(k[3], (out_channels,), jnp.float32)
    rmean = 0.1 * jax.random.normal(k[4], (out_channels,), jnp.float32)
    rvar = jax.random.uniform(k[5], (out_channels,), jnp.float32, 0.5, 1.5)
    return w, b, gamma, beta, rmean, rvar


def _reference(x_nchw, params1, params2):
    """Pure-JAX f32 reference (lax.conv) for correctness check."""
    x = jnp.transpose(x_nchw, (0, 2, 3, 1))
    for (w, b, g, be, rm, rv) in (params1, params2):
        y = lax.conv_general_dilated(
            x, w, window_strides=(1, 1), padding=((1, 1), (1, 1)),
            dimension_numbers=("NHWC", "HWIO", "NHWC"))
        s, bb = fold_bn(b, g, be, rm, rv)
        x = jnp.maximum(y * s + bb, 0.0)
    return jnp.transpose(x, (0, 3, 1, 2))


if __name__ == "__main__":
    key = jax.random.PRNGKey(0)
    kx, kp1, kp2 = jax.random.split(key, 3)

    N, Cin, Cout, H, W = 2, 4, 8, 16, 16
    x = jax.random.normal(kx, (N, Cin, H, W), jnp.float32)   # NCHW like PyTorch

    params1 = make_params(kp1, Cin, Cout)
    params2 = make_params(kp2, Cout, Cout)

    out = jax.block_until_ready(in_conv_forward(x, params1, params2))
    ref = jax.block_until_ready(_reference(x, params1, params2))

    assert out.shape == (N, Cout, H, W)
    # bf16 MXU inputs + bf16 output store -> compare with a bf16-appropriate bound.
    rel = float(jnp.max(jnp.abs(out - ref)) /
                jnp.maximum(jnp.max(jnp.abs(ref)), 1e-6))
    assert rel < 5e-2, f"mismatch vs reference conv (rel err {rel})"

    print("KERNEL_OK")
</pallas_src>

<mosaic_0001>
module attributes {stable_mosaic.version = 11 : i64} {
  func.func @_inconv_fused_kernel(%arg0: i32, %arg1: memref<1x512x36xbf16, #tpu.memory_space<vmem>>, %arg2: memref<36x128xbf16, #tpu.memory_space<vmem>>, %arg3: memref<1x128xf32, #tpu.memory_space<vmem>>, %arg4: memref<1152x128xbf16, #tpu.memory_space<vmem>>, %arg5: memref<1x128xf32, #tpu.memory_space<vmem>>, %arg6: memref<1x512x128xbf16, #tpu.memory_space<vmem>>, %arg7: memref<640x128xbf16, #tpu.memory_space<vmem>>, %arg8: memref<512x1152xbf16, #tpu.memory_space<vmem>>) attributes {dimension_semantics = [#tpu.dimension_semantics<parallel>], iteration_bounds = array<i64: 1>, scalar_prefetch = 0 : i64, scratch_operands = 2 : i64, tpu.core_type = #tpu.core_type<tc>, window_params = [{transform_indices = @transform_0, window_bounds = array<i64: 1, 512, 36>}, {pipeline_mode = #tpu.pipeline_mode<synchronous>, transform_indices = @transform_1, window_bounds = array<i64: 36, 128>}, {pipeline_mode = #tpu.pipeline_mode<synchronous>, transform_indices = @transform_2, window_bounds = array<i64: 1, 128>}, {pipeline_mode = #tpu.pipeline_mode<synchronous>, transform_indices = @transform_3, window_bounds = array<i64: 1152, 128>}, {pipeline_mode = #tpu.pipeline_mode<synchronous>, transform_indices = @transform_4, window_bounds = array<i64: 1, 128>}, {transform_indices = @transform_5, window_bounds = array<i64: 1, 512, 128>}]} {
    %c0 = arith.constant 0 : index
    %c0_0 = arith.constant 0 : index
    %c0_1 = arith.constant 0 : index
    %0 = vector.load %arg1[%c0, %c0_0, %c0_1] : memref<1x512x36xbf16, #tpu.memory_space<vmem>>, vector<1x512x36xbf16>
    %1 = vector.shape_cast %0 : vector<1x512x36xbf16> to vector<512x36xbf16>
    %c0_2 = arith.constant 0 : index
    %c0_3 = arith.constant 0 : index
    %2 = vector.load %arg2[%c0_2, %c0_3] : memref<36x128xbf16, #tpu.memory_space<vmem>>, vector<36x128xbf16>
    %cst = arith.constant dense<0.000000e+00> : vector<512x128xf32>
    %3 = tpu.matmul %1, %2, %cst {dimension_numbers = #tpu.dot_dimension_numbers<[1], [0], [0], [1], [0, 0, 1, 1], [], []>} : vector<512x36xbf16>, vector<36x128xbf16>, vector<512x128xf32> -> vector<512x128xf32>
    %c0_4 = arith.constant 0 : index
    %c0_5 = arith.constant 0 : index
    %4 = vector.load %arg3[%c0_4, %c0_5] : memref<1x128xf32, #tpu.memory_space<vmem>>, vector<1x128xf32>
    %5 = vector.broadcast %4 : vector<1x128xf32> to vector<512x128xf32>
    %6 = arith.addf %3, %5 : vector<512x128xf32>
    %cst_6 = arith.constant 0.000000e+00 : f32
    %7 = vector.broadcast %cst_6 : f32 to vector<512x128xf32>
    %8 = arith.maximumf %6, %7 : vector<512x128xf32>
    %9 = arith.truncf %8 : vector<512x128xf32> to vector<512x128xbf16>
    %10 = tpu.iota {dimensions = array<i32: 0>} : vector<256x1xi32>
    %c16_i32 = arith.constant 16 : i32
    %c0_i32 = arith.constant 0 : i32
    %11 = arith.cmpi eq, %c16_i32, %c0_i32 : i32
    %c1_i32 = arith.constant 1 : i32
    %12 = arith.select %11, %c1_i32, %c16_i32 : i32
    %13 = vector.broadcast %12 : i32 to vector<256x1xi32>
    %14 = arith.remsi %10, %13 : vector<256x1xi32>
    %c0_i32_7 = arith.constant 0 : i32
    %15 = vector.broadcast %c0_i32_7 : i32 to vector<256x1xi32>
    %16 = arith.cmpi ne, %14, %15 : vector<256x1xi32>
    %c0_i32_8 = arith.constant 0 : i32
    %17 = vector.broadcast %c0_i32_8 : i32 to vector<256x1xi32>
    %18 = arith.cmpi slt, %14, %17 : vector<256x1xi32>
    %c0_i32_9 = arith.constant 0 : i32
    %19 = arith.cmpi slt, %12, %c0_i32_9 : i32
    %20 = vector.broadcast %19 : i1 to vector<256x1xi1>
    %21 = vector.broadcast %20 : vector<256x1xi1> to vector<256x1xi1>
    %22 = arith.xori %18, %21 : vector<256x1xi1>
    %23 = arith.andi %22, %16 : vector<256x1xi1>
    %24 = vector.broadcast %12 : i32 to vector<256x1xi32>
    %25 = arith.addi %14, %24 : vector<256x1xi32>
    %26 = arith.select %23, %25, %14 : vector<256x1xi1>, vector<256x1xi32>
    %c1_i32_10 = arith.constant 1 : i32
    %27 = vector.broadcast %c1_i32_10 : i32 to vector<256x1xi32>
    %28 = arith.cmpi sge, %26, %27 : vector<256x1xi32>
    %c14_i32 = arith.constant 14 : i32
    %29 = vector.broadcast %c14_i32 : i32 to vector<256x1xi32>
    %30 = arith.cmpi sle, %26, %29 : vector<256x1xi32>
    %cst_11 = arith.constant 0.000000e+00 : bf16
    %31 = vector.broadcast %cst_11 : bf16 to vector<32x128xbf16>
    %c0_12 = arith.constant 0 : index
    %c0_13 = arith.constant 0 : index
    %32 = vector.load %arg7[%c0_12, %c0_13] : memref<640x128xbf16, #tpu.memory_space<vmem>>, vector<32x128xbf16>
    tpu.vector_store %arg7[%c0_12, %c0_13], %31 {strides = array<i32>} : memref<640x128xbf16, #tpu.memory_space<vmem>>, vector<32x128xbf16>,
    %c288 = arith.constant 288 : index
    %c0_14 = arith.constant 0 : index
    %33 = vector.load %arg7[%c288, %c0_14] : memref<640x128xbf16, #tpu.memory_space<vmem>>, vector<32x128xbf16>
    tpu.vector_store %arg7[%c288, %c0_14], %31 {strides = array<i32>} : memref<640x128xbf16, #tpu.memory_space<vmem>>, vector<32x128xbf16>,
    %34 = vector.extract_strided_slice %9 {offsets = [0, 0], sizes = [256, 128], strides = [1, 1]} : vector<512x128xbf16> to vector<256x128xbf16>
    %c32 = arith.constant 32 : index
    %c0_15 = arith.constant 0 : index
    %35 = vector.load %arg7[%c32, %c0_15] : memref<640x128xbf16, #tpu.memory_space<vmem>>, vector<256x128xbf16>
    tpu.vector_store %arg7[%c32, %c0_15], %34 {strides = array<i32>} : memref<640x128xbf16, #tpu.memory_space<vmem>>, vector<256x128xbf16>,
    %c320 = arith.constant 320 : index
    %c0_16 = arith.constant 0 : index
    %36 = vector.load %arg7[%c320, %c0_16] : memref<640x128xbf16, #tpu.memory_space<vmem>>, vector<32x128xbf16>
    tpu.vector_store %arg7[%c320, %c0_16], %31 {strides = array<i32>} : memref<640x128xbf16, #tpu.memory_space<vmem>>, vector<32x128xbf16>,
    %c608 = arith.constant 608 : index
    %c0_17 = arith.constant 0 : index
    %37 = vector.load %arg7[%c608, %c0_17] : memref<640x128xbf16, #tpu.memory_space<vmem>>, vector<32x128xbf16>
    tpu.vector_store %arg7[%c608, %c0_17], %31 {strides = array<i32>} : memref<640x128xbf16, #tpu.memory_space<vmem>>, vector<32x128xbf16>,
    %38 = vector.extract_strided_slice %9 {offsets = [256, 0], sizes = [256, 128], strides = [1, 1]} : vector<512x128xbf16> to vector<256x128xbf16>
    %c352 = arith.constant 352 : index
    %c0_18 = arith.constant 0 : index
    %39 = vector.load %arg7[%c352, %c0_18] : memref<640x128xbf16, #tpu.memory_space<vmem>>, vector<256x128xbf16>
    tpu.vector_store %arg7[%c352, %c0_18], %38 {strides = array<i32>} : memref<640x128xbf16, #tpu.memory_space<vmem>>, vector<256x128xbf16>,
    %c15 = arith.constant 15 : index
    %c0_19 = arith.constant 0 : index
    %40 = vector.load %arg7[%c15, %c0_19] : memref<640x128xbf16, #tpu.memory_space<vmem>>, vector<256x128xbf16>
    %cst_20 = arith.constant 0.000000e+00 : bf16
    %41 = vector.shape_cast %28 : vector<256x1xi1> to vector<256x1xi1>
    %42 = vector.broadcast %41 : vector<256x1xi1> to vector<256x128xi1>
    %43 = vector.broadcast %cst_20 : bf16 to vector<256x128xbf16>
    %44 = arith.select %42, %40, %43 : vector<256x128xi1>, vector<256x128xbf16>
    %c0_21 = arith.constant 0 : index
    %c0_22 = arith.constant 0 : index
    %45 = vector.load %arg8[%c0_21, %c0_22] : memref<512x1152xbf16, #tpu.memory_space<vmem>>, vector<256x128xbf16>
    tpu.vector_store %arg8[%c0_21, %c0_22], %44 {strides = array<i32>} : memref<512x1152xbf16, #tpu.memory_space<vmem>>, vector<256x128xbf16>,
    %c16 = arith.constant 16 : index
    %c0_23 = arith.constant 0 : index
    %46 = vector.load %arg7[%c16, %c0_23] : memref<640x128xbf16, #tpu.memory_space<vmem>>, vector<256x128xbf16>
    %c0_24 = arith.constant 0 : index
    %c128 = arith.constant 128 : index
    %47 = vector.load %arg8[%c0_24, %c128] : memref<512x1152xbf16, #tpu.memory_space<vmem>>, vector<256x128xbf16>
    tpu.vector_store %arg8[%c0_24, %c128], %46 {strides = array<i32>} : memref<512x1152xbf16, #tpu.memory_space<vmem>>, vector<256x128xbf16>,
    %c17 = arith.constant 17 : index
    %c0_25 = arith.constant 0 : index
    %48 = vector.load %arg7[%c17, %c0_25] : memref<640x128xbf16, #tpu.memory_space<vmem>>, vector<256x128xbf16>
    %cst_26 = arith.constant 0.000000e+00 : bf16
    %49 = vector.shape_cast %30 : vector<256x1xi1> to vector<256x1xi1>
    %50 = vector.broadcast %49 : vector<256x1xi1> to vector<256x128xi1>
    %51 = vector.broadcast %cst_26 : bf16 to vector<256x128xbf16>
    %52 = arith.select %50, %48, %51 : vector<256x128xi1>, vector<256x128xbf16>
    %c0_27 = arith.constant 0 : index
    %c256 = arith.constant 256 : index
    %53 = vector.load %arg8[%c0_27, %c256] : memref<512x1152xbf16, #tpu.memory_space<vmem>>, vector<256x128xbf16>
    tpu.vector_store %arg8[%c0_27, %c256], %52 {strides = array<i32>} : memref<512x1152xbf16, #tpu.memory_space<vmem>>, vector<256x128xbf16>,
    %c31 = arith.constant 31 : index
    %c0_28 = arith.constant 0 : index
    %54 = vector.load %arg7[%c31, %c0_28] : memref<640x128xbf16, #tpu.memory_space<vmem>>, vector<256x128xbf16>
    %cst_29 = arith.constant 0.000000e+00 : bf16
    %55 = vector.shape_cast %28 : vector<256x1xi1> to vector<256x1xi1>
    %56 = vector.broadcast %55 : vector<256x1xi1> to vector<256x128xi1>
    %57 = vector.broadcast %cst_29 : bf16 to vector<256x128xbf16>
    %58 = arith.select %56, %54, %57 : vector<256x128xi1>, vector<256x128xbf16>
    %c0_30 = arith.constant 0 : index
    %c384 = arith.constant 384 : index
    %59 = vector.load %arg8[%c0_30, %c384] : memref<512x1152xbf16, #tpu.memory_space<vmem>>, vector<256x128xbf16>
    tpu.vector_store %arg8[%c0_30, %c384], %58 {strides = array<i32>} : memref<512x1152xbf16, #tpu.memory_space<vmem>>, vector<256x128xbf16>,
    %c32_31 = arith.constant 32 : index
    %c0_32 = arith.constant 0 : index
    %60 = vector.load %arg7[%c32_31, %c0_32] : memref<640x128xbf16, #tpu.memory_space<vmem>>, vector<256x128xbf16>
    %c0_33 = arith.constant 0 : index
    %c512 = arith.constant 512 : index
    %61 = vector.load %arg8[%c0_33, %c512] : memref<512x1152xbf16, #tpu.memory_space<vmem>>, vector<256x128xbf16>
    tpu.vector_store %arg8[%c0_33, %c512], %60 {strides = array<i32>} : memref<512x1152xbf16, #tpu.memory_space<vmem>>, vector<256x128xbf16>,
    %c33 = arith.constant 33 : index
    %c0_34 = arith.constant 0 : index
    %62 = vector.load %arg7[%c33, %c0_34] : memref<640x128xbf16, #tpu.memory_space<vmem>>, vector<256x128xbf16>
    %cst_35 = arith.constant 0.000000e+00 : bf16
    %63 = vector.shape_cast %30 : vector<256x1xi1> to vector<256x1xi1>
    %64 = vector.broadcast %63 : vector<256x1xi1> to vector<256x128xi1>
    %65 = vector.broadcast %cst_35 : bf16 to vector<256x128xbf16>
    %66 = arith.select %64, %62, %65 : vector<256x128xi1>, vector<256x128xbf16>
    %c0_36 = arith.constant 0 : index
    %c640 = arith.constant 640 : index
    %67 = vector.load %arg8[%c0_36, %c640] : memref<512x1152xbf16, #tpu.memory_space<vmem>>, vector<256x128xbf16>
    tpu.vector_store %arg8[%c0_36, %c640], %66 {strides = array<i32>} : memref<512x1152xbf16, #tpu.memory_space<vmem>>, vector<256x128xbf16>,
    %c47 = arith.constant 47 : index
    %c0_37 = arith.constant 0 : index
    %68 = vector.load %arg7[%c47, %c0_37] : memref<640x128xbf16, #tpu.memory_space<vmem>>, vector<256x128xbf16>
    %cst_38 = arith.constant 0.000000e+00 : bf16
    %69 = vector.shape_cast %28 : vector<256x1xi1> to vector<256x1xi1>
    %70 = vector.broadcast %69 : vector<256x1xi1> to vector<256x128xi1>
    %71 = vector.broadcast %cst_38 : bf16 to vector<256x128xbf16>
    %72 = arith.select %70, %68, %71 : vector<256x128xi1>, vector<256x128xbf16>
    %c0_39 = arith.constant 0 : index
    %c768 = arith.constant 768 : index
    %73 = vector.load %arg8[%c0_39, %c768] : memref<512x1152xbf16, #tpu.memory_space<vmem>>, vector<256x128xbf16>
    tpu.vector_store %arg8[%c0_39, %c768], %72 {strides = array<i32>} : memref<512x1152xbf16, #tpu.memory_space<vmem>>, vector<256x128xbf16>,
    %c48 = arith.constant 48 : index
    %c0_40 = arith.constant 0 : index
    %74 = vector.load %arg7[%c48, %c0_40] : memref<640x128xbf16, #tpu.memory_space<vmem>>, vector<256x128xbf16>
    %c0_41 = arith.constant 0 : index
    %c896 = arith.constant 896 : index
    %75 = vector.load %arg8[%c0_41, %c896] : memref<512x1152xbf16, #tpu.memory_space<vmem>>, vector<256x128xbf16>
    tpu.vector_store %arg8[%c0_41, %c896], %74 {strides = array<i32>} : memref<512x1152xbf16, #tpu.memory_space<vmem>>, vector<256x128xbf16>,
    %c49 = arith.constant 49 : index
    %c0_42 = arith.constant 0 : index
    %76 = vector.load %arg7[%c49, %c0_42] : memref<640x128xbf16, #tpu.memory_space<vmem>>, vector<256x128xbf16>
    %cst_43 = arith.constant 0.000000e+00 : bf16
    %77 = vector.shape_cast %30 : vector<256x1xi1> to vector<256x1xi1>
    %78 = vector.broadcast %77 : vector<256x1xi1> to vector<256x128xi1>
    %79 = vector.broadcast %cst_43 : bf16 to vector<256x128xbf16>
    %80 = arith.select %78, %76, %79 : vector<256x128xi1>, vector<256x128xbf16>
    %c0_44 = arith.constant 0 : index
    %c1024 = arith.constant 1024 : index
    %81 = vector.load %arg8[%c0_44, %c1024] : memref<512x1152xbf16, #tpu.memory_space<vmem>>, vector<256x128xbf16>
    tpu.vector_store %arg8[%c0_44, %c1024], %80 {strides = array<i32>} : memref<512x1152xbf16, #tpu.memory_space<vmem>>, vector<256x128xbf16>,
    %c335 = arith.constant 335 : index
    %c0_45 = arith.constant 0 : index
    %82 = vector.load %arg7[%c335, %c0_45] : memref<640x128xbf16, #tpu.memory_space<vmem>>, vector<256x128xbf16>
    %cst_46 = arith.constant 0.000000e+00 : bf16
    %83 = vector.shape_cast %28 : vector<256x1xi1> to vector<256x1xi1>
    %84 = vector.broadcast %83 : vector<256x1xi1> to vector<256x128xi1>
    %85 = vector.broadcast %cst_46 : bf16 to vector<256x128xbf16>
    %86 = arith.select %84, %82, %85 : vector<256x128xi1>, vector<256x128xbf16>
    %c256_47 = arith.constant 256 : index
    %c0_48 = arith.constant 0 : index
    %87 = vector.load %arg8[%c256_47, %c0_48] : memref<512x1152xbf16, #tpu.memory_space<vmem>>, vector<256x128xbf16>
    tpu.vector_store %arg8[%c256_47, %c0_48], %86 {strides = array<i32>} : memref<512x1152xbf16, #tpu.memory_space<vmem>>, vector<256x128xbf16>,
    %c336 = arith.constant 336 : index
    %c0_49 = arith.constant 0 : index
    %88 = vector.load %arg7[%c336, %c0_49] : memref<640x128xbf16, #tpu.memory_space<vmem>>, vector<256x128xbf16>
    %c256_50 = arith.constant 256 : index
    %c128_51 = arith.constant 128 : index
    %89 = vector.load %arg8[%c256_50, %c128_51] : memref<512x1152xbf16, #tpu.memory_space<vmem>>, vector<256x128xbf16>
    tpu.vector_store %arg8[%c256_50, %c128_51], %88 {strides = array<i32>} : memref<512x1152xbf16, #tpu.memory_space<vmem>>, vector<256x128xbf16>,
    %c337 = arith.constant 337 : index
    %c0_52 = arith.constant 0 : index
    %90 = vector.load %arg7[%c337, %c0_52] : memref<640x128xbf16, #tpu.memory_space<vmem>>, vector<256x128xbf16>
    %cst_53 = arith.constant 0.000000e+00 : bf16
    %91 = vector.shape_cast %30 : vector<256x1xi1> to vector<256x1xi1>
    %92 = vector.broadcast %91 : vector<256x1xi1> to vector<256x128xi1>
    %93 = vector.broadcast %cst_53 : bf16 to vector<256x128xbf16>
    %94 = arith.select %92, %90, %93 : vector<256x128xi1>, vector<256x128xbf16>
    %c256_54 = arith.constant 256 : index
    %c256_55 = arith.constant 256 : index
    %95 = vector.load %arg8[%c256_54, %c256_55] : memref<512x1152xbf16, #tpu.memory_space<vmem>>, vector<256x128xbf16>
    tpu.vector_store %arg8[%c256_54, %c256_55], %94 {strides = array<i32>} : memref<512x1152xbf16, #tpu.memory_space<vmem>>, vector<256x128xbf16>,
    %c351 = arith.constant 351 : index
    %c0_56 = arith.constant 0 : index
    %96 = vector.load %arg7[%c351, %c0_56] : memref<640x128xbf16, #tpu.memory_space<vmem>>, vector<256x128xbf16>
    %cst_57 = arith.constant 0.000000e+00 : bf16
    %97 = vector.shape_cast %28 : vector<256x1xi1> to vector<256x1xi1>
    %98 = vector.broadcast %97 : vector<256x1xi1> to vector<256x128xi1>
    %99 = vector.broadcast %cst_57 : bf16 to vector<256x128xbf16>
    %100 = arith.select %98, %96, %99 : vector<256x128xi1>, vector<256x128xbf16>
    %c256_58 = arith.constant 256 : index
    %c384_59 = arith.constant 384 : index
    %101 = vector.load %arg8[%c256_58, %c384_59] : memref<512x1152xbf16, #tpu.memory_space<vmem>>, vector<256x128xbf16>
    tpu.vector_store %arg8[%c256_58, %c384_59], %100 {strides = array<i32>} : memref<512x1152xbf16, #tpu.memory_space<vmem>>, vector<256x128xbf16>,
    %c352_60 = arith.constant 352 : index
    %c0_61 = arith.constant 0 : index
    %102 = vector.load %arg7[%c352_60, %c0_61] : memref<640x128xbf16, #tpu.memory_space<vmem>>, vector<256x128xbf16>
    %c256_62 = arith.constant 256 : index
    %c512_63 = arith.constant 512 : index
    %103 = vector.load %arg8[%c256_62, %c512_63] : memref<512x1152xbf16, #tpu.memory_space<vmem>>, vector<256x128xbf16>
    tpu.vector_store %arg8[%c256_62, %c512_63], %102 {strides = array<i32>} : memref<512x1152xbf16, #tpu.memory_space<vmem>>, vector<256x128xbf16>,
    %c353 = arith.constant 353 : index
    %c0_64 = arith.constant 0 : index
    %104 = vector.load %arg7[%c353, %c0_64] : memref<640x128xbf16, #tpu.memory_space<vmem>>, vector<256x128xbf16>
    %cst_65 = arith.constant 0.000000e+00 : bf16
    %105 = vector.shape_cast %30 : vector<256x1xi1> to vector<256x1xi1>
    %106 = vector.broadcast %105 : vector<256x1xi1> to vector<256x128xi1>
    %107 = vector.broadcast %cst_65 : bf16 to vector<256x128xbf16>
    %108 = arith.select %106, %104, %107 : vector<256x128xi1>, vector<256x128xbf16>
    %c256_66 = arith.constant 256 : index
    %c640_67 = arith.constant 640 : index
    %109 = vector.load %arg8[%c256_66, %c640_67] : memref<512x1152xbf16, #tpu.memory_space<vmem>>, vector<256x128xbf16>
    tpu.vector_store %arg8[%c256_66, %c640_67], %108 {strides = array<i32>} : memref<512x1152xbf16, #tpu.memory_space<vmem>>, vector<256x128xbf16>,
    %c367 = arith.constant 367 : index
    %c0_68 = arith.constant 0 : index
    %110 = vector.load %arg7[%c367, %c0_68] : memref<640x128xbf16, #tpu.memory_space<vmem>>, vector<256x128xbf16>
    %cst_69 = arith.constant 0.000000e+00 : bf16
    %111 = vector.shape_cast %28 : vector<256x1xi1> to vector<256x1xi1>
    %112 = vector.broadcast %111 : vector<256x1xi1> to vector<256x128xi1>
    %113 = vector.broadcast %cst_69 : bf16 to vector<256x128xbf16>
    %114 = arith.select %112, %110, %113 : vector<256x128xi1>, vector<256x128xbf16>
    %c256_70 = arith.constant 256 : index
    %c768_71 = arith.constant 768 : index
    %115 = vector.load %arg8[%c256_70, %c768_71] : memref<512x1152xbf16, #tpu.memory_space<vmem>>, vector<256x128xbf16>
    tpu.vector_store %arg8[%c256_70, %c768_71], %114 {strides = array<i32>} : memref<512x1152xbf16, #tpu.memory_space<vmem>>, vector<256x128xbf16>,
    %c368 = arith.constant 368 : index
    %c0_72 = arith.constant 0 : index
    %116 = vector.load %arg7[%c368, %c0_72] : memref<640x128xbf16, #tpu.memory_space<vmem>>, vector<256x128xbf16>
    %c256_73 = arith.constant 256 : index
    %c896_74 = arith.constant 896 : index
    %117 = vector.load %arg8[%c256_73, %c896_74] : memref<512x1152xbf16, #tpu.memory_space<vmem>>, vector<256x128xbf16>
    tpu.vector_store %arg8[%c256_73, %c896_74], %116 {strides = array<i32>} : memref<512x1152xbf16, #tpu.memory_space<vmem>>, vector<256x128xbf16>,
    %c369 = arith.constant 369 : index
    %c0_75 = arith.constant 0 : index
    %118 = vector.load %arg7[%c369, %c0_75] : memref<640x128xbf16, #tpu.memory_space<vmem>>, vector<256x128xbf16>
    %cst_76 = arith.constant 0.000000e+00 : bf16
    %119 = vector.shape_cast %30 : vector<256x1xi1> to vector<256x1xi1>
    %120 = vector.broadcast %119 : vector<256x1xi1> to vector<256x128xi1>
    %121 = vector.broadcast %cst_76 : bf16 to vector<256x128xbf16>
    %122 = arith.select %120, %118, %121 : vector<256x128xi1>, vector<256x128xbf16>
    %c256_77 = arith.constant 256 : index
    %c1024_78 = arith.constant 1024 : index
    %123 = vector.load %arg8[%c256_77, %c1024_78] : memref<512x1152xbf16, #tpu.memory_space<vmem>>, vector<256x128xbf16>
    tpu.vector_store %arg8[%c256_77, %c1024_78], %122 {strides = array<i32>} : memref<512x1152xbf16, #tpu.memory_space<vmem>>, vector<256x128xbf16>,
    %c0_79 = arith.constant 0 : index
    %c0_80 = arith.constant 0 : index
    %124 = vector.load %arg8[%c0_79, %c0_80] : memref<512x1152xbf16, #tpu.memory_space<vmem>>, vector<512x1152xbf16>
    %c0_81 = arith.constant 0 : index
    %c0_82 = arith.constant 0 : index
    %125 = vector.load %arg4[%c0_81, %c0_82] : memref<1152x128xbf16, #tpu.memory_space<vmem>>, vector<1152x128xbf16>
    %cst_83 = arith.constant dense<0.000000e+00> : vector<512x128xf32>
    %126 = tpu.matmul %124, %125, %cst_83 {dimension_numbers = #tpu.dot_dimension_numbers<[1], [0], [0], [1], [0, 0, 1, 1], [], []>} : vector<512x1152xbf16>, vector<1152x128xbf16>, vector<512x128xf32> -> vector<512x128xf32>
    %c0_84 = arith.constant 0 : index
    %c0_85 = arith.constant 0 : index
    %127 = vector.load %arg5[%c0_84, %c0_85] : memref<1x128xf32, #tpu.memory_space<vmem>>, vector<1x128xf32>
    %128 = vector.broadcast %127 : vector<1x128xf32> to vector<512x128xf32>
    %129 = arith.addf %126, %128 : vector<512x128xf32>
    %cst_86 = arith.constant 0.000000e+00 : f32
    %130 = vector.broadcast %cst_86 : f32 to vector<512x128xf32>
    %131 = arith.maximumf %129, %130 : vector<512x128xf32>
    %132 = arith.truncf %131 : vector<512x128xf32> to vector<512x128xbf16>
    %c0_87 = arith.constant 0 : index
    %c0_88 = arith.constant 0 : index
    %c0_89 = arith.constant 0 : index
    %133 = vector.load %arg6[%c0_87, %c0_88, %c0_89] : memref<1x512x128xbf16, #tpu.memory_space<vmem>>, vector<1x512x128xbf16>
    %134 = vector.shape_cast %133 : vector<1x512x128xbf16> to vector<512x128xbf16>
    %135 = vector.shape_cast %132 : vector<512x128xbf16> to vector<1x512x128xbf16>
    tpu.vector_store %arg6[%c0_87, %c0_88, %c0_89], %135 {strides = array<i32>} : memref<1x512x128xbf16, #tpu.memory_space<vmem>>, vector<1x512x128xbf16>,
    return
  }
  func.func @transform_0(%arg0: i32) -> (i32, i32, i32) {
    %c0_i32 = arith.constant 0 : i32
    %c0_i32_0 = arith.constant 0 : i32
    %c0_i32_1 = arith.constant 0 : i32
    return %arg0, %c0_i32, %c0_i32_0 : i32, i32, i32
  }
  func.func @transform_1(%arg0: i32) -> (i32, i32) {
    %c0_i32 = arith.constant 0 : i32
    %c0_i32_0 = arith.constant 0 : i32
    %c0_i32_1 = arith.constant 0 : i32
    return %c0_i32, %c0_i32_0 : i32, i32
  }
  func.func @transform_2(%arg0: i32) -> (i32, i32) {
    %c0_i32 = arith.constant 0 : i32
    %c0_i32_0 = arith.constant 0 : i32
    %c0_i32_1 = arith.constant 0 : i32
    return %c0_i32, %c0_i32_0 : i32, i32
  }
  func.func @transform_3(%arg0: i32) -> (i32, i32) {
    %c0_i32 = arith.constant 0 : i32
    %c0_i32_0 = arith.constant 0 : i32
    %c0_i32_1 = arith.constant 0 : i32
    return %c0_i32, %c0_i32_0 : i32, i32
  }
  func.func @transform_4(%arg0: i32) -> (i32, i32) {
    %c0_i32 = arith.constant 0 : i32
    %c0_i32_0 = arith.constant 0 : i32
    %c0_i32_1 = arith.constant 0 : i32
    return %c0_i32, %c0_i32_0 : i32, i32
  }
  func.func @transform_5(%arg0: i32) -> (i32, i32, i32) {
    %c0_i32 = arith.constant 0 : i32
    %c0_i32_0 = arith.constant 0 : i32
    %c0_i32_1 = arith.constant 0 : i32
    return %arg0, %c0_i32, %c0_i32_0 : i32, i32, i32
  }
}

</mosaic_0001>

<bundles_post_ra>
// kernel: tpu_custom_call.1
= control target key start
LH: loop header
LB: loop body
LE: loop exit
PB: predicated region body
PF: predicated region fallthrough
CT: control target
= control target key end

     0   :  { %10 = vsyncpa [#allocation5], 0  ;;  %s11118_s0 = inlined_call_operand.vmem [shape: bf16[1,512,36], index: 0, kind: input, shape index: {}]   ;;  %s11119_s1 = inlined_call_operand.vmem [shape: bf16[36,128], index: 1, kind: input, shape index: {}]   ;;  %s11120_s2 = inlined_call_operand.vmem [shape: f32[1,128], index: 2, kind: input, shape index: {}]   ;;  %s11121_s3 = inlined_call_operand.hbm [shape: bf16[1152,128], index: 3, kind: input, shape index: {}]   ;;  %s11122_s4 = inlined_call_operand.vmem [shape: f32[1,128], index: 4, kind: input, shape index: {}]   ;;  %s11123_s5 = inlined_call_operand.hbm [shape: bf16[1,512,128], index: 5, kind: output, shape index: {}]  }
   0x1   :  { %11 = vsyncpa [#allocation6], 0  ;;  %s8525_s18 = smov [#allocation4]   ;;  %s8477_s22 = scalar_lea.hbm %s11121_s3, 9216 }
   0x2   :  { %s23_s19 = sshll.u32 %s8525_s18, 4  ;;  %p8478_p0 = scmp.ne.s32.totalorder %s11121_s3, %s8477_s22  ;;  %s24_s19 = int_to_ptr.vmem [resolvable:$true] %s23_s19 }
   0x3   :  { %p8481_p1 = scmp.lt.u32.totalorder %s8477_s22, %s11121_s3 }
   0x5   :  { %p8483_p2 = pnand %p8481_p1, %p8478_p0 }
   0x7   :  { %8486 = shalt.err (!%p8483_p2)
}
   0x8   :  { %s8487_s27 = scalar_lea.vmem %s24_s19, 9216  ;;  %p8492_p4 = scmp.lt.s32.totalorder %s24_s19, %s24_s19 }
   0x9   :  { %p8488_p3 = scmp.ne.s32.totalorder %s24_s19, %s8487_s27  ;;  %p8493_p5 = scmp.lt.s32.totalorder %s8487_s27, %s8487_s27 }
   0xb   :  { %p8494_p6 = por %p8493_p5, %p8492_p4 }
   0xd   :  { %p8495_p7 = pnand %p8494_p6, %p8488_p3 }
   0xf   :  { %8498 = shalt.err (!%p8495_p7)
}
  0x10   :  { %s8526_s28 = smov 64   ;;  %s8527_s29 = smov 4  }
  0x11   :  { %29 = dma.hbm_to_vmem [thread:$0]  %s11121_s3, 9216, %s24_s19, [#allocation5], %s8526_s28, %s8526_s28, %s8527_s29  }
  0x12   :  { %8521 = dma.done.wait [#allocation5], 9216  }
  0x13   :  { %8522 = vsyncadd [#allocation5], 4294958080  ;;  %v8363_v0 = vld [vmem:[%s11119_s1] sm:$0xff]   ;;  %v8364_v1 = vld [vmem:[%s11119_s1 + $0x8] sm:$0xff]   ;;  %vm289_vm0 = vcmask 293888   ;;  %vm386_vm1 = vcmask 1041408   ;;  %v775_v36 = vlaneseq }
  0x14   :  { %7790 = vmatprep.subr.bf16.mxu0 %v8363_v0  ;;  %v8365_v2 = vld [vmem:[%s11119_s1 + $0x10] ss:$0 sps:$4 sm:$0x33]   ;;  %v8366_v3 = vld [vmem:[%s11118_s0] sm:$0xff]   ;;  %v8528_v4 = vmov 0   ;;  %v8367_v6 = vld [vmem:[%s11118_s0 + $0x8] sm:$0xff]  }
  0x15   :  { %7791 = vmatpush3.bf16.msra.mxu0 %v8363_v0  ;;  %7796 = vmatprep.mubr.msk.bf16.mxu0 %vm289_vm0, %v8366_v3  ;;  %1256 = vst [vmem:[#allocation2] sm:$0xff] %v8528_v4  ;;  %1257 = vst [vmem:[#allocation2 + $0x8] sm:$0xff] %v8528_v4  ;;  %v388_v5 = vsel %vm386_vm1, %v8365_v2, 0  ;;  %v8368_v7 = vld [vmem:[%s11118_s0 + $0x10] sm:$0xff]   ;;  %v8369_v8 = vld [vmem:[%s11118_s0 + $0x18] sm:$0xff]   ;;  %v8685_v38 = vshrl.u32 %v775_v36, 7 }
  0x16   :  { %7792 = vmatprep.subr.bf16.mxu0 %v8364_v1  ;;  %1258 = vst [vmem:[#allocation2 + $0x90] sm:$0xff] %v8528_v4  ;;  %1259 = vst [vmem:[#allocation2 + $0x98] sm:$0xff] %v8528_v4  ;;  %7940 = vmatprep.subr.bf16.mxu1 %v8528_v4  ;;  %v8370_v9 = vld [vmem:[%s11118_s0 + $0x20] sm:$0xff]   ;;  %v8371_v10 = vld [vmem:[%s11118_s0 + $0x28] sm:$0xff]   ;;  %vm8529_vm4 = vmmov 1   ;;  %s8530_s8 = smov [#allocation7]  }
  0x17   :  { %1276 = vst [vmem:[#allocation2 + $0xa0] sm:$0xff] %v8528_v4  ;;  %1277 = vst [vmem:[#allocation2 + $0xa8] sm:$0xff] %v8528_v4  ;;  %v8372_v11 = vld [vmem:[%s11118_s0 + $0x30] sm:$0xff]   ;;  %v8373_v12 = vld [vmem:[%s11118_s0 + $0x38] sm:$0xff]   ;;  %v778_v40 = vadd.s32 16, %v8685_v38  ;;  %v812_v43 = vand.u32 15, %v8685_v38 }
  0x18   :  { %1278 = vst [vmem:[#allocation2 + $0x130] sm:$0xff] %v8528_v4  ;;  %1279 = vst [vmem:[#allocation2 + $0x138] sm:$0xff] %v8528_v4  ;;  %v8374_v13 = vld [vmem:[%s11118_s0 + $0x40] sm:$0xff]   ;;  %v8399_v15 = vld [vmem:[#allocation4 + $0x8] sm:$0xff]   ;;  %vm1489_vm8 = vsmask.f32 7424 }
  0x19   :  { %7793 = vmatpush3.bf16.msra.mxu0 %v8364_v1  ;;  %v8398_v14 = vld [vmem:[#allocation4] sm:$0xff]   ;;  %v8400_v16 = vld [vmem:[#allocation4 + $0x10] sm:$0xff]   ;;  %v8375_v17 = vld [vmem:[%s11118_s0 + $0x48] sm:$0xff]   ;;  %11193 = vst [vmem:[#allocation10_spill] sm:$0xff] %v8685_v38  ;;  %v826_v41 = vand.u32 15, %v778_v40  ;;  %vm1192_vm6 = vcmp.ge.s32.totalorder %v812_v43, 1 }
  0x1a   :  { %8356 = vmatprep.subr.msk.bf16.mxu0 %vm386_vm1, %v8365_v2  ;;  %v8376_v18 = vld [vmem:[%s11118_s0 + $0x50] sm:$0xff]   ;;  %v8401_v19 = vld [vmem:[#allocation4 + $0x18] sm:$0xff]   ;;  %v8402_v20 = vld [vmem:[#allocation4 + $0x20] sm:$0xff]   ;;  %vm1651_vm11 = vsmask.f32 256  ;;  %v784_v40 = vadd.s32 64, %v8685_v38 }
  0x1b   :  { %v8377_v21 = vld [vmem:[%s11118_s0 + $0x58] sm:$0xff]   ;;  %v8378_v22 = vld [vmem:[%s11118_s0 + $0x60] sm:$0xff]   ;;  %v8403_v23 = vld [vmem:[#allocation4 + $0x28] sm:$0xff]   ;;  %vm1194_vm2 = vcmp.ge.s32.totalorder %v826_v41, 1  ;;  %v782_v43 = vadd.s32 48, %v8685_v38  ;;  %s7211_s9 = sshll.u32 %s8530_s8, 4  ;;  %s7212_s9 = int_to_ptr.vmem [resolvable:$true] %s7211_s9 }
  0x1c   :  { %v8404_v24 = vld [vmem:[#allocation4 + $0x30] sm:$0xff]   ;;  %v8379_v25 = vld [vmem:[%s11118_s0 + $0x68] sm:$0xff]   ;;  %v8405_v27 = vld [vmem:[#allocation4 + $0x38] sm:$0xff]   ;;  %p8504_p9 = scmp.lt.s32.totalorder %s7212_s9, %s7212_s9 }
  0x1d   :  { %7795 = vmatpush3.bf16.msra.mxu0 %v388_v5  ;;  %v8380_v26 = vld [vmem:[%s11118_s0 + $0x70] sm:$0xff]   ;;  %v8406_v28 = vld [vmem:[#allocation4 + $0x40] sm:$0xff]   ;;  %v8381_v29 = vld [vmem:[%s11118_s0 + $0x78] sm:$0xff]  }
  0x1e   :  { %5377 = vmatprep.subr.bf16.mxu0 %v8528_v4  ;;  %v8382_v30 = vld [vmem:[%s11118_s0 + $0x80] sm:$0xff]   ;;  %v8407_v31 = vld [vmem:[#allocation4 + $0x48] sm:$0xff]   ;;  %v8408_v32 = vld [vmem:[#allocation4 + $0x50] sm:$0xff]  }
  0x1f   :  { %v8383_v33 = vld [vmem:[%s11118_s0 + $0x88] sm:$0xff]   ;;  %v8384_v34 = vld [vmem:[%s11118_s0 + $0x90] sm:$0xff]   ;;  %v8409_v35 = vld [vmem:[#allocation4 + $0x58] sm:$0xff]  }
  0x20   :  { %7797 = vmatmul.mubr.msk.bf16.vlgmr.msra.gmra.mrb[0].mxu0 %vm289_vm0, %v8367_v6  ;;  %v8385_v37 = vld [vmem:[%s11118_s0 + $0x98] sm:$0xff]   ;;  %v8386_v39 = vld [vmem:[%s11118_s0 + $0xa0] sm:$0xff]   ;;  %vm1379_vm3 = vmpackc.low %vm1194_vm2, %vm1194_vm2 }
  0x21   :  { %7800 = vmatprep.mubr.msk.bf16.mxu0 %vm289_vm0, %v8368_v7  ;;  %5378 = vmatpush1.bf16.msra.mxu0 %v8398_v14  ;;  %v8410_v42 = vld [vmem:[#allocation4 + $0x60] sm:$0xff]   ;;  %vm1378_vm5 = vmpackc.low %vm8529_vm4, %vm8529_vm4  ;;  %v8387_v44 = vld [vmem:[%s11118_s0 + $0xa8] sm:$0xff]   ;;  %v1411_v45 = vsel %vm1379_vm3, 65537, %v8528_v4 }
  0x22   :  { %5379 = vmatprep.subr.bf16.mxu0 %v8528_v4  ;;  %v8388_v46 = vld [vmem:[%s11118_s0 + $0xb0] sm:$0xff]   ;;  %v8704_v47 = vsel %vm1378_vm5, 65537, %v8528_v4  ;;  %v8411_v48 = vld [vmem:[#allocation4 + $0x68] sm:$0xff]   ;;  %vm1377_vm7 = vmpackc.low %vm1192_vm6, %vm1192_vm6 }
  0x23   :  { %v7292_v49 = vcombine.low %v1411_v45, %v8704_v47  ;;  %v8412_v50 = vld [vmem:[#allocation4 + $0x70] sm:$0xff]   ;;  %v8389_v52 = vld [vmem:[%s11118_s0 + $0xb8] sm:$0xff]   ;;  %v8390_v53 = vld [vmem:[%s11118_s0 + $0xc0] sm:$0xff]   ;;  %v1409_v54 = vsel %vm1377_vm7, 65537, %v8528_v4  ;;  %v786_v45 = vadd.s32 80, %v8685_v38 }
  0x24   :  { %v8413_v55 = vld [vmem:[#allocation4 + $0x78] sm:$0xff]   ;;  %v7291_v58 = vcombine.low %v1409_v54, %v8704_v47  ;;  %v8391_v60 = vld [vmem:[%s11118_s0 + $0xc8] sm:$0xff]   ;;  %v8392_v62 = vld [vmem:[%s11118_s0 + $0xd0] sm:$0xff]   ;;  %v783_v54 = vadd.s32 56, %v8685_v38 }
  0x25   :  { %5380 = vmatpush1.bf16.msra.mxu0 %v8399_v15  ;;  %v1498_v51 = vshll.u32 %v7292_v49, 16  ;;  %v1502_v57 = vshrl.u32 %v7292_v49, 16  ;;  %v8393_v1 = vld [vmem:[%s11118_s0 + $0xd8] sm:$0xff]   ;;  %v8394_v3 = vld [vmem:[%s11118_s0 + $0xe0] sm:$0xff]   ;;  %v8395_v6 = vld [vmem:[%s11118_s0 + $0xe8] sm:$0xff]   ;;  %v8764_v15 = vrot.slane %v8528_v4, 7 }
  0x26   :  { %5381 = vmatprep.subr.bf16.mxu0 %v8528_v4  ;;  %v1491_v61 = vshll.u32 %v7291_v58, 16  ;;  %v1494_v0 = vshrl.u32 %v7291_v58, 16  ;;  %v8414_v7 = vld [vmem:[#allocation4 + $0x80] sm:$0xff]   ;;  %v8427_v36 = vld [vmem:[#allocation4 + $0xe8] sm:$0xff]   ;;  %v8803_v41 = vld [vmem:[#allocation4 + $0xf8] sm:$0xff]  }
  0x27   :  { %v1500_v56 = vrot.slane %v1498_v51, 1  ;;  %7956 = vmatpush1.bf16.msra.mxu1 %v8414_v7 }
  0x28   :  { %7801 = vmatmul.mubr.msk.bf16.gmra.mrb[4].mxu0 %vm289_vm0, %v8369_v8  ;;  %v8731_v63 = vrot.slane %v1491_v61, 1  ;;  %v8396_v8 = vld [vmem:[%s11118_s0 + $0xf0] sm:$0xff]   ;;  %7941 = vmatprep.subr.bf16.mxu1 %v8528_v4 }
  0x29   :  { %7804 = vmatprep.mubr.msk.bf16.mxu0 %vm289_vm0, %v8370_v9  ;;  %5382 = vmatpush1.bf16.msra.mxu0 %v8400_v16  ;;  %v8721_v59 = vor.u32 %v1502_v57, %v1500_v56  ;;  %v1296_v9 = vld [vmem:[#allocation2] sm:$0x80]  ;;  %v781_v16 = vadd.s32 40, %v8685_v38  ;;  %v792_v57 = vadd.s32 128, %v8685_v38 }
  0x2a   :  { %5383 = vmatprep.subr.bf16.mxu0 %v8528_v4  ;;  %11194 = vst [vmem:[#allocation11_spill] sm:$0xff] %v8731_v63  ;;  %v1496_v2 = vor.u32 %v1494_v0, %v8731_v63  ;;  %vm11149_vm10 = vcmp.ne.s16.totalorder %v8731_v63, 0  ;;  %v796_v0 = vadd.s32 160, %v8685_v38 }
  0x2c   :  { %v8743_v5 = vsel %vm1489_vm8, %v1496_v2, %v1500_v56  ;;  %v861_v2 = vand.u32 15, %v783_v54 }
  0x2d   :  { %5384 = vmatpush1.bf16.msra.mxu0 %v8401_v19  ;;  %11195 = vst [vmem:[#allocation12_spill] sm:$0xff] %v8743_v5  ;;  %vm11143_vm9 = vcmp.ne.s16.totalorder %v8743_v5, 0  ;;  %v847_v19 = vand.u32 15, %v781_v16 }
  0x2e   :  { %5385 = vmatprep.subr.bf16.mxu0 %v8528_v4 }
  0x2f   :  { %vm1229_vm12 = vcmp.le.s32.totalorder %v847_v19, 14 }
  0x30   :  { %7805 = vmatmul.mubr.msk.bf16.gmra.mrb[8].mxu0 %vm289_vm0, %v8371_v10  ;;  %v8415_v10 = vld [vmem:[#allocation4 + $0x88] sm:$0xff]   ;;  %vm1934_vm13 = vmpackc.low %vm1229_vm12, %vm1229_vm12 }
  0x31   :  { %7808 = vmatprep.mubr.msk.bf16.mxu0 %vm289_vm0, %v8372_v11  ;;  %5386 = vmatpush1.bf16.msra.mxu0 %v8402_v20  ;;  %v1634_v11 = vsel %vm11149_vm10, %v1296_v9, 0  ;;  %v8418_v20 = vld [vmem:[#allocation4 + $0xa0] sm:$0xff]  }
  0x32   :  { %5387 = vmatprep.subr.bf16.mxu0 %v8528_v4  ;;  %7957 = vmatpush1.bf16.msra.mxu1 %v8415_v10  ;;  %v1653_v14 = vshrl.u32 %v1634_v11, 16 }
  0x33   :  { %7942 = vmatprep.subr.bf16.mxu1 %v8528_v4 }
  0x35   :  { %5388 = vmatpush1.bf16.msra.mxu0 %v8403_v23  ;;  %v8420_v23 = vld [vmem:[#allocation4 + $0xb0] sm:$0xff]  }
  0x36   :  { %5389 = vmatprep.subr.bf16.mxu0 %v8528_v4 }
  0x38   :  { %7809 = vmatmul.mubr.msk.bf16.gmra.mrb[12].mxu0 %vm289_vm0, %v8373_v12  ;;  %v8397_v12 = vld [vmem:[%s11118_s0 + $0xf8] sm:$0xff]  }
  0x39   :  { %7812 = vmatprep.mubr.msk.bf16.mxu0 %vm289_vm0, %v8374_v13  ;;  %5390 = vmatpush1.bf16.msra.mxu0 %v8404_v24  ;;  %v8416_v13 = vld [vmem:[#allocation4 + $0x90] sm:$0xff]   ;;  %v1966_v24 = vsel %vm1934_vm13, 65537, %v8528_v4  ;;  %vm8861_vm13 = vcmp.le.s32.totalorder %v861_v2, 14 }
  0x3a   :  { %5391 = vmatprep.subr.bf16.mxu0 %v8528_v4  ;;  %7958 = vmatpush1.bf16.msra.mxu1 %v8416_v13 }
  0x3b   :  { %7943 = vmatprep.subr.bf16.mxu1 %v8528_v4 }
  0x3d   :  { %5392 = vmatpush1.bf16.msra.mxu0 %v8405_v27 }
  0x3e   :  { %5393 = vmatprep.subr.bf16.mxu0 %v8528_v4 }
  0x40   :  { %7813 = vmatmul.mubr.msk.bf16.gmra.mrb[16].mxu0 %vm289_vm0, %v8375_v17  ;;  %v8417_v17 = vld [vmem:[#allocation4 + $0x98] sm:$0xff]  }
  0x41   :  { %7816 = vmatprep.mubr.msk.bf16.mxu0 %vm289_vm0, %v8376_v18  ;;  %5394 = vmatpush1.bf16.msra.mxu0 %v8406_v28  ;;  %v1655_v18 = vrot.slane %v1653_v14, 7  ;;  %v8422_v28 = vld [vmem:[#allocation4 + $0xc0] sm:$0xff]  }
  0x42   :  { %5395 = vmatprep.subr.bf16.mxu0 %v8528_v4  ;;  %7959 = vmatpush1.bf16.msra.mxu1 %v8417_v17 }
  0x43   :  { %7944 = vmatprep.subr.bf16.mxu1 %v8528_v4 }
  0x45   :  { %5396 = vmatpush1.bf16.msra.mxu0 %v8407_v31 }
  0x46   :  { %5397 = vmatprep.subr.bf16.mxu0 %v8528_v4  ;;  %7960 = vmatpush1.bf16.msra.mxu1 %v8418_v20 }
  0x47   :  { %7945 = vmatprep.subr.bf16.mxu1 %v8528_v4 }
  0x48   :  { %7817 = vmatmul.mubr.msk.bf16.gmra.mrb[20].mxu0 %vm289_vm0, %v8377_v21  ;;  %v1663_v21 = vsel %vm1651_vm11, %v1655_v18, %v8764_v15 }
  0x49   :  { %7820 = vmatprep.mubr.msk.bf16.mxu0 %vm289_vm0, %v8378_v22  ;;  %5398 = vmatpush1.bf16.msra.mxu0 %v8408_v32  ;;  %v8419_v22 = vld [vmem:[#allocation4 + $0xa8] sm:$0xff]  }
  0x4a   :  { %5399 = vmatprep.subr.bf16.mxu0 %v8528_v4  ;;  %7961 = vmatpush1.bf16.msra.mxu1 %v8419_v22 }
  0x4b   :  { %7946 = vmatprep.subr.bf16.mxu1 %v8528_v4 }
  0x4d   :  { %5400 = vmatpush1.bf16.msra.mxu0 %v8409_v35  ;;  %v8426_v35 = vld [vmem:[#allocation4 + $0xe0] sm:$0xff]  }
  0x4e   :  { %5401 = vmatprep.subr.bf16.mxu0 %v8528_v4  ;;  %7962 = vmatpush1.bf16.msra.mxu1 %v8420_v23 }
  0x4f   :  { %7947 = vmatprep.subr.bf16.mxu1 %v8528_v4 }
  0x50   :  { %7821 = vmatmul.mubr.msk.bf16.gmra.mrb[24].mxu0 %vm289_vm0, %v8379_v25  ;;  %v7309_v25 = vcombine.low %v8704_v47, %v1966_v24 }
  0x51   :  { %7824 = vmatprep.mubr.msk.bf16.mxu0 %vm289_vm0, %v8380_v26  ;;  %5402 = vmatpush1.bf16.msra.mxu0 %v8410_v42  ;;  %v8421_v26 = vld [vmem:[#allocation4 + $0xb8] sm:$0xff]  }
  0x52   :  { %5403 = vmatprep.subr.bf16.mxu0 %v8528_v4  ;;  %7963 = vmatpush1.bf16.msra.mxu1 %v8421_v26  ;;  %v2057_v27 = vshrl.u32 %v7309_v25, 16  ;;  %v2060_v31 = vshll.u32 %v7309_v25, 16 }
  0x53   :  { %7948 = vmatprep.subr.bf16.mxu1 %v8528_v4 }
  0x55   :  { %5404 = vmatpush1.bf16.msra.mxu0 %v8411_v48  ;;  %v854_v48 = vand.u32 15, %v782_v43 }
  0x56   :  { %5405 = vmatprep.subr.bf16.mxu0 %v8528_v4  ;;  %7964 = vmatpush1.bf16.msra.mxu1 %v8422_v28 }
  0x57   :  { %7949 = vmatprep.subr.bf16.mxu1 %v8528_v4  ;;  %vm8816_vm1 = vcmp.ge.s32.totalorder %v854_v48, 1 }
  0x58   :  { %7825 = vmatmul.mubr.msk.bf16.gmra.mrb[28].mxu0 %vm289_vm0, %v8381_v29  ;;  %v8784_v29 = vrot.slane %v2057_v27, 7  ;;  %vm1383_vm4 = vmpackc.low %vm8816_vm1, %vm8816_vm1 }
  0x59   :  { %7828 = vmatprep.mubr.msk.bf16.mxu0 %vm289_vm0, %v8382_v30  ;;  %5406 = vmatpush1.bf16.msra.mxu0 %v8412_v50  ;;  %v8423_v30 = vld [vmem:[#allocation4 + $0xc8] sm:$0xff]   ;;  %v882_v50 = vand.u32 15, %v786_v45 }
  0x5a   :  { %5407 = vmatprep.subr.bf16.mxu0 %v8528_v4  ;;  %7965 = vmatpush1.bf16.msra.mxu1 %v8423_v30  ;;  %v8789_v32 = vor.u32 %v2060_v31, %v8784_v29 }
  0x5b   :  { %7950 = vmatprep.subr.bf16.mxu1 %v8528_v4  ;;  %vm8827_vm3 = vcmp.ge.s32.totalorder %v882_v50, 1 }
  0x5c   :  { %11196 = vst [vmem:[#allocation13_spill] sm:$0xff] %v8789_v32  ;;  %vm1387_vm6 = vmpackc.low %vm8827_vm3, %vm8827_vm3 }
  0x5d   :  { %5408 = vmatpush1.bf16.msra.mxu0 %v8413_v55 }
  0x5e   :  { %5666 = vmatprep.subr.bf16.mxu0 %v8528_v4 }
  0x60   :  { %7829 = vmatmul.mubr.msk.bf16.gmra.mrb[32].mxu0 %vm289_vm0, %v8383_v33  ;;  %v8424_v33 = vld [vmem:[#allocation4 + $0xd0] sm:$0xff]  }
  0x61   :  { %7832 = vmatprep.mubr.msk.bf16.mxu0 %vm289_vm0, %v8384_v34  ;;  %7966 = vmatpush1.bf16.msra.mxu1 %v8424_v33  ;;  %v8425_v34 = vld [vmem:[#allocation4 + $0xd8] sm:$0xff]  }
  0x62   :  { %7951 = vmatprep.subr.bf16.mxu1 %v8528_v4 }
  0x65   :  { %7967 = vmatpush1.bf16.msra.mxu1 %v8425_v34 }
  0x66   :  { %7952 = vmatprep.subr.bf16.mxu1 %v8528_v4 }
  0x68   :  { %7833 = vmatmul.mubr.msk.bf16.gmra.mrb[36].mxu0 %vm289_vm0, %v8385_v37  ;;  %v8428_v37 = vld [vmem:[#allocation4 + $0xf0] sm:$0xff]  }
  0x69   :  { %7836 = vmatprep.mubr.msk.bf16.mxu0 %vm289_vm0, %v8386_v39  ;;  %7968 = vmatpush1.bf16.msra.mxu1 %v8426_v35  ;;  %v780_v39 = vadd.s32 32, %v8685_v38 }
  0x6a   :  { %7953 = vmatprep.subr.bf16.mxu1 %v8528_v4 }
  0x6b   :  { %v840_v42 = vand.u32 15, %v780_v39  ;;  %v8904_v39 = vld [vmem:[#allocation2] sm:$0xff] }
  0x6d   :  { %7969 = vmatpush1.bf16.msra.mxu1 %v8427_v36  ;;  %vm1196_vm14 = vcmp.ge.s32.totalorder %v840_v42, 1 }
  0x6e   :  { %7954 = vmatprep.subr.bf16.mxu1 %v8528_v4 }
  0x70   :  { %7837 = vmatmul.mubr.msk.bf16.gmra.mrb[40].mxu0 %vm289_vm0, %v8387_v44  ;;  %v868_v44 = vand.u32 15, %v784_v40 }
  0x71   :  { %7840 = vmatprep.mubr.msk.bf16.mxu0 %vm289_vm0, %v8388_v46  ;;  %7970 = vmatpush1.bf16.msra.mxu1 %v8428_v37  ;;  %v788_v46 = vadd.s32 96, %v8685_v38 }
  0x72   :  { %7955 = vmatprep.subr.bf16.mxu1 %v8528_v4  ;;  %vm8812_vm15 = vcmp.ge.s32.totalorder %v868_v44, 1  ;;  %v789_v44 = vadd.s32 104, %v8685_v38 }
  0x73   :  { %v896_v51 = vand.u32 15, %v788_v46  ;;  %vm1385_vm2 = vmpackc.low %vm8812_vm15, %vm8812_vm15 }
  0x74   :  { %v1417_v61 = vsel %vm1385_vm2, 65537, %v8528_v4  ;;  %vm1936_vm2 = vmpackc.low %vm8861_vm13, %vm8861_vm13 }
  0x75   :  { %7971 = vmatpush1.bf16.msra.mxu1 %v8803_v41  ;;  %vm8835_vm5 = vcmp.ge.s32.totalorder %v896_v51, 1  ;;  %v1968_v40 = vsel %vm1936_vm2, 65537, %v8904_v39 }
  0x76   :  { %5955 = vmatprep.subr.bf16.mxu1 %v8528_v4  ;;  %vm1389_vm7 = vmpackc.low %vm8835_vm5, %vm8835_vm5  ;;  %v7310_v51 = vcombine.low %v8704_v47, %v1968_v40 }
  0x78   :  { %7841 = vmatmul.mubr.msk.bf16.gmra.mrb[44].mxu0 %vm289_vm0, %v8389_v52 }
  0x79   :  { %7844 = vmatprep.mubr.msk.bf16.mxu0 %vm289_vm0, %v8390_v53  ;;  %v790_v53 = vadd.s32 112, %v8685_v38 }
  0x80   :  { %7845 = vmatmul.mubr.msk.bf16.gmra.mrb[48].mxu0 %vm289_vm0, %v8391_v60  ;;  %v785_v60 = vadd.s32 72, %v8685_v38 }
  0x81   :  { %7848 = vmatprep.mubr.msk.bf16.mxu0 %vm289_vm0, %v8392_v62  ;;  %v910_v62 = vand.u32 15, %v790_v53  ;;  %v791_v53 = vadd.s32 120, %v8685_v38 }
  0x82   :  { %v875_v9 = vand.u32 15, %v785_v60 }
  0x83   :  { %vm8854_vm12 = vcmp.ge.s32.totalorder %v910_v62, 1  ;;  %v903_v62 = vand.u32 15, %v789_v44 }
  0x84   :  { %vm1391_vm15 = vmpackc.low %vm8854_vm12, %vm8854_vm12 }
  0x85   :  { %v1423_v48 = vsel %vm1391_vm15, 65537, %v8904_v39 }
  0x88   :  { %7849 = vmatmul.mubr.msk.bf16.gmra.mrb[52].mxu0 %vm289_vm0, %v8393_v1 }
  0x89   :  { %7852 = vmatprep.mubr.msk.bf16.mxu0 %vm289_vm0, %v8394_v3  ;;  %v1415_v3 = vsel %vm1383_vm4, 65537, %v8528_v4 }
  0x8a   :  { %v7294_v16 = vcombine.low %v1415_v3, %v8704_v47 }
  0x8c   :  { %v1518_v31 = vshrl.u32 %v7294_v16, 16 }
  0x90   :  { %7853 = vmatmul.mubr.msk.bf16.gmra.mrb[56].mxu0 %vm289_vm0, %v8395_v6  ;;  %v924_v6 = vand.u32 15, %v792_v57 }
  0x91   :  { %7856 = vmatprep.mubr.msk.bf16.mxu0 %vm289_vm0, %v8396_v8  ;;  %v794_v8 = vadd.s32 144, %v8685_v38 }
  0x98   :  { %7857 = vmatmul.mubr.msk.bf16.gmra.mrb[60].mxu0 %vm289_vm0, %v8397_v12  ;;  %vm1381_vm0 = vmpackc.low %vm1196_vm14, %vm1196_vm14  ;;  %v952_v12 = vand.u32 15, %v796_v0  ;;  %vm8866_vm14 = vcmp.ge.s32.totalorder %v924_v6, 1 }
  0x99   :  { %5409 = vmatprep.mubr.bf16.mxu0 %v8528_v4  ;;  %v1413_v55 = vsel %vm1381_vm0, 65537, %v8528_v4  ;;  %vm8877_vm0 = vcmp.le.s32.totalorder %v875_v9, 14  ;;  %vm1393_vm3 = vmpackc.low %vm8866_vm14, %vm8866_vm14 }
  0x9a   :  { %v7293_v1 = vcombine.low %v1413_v55, %v8704_v47  ;;  %vm8882_vm1 = vcmp.ge.s32.totalorder %v952_v12, 1  ;;  %vm1938_vm4 = vmpackc.low %vm8877_vm0, %vm8877_vm0  ;;  %v1425_v42 = vsel %vm1393_vm3, 65537, %v8904_v39  ;;  %vm8958_vm0 = vcmp.le.s32.totalorder %v903_v62, 14 }
  0x9b   :  { %v1970_v49 = vsel %vm1938_vm4, 65537, %v8904_v39  ;;  %v7299_v57 = vcombine.low %v1425_v42, %v8704_v47  ;;  %vm1942_vm2 = vmpackc.low %vm8958_vm0, %vm8958_vm0 }
  0x9c   :  { %v1506_v14 = vshll.u32 %v7293_v1, 16  ;;  %v7311_v3 = vcombine.low %v8704_v47, %v1970_v49  ;;  %v1974_v43 = vsel %vm1942_vm2, 65537, %v8904_v39 }
  0x9d   :  { %v1554_v12 = vshll.u32 %v7299_v57, 16 }
  0x9e   :  { %v1508_v27 = vrot.slane %v1506_v14, 1 }
  0x9f   :  { %v1556_v25 = vrot.slane %v1554_v12, 1 }
  0xa0   :  { %5410 = vmatmul.mubr.bf16.vlgmr.msra.gmra.mrb[64].mxu0 %v1663_v21  ;;  %v8936_v58 = vsel %vm1489_vm8, %v8721_v59, %v1508_v27 }
  0xa1   :  { %5667 = vmatpush1.bf16.msra.mxu0 %v8414_v7  ;;  %v7295_v7 = vcombine.low %v1417_v61, %v8704_v47  ;;  %11221 = vst [vmem:[#allocation14_spill] sm:$0xff] %v8936_v58  ;;  %v7298_v61 = vcombine.low %v1423_v48, %v8704_v47 }
  0xa2   :  { %5668 = vmatprep.subr.bf16.mxu0 %v8528_v4 }
  0xa3   :  { %v1522_v21 = vshll.u32 %v7295_v7, 16 }
  0xa5   :  { %5669 = vmatpush1.bf16.msra.mxu0 %v8415_v10  ;;  %v1419_v10 = vsel %vm1387_vm6, 65537, %v8528_v4  ;;  %vm1397_vm6 = vmpackc.low %vm8882_vm1, %vm8882_vm1 }
  0xa6   :  { %5670 = vmatprep.subr.bf16.mxu0 %v8528_v4  ;;  %v1429_v50 = vsel %vm1397_vm6, 65537, %v8904_v39 }
  0xa7   :  { %v7301_v2 = vcombine.low %v1429_v50, %v8704_v47  ;;  %v8988_v50 = vld [vmem:[%s11120_s2] ss:$0 sm:$0xff] }
  0xa9   :  { %5671 = vmatpush1.bf16.msra.mxu0 %v8416_v13  ;;  %v798_v13 = vadd.s32 176, %v8685_v38  ;;  %v1570_v19 = vshll.u32 %v7301_v2, 16 }
  0xaa   :  { %5672 = vmatprep.subr.bf16.mxu0 %v8528_v4 }
  0xad   :  { %5673 = vmatpush1.bf16.msra.mxu0 %v8417_v17  ;;  %v1421_v17 = vsel %vm1389_vm7, 65537, %v8528_v4 }
  0xae   :  { %5674 = vmatprep.subr.bf16.mxu0 %v8528_v4 }
  0xb1   :  { %5675 = vmatpush1.bf16.msra.mxu0 %v8418_v20  ;;  %v787_v20 = vadd.s32 88, %v8685_v38 }
  0xb2   :  { %5676 = vmatprep.subr.bf16.mxu0 %v8528_v4 }
  0xb5   :  { %5677 = vmatpush1.bf16.msra.mxu0 %v8419_v22  ;;  %v8872_v22 = vcombine.low %v1419_v10, %v8704_v47 }
  0xb6   :  { %5678 = vmatprep.subr.bf16.mxu0 %v8528_v4 }
  0xb7   :  { %v1534_v6 = vshrl.u32 %v8872_v22, 16 }
  0xb9   :  { %5679 = vmatpush1.bf16.msra.mxu0 %v8420_v23  ;;  %v938_v23 = vand.u32 15, %v794_v8  ;;  %v917_v8 = vand.u32 15, %v791_v53 }
  0xba   :  { %5680 = vmatprep.subr.bf16.mxu0 %v8528_v4 }
  0xbb   :  { %vm8897_vm5 = vcmp.ge.s32.totalorder %v938_v23, 1  ;;  %vm8965_vm1 = vcmp.le.s32.totalorder %v917_v8, 14 }
  0xbc   :  { %vm1395_vm13 = vmpackc.low %vm8897_vm5, %vm8897_vm5  ;;  %vm11124_vm5 = vcmp.ne.s16.totalorder %v8936_v58, 0 }
  0xbd   :  { %5681 = vmatpush1.bf16.msra.mxu0 %v8421_v26  ;;  %v966_v26 = vand.u32 15, %v798_v13  ;;  %v1546_v13 = vshll.u32 %v7298_v61, 16  ;;  %vm1944_vm3 = vmpackc.low %vm8965_vm1, %vm8965_vm1 }
  0xbe   :  { %5682 = vmatprep.subr.bf16.mxu0 %v8528_v4 }
  0xbf   :  { %vm8908_vm7 = vcmp.ge.s32.totalorder %v966_v26, 1  ;;  %v2068_v26 = vshll.u32 %v7310_v51, 16 }
  0xc0   :  { %vm1399_vm12 = vmpackc.low %vm8908_vm7, %vm8908_vm7 }
  0xc1   :  { %5683 = vmatpush1.bf16.msra.mxu0 %v8422_v28  ;;  %v1510_v28 = vshrl.u32 %v7293_v1, 16  ;;  %v1427_v1 = vsel %vm1395_vm13, 65537, %v8904_v39  ;;  %v1431_v59 = vsel %vm1399_vm12, 65537, %v8904_v39 }
  0xc2   :  { %5684 = vmatprep.subr.bf16.mxu0 %v8528_v4  ;;  %v7300_v14 = vcombine.low %v1427_v1, %v8704_v47 }
  0xc3   :  { %v1512_v45 = vor.u32 %v1510_v28, %v1508_v27  ;;  %v800_v27 = vadd.s32 192, %v8685_v38 }
  0xc4   :  { %v1566_v42 = vshrl.u32 %v7300_v14, 16 }
  0xc5   :  { %5685 = vmatpush1.bf16.msra.mxu0 %v8423_v30  ;;  %v1514_v30 = vshll.u32 %v7294_v16, 16  ;;  %v980_v48 = vand.u32 15, %v800_v27 }
  0xc6   :  { %5686 = vmatprep.subr.bf16.mxu0 %v8528_v4 }
  0xc7   :  { %v1516_v46 = vrot.slane %v1514_v30, 1  ;;  %v1550_v30 = vshrl.u32 %v7298_v61, 16  ;;  %vm9005_vm7 = vcmp.ge.s32.totalorder %v980_v48, 1 }
  0xc9   :  { %5687 = vmatpush1.bf16.msra.mxu0 %v8424_v33  ;;  %v1526_v33 = vshrl.u32 %v7295_v7, 16  ;;  %v1520_v54 = vor.u32 %v1518_v31, %v1516_v46  ;;  %v2065_v7 = vshrl.u32 %v7310_v51, 16  ;;  %v8948_v9 = vsel %vm1489_vm8, %v1512_v45, %v1516_v46 }
  0xca   :  { %5688 = vmatprep.subr.bf16.mxu0 %v8528_v4  ;;  %11222 = vst [vmem:[#allocation15_spill] sm:$0xff] %v8948_v9  ;;  %v1558_v31 = vshrl.u32 %v7299_v57, 16  ;;  %vm1620_vm4 = vcmp.ne.s16.totalorder %v8948_v9, 0 }
  0xcb   :  { %v2067_v23 = vrot.slane %v2065_v7, 7 }
  0xcc   :  { %v1560_v52 = vor.u32 %v1558_v31, %v1556_v25 }
  0xcd   :  { %5689 = vmatpush1.bf16.msra.mxu0 %v8425_v34  ;;  %v889_v34 = vand.u32 15, %v787_v20  ;;  %v8963_v20 = vcombine.low %v1431_v59, %v8704_v47  ;;  %v2070_v46 = vor.u32 %v2068_v26, %v2067_v23 }
  0xce   :  { %5690 = vmatprep.subr.bf16.mxu0 %v8528_v4 }
  0xcf   :  { %vm8925_vm14 = vcmp.le.s32.totalorder %v889_v34, 14  ;;  %v2076_v34 = vshll.u32 %v7311_v3, 16 }
  0xd0   :  { %vm1940_vm15 = vmpackc.low %vm8925_vm14, %vm8925_vm14 }
  0xd1   :  { %5691 = vmatpush1.bf16.msra.mxu0 %v8426_v35  ;;  %v1524_v35 = vrot.slane %v1522_v21, 1  ;;  %v1972_v16 = vsel %vm1940_vm15, 65537, %v8904_v39  ;;  %v2073_v21 = vshrl.u32 %v7311_v3, 16  ;;  %vm1401_vm14 = vmpackc.low %vm9005_vm7, %vm9005_vm7 }
  0xd2   :  { %5692 = vmatprep.subr.bf16.mxu0 %v8528_v4  ;;  %v7312_v28 = vcombine.low %v8704_v47, %v1972_v16 }
  0xd3   :  { %v1528_v55 = vor.u32 %v1526_v33, %v1524_v35  ;;  %v8951_v10 = vsel %vm1489_vm8, %v1520_v54, %v1524_v35  ;;  %v1562_v33 = vshll.u32 %v7300_v14, 16  ;;  %v1572_v35 = vrot.slane %v1570_v19, 1 }
  0xd4   :  { %11223 = vst [vmem:[#allocation16_spill] sm:$0xff] %v8951_v10  ;;  %v8976_v40 = vrot.slane %v2073_v21, 7  ;;  %v2081_v49 = vshrl.u32 %v7312_v28, 16  ;;  %v1976_v54 = vsel %vm1944_vm3, 65537, %v8904_v39  ;;  %vm11167_vm15 = vcmp.ne.s16.totalorder %v8951_v10, 0 }
  0xd5   :  { %5693 = vmatpush1.bf16.msra.mxu0 %v8427_v36  ;;  %v1530_v36 = vshll.u32 %v8872_v22, 16  ;;  %v1564_v53 = vrot.slane %v1562_v33, 1  ;;  %v9012_v8 = vcombine.low %v8704_v47, %v1976_v54 }
  0xd6   :  { %5694 = vmatprep.subr.bf16.mxu0 %v8528_v4  ;;  %v2078_v57 = vor.u32 %v2076_v34, %v8976_v40  ;;  %v9009_v7 = vrot.slane %v2081_v49, 7  ;;  %v9070_v49 = vadd.s32 168, %v8685_v38 }
  0xd7   :  { %v1532_v56 = vrot.slane %v1530_v36, 1  ;;  %v1574_v36 = vshrl.u32 %v7301_v2, 16  ;;  %v1568_v62 = vor.u32 %v1566_v42, %v1564_v53  ;;  %v795_v2 = vadd.s32 152, %v8685_v38 }
  0xd8   :  { %v9019_v16 = vsel %vm1489_vm8, %v1560_v52, %v1564_v53  ;;  %v9030_v24 = vsel %vm1651_vm11, %v2067_v23, %v2078_v57 }
  0xd9   :  { %5695 = vmatpush1.bf16.msra.mxu0 %v8428_v37  ;;  %v8954_v11 = vsel %vm1489_vm8, %v1528_v55, %v1532_v56  ;;  %v1536_v22 = vor.u32 %v1534_v6, %v1532_v56  ;;  %v1578_v37 = vshll.u32 %v8963_v20, 16  ;;  %v1576_v55 = vor.u32 %v1574_v36, %v1572_v35  ;;  %11232 = vst [vmem:[#allocation17_spill] sm:$0xff] %v9030_v24 }
  0xda   :  { %5696 = vmatprep.subr.bf16.mxu0 %v8528_v4  ;;  %v7297_v4 = vcombine.low %v1421_v17, %v8704_v47  ;;  %v9023_v17 = vsel %vm1651_vm11, %v8784_v29, %v2070_v46  ;;  %v9038_v29 = vsel %vm1489_vm8, %v1568_v62, %v1572_v35  ;;  %v945_v23 = vand.u32 15, %v795_v2 }
  0xdb   :  { %v8993_v56 = vrot.slane %v1578_v37, 1  ;;  %vm1622_vm12 = vcmp.ne.s16.totalorder %v8954_v11, 0  ;;  %v2100_v35 = vshll.u32 %v9012_v8, 16  ;;  %v1433_v37 = vsel %vm1401_vm14, 65537, %v8904_v39 }
  0xdc   :  { %v1542_v0 = vshrl.u32 %v7297_v4, 16  ;;  %v802_v46 = vadd.s32 208, %v8685_v38  ;;  %vm9065_vm0 = vcmp.le.s32.totalorder %v945_v23, 14 }
  0xdd   :  { %5697 = vmatpush1.bf16.msra.mxu0 %v8803_v41  ;;  %v1538_v41 = vshll.u32 %v7297_v4, 16  ;;  %v793_v4 = vadd.s32 136, %v8685_v38  ;;  %v9042_v26 = vsel %vm1489_vm8, %v1576_v55, %v8993_v56  ;;  %vm1948_vm1 = vmpackc.low %vm9065_vm0, %vm9065_vm0 }
  0xde   :  { %11233 = vst [vmem:[#allocation18_spill] sm:$0xff] %v9042_v26 }
  0xdf   :  { %v1540_v60 = vrot.slane %v1538_v41, 1  ;;  %v1548_v41 = vrot.slane %v1546_v13, 1  ;;  %v931_v44 = vand.u32 15, %v793_v4 }
  0xe1   :  { %v1544_v18 = vor.u32 %v1542_v0, %v1540_v60  ;;  %v8983_v45 = vsel %vm1489_vm8, %v1536_v22, %v1540_v60  ;;  %v1552_v51 = vor.u32 %v1550_v30, %v1548_v41  ;;  %v8997_v60 = vcombine.low %v8704_v47, %v1974_v43 }
  0xe2   :  { %v2084_v0 = vshll.u32 %v7312_v28, 16  ;;  %vm8999_vm6 = vcmp.le.s32.totalorder %v931_v44, 14  ;;  %v2097_v30 = vshrl.u32 %v9012_v8, 16  ;;  %vm1623_vm3 = vcmp.ne.s16.totalorder %v8983_v45, 0 }
  0xe3   :  { %v9016_v14 = vsel %vm1489_vm8, %v1544_v18, %v1548_v41  ;;  %v9027_v22 = vsel %vm1489_vm8, %v1552_v51, %v1556_v25  ;;  %v2089_v4 = vshrl.u32 %v8997_v60, 16  ;;  %vm1946_vm13 = vmpackc.low %vm8999_vm6, %vm8999_vm6  ;;  %v2092_v34 = vshll.u32 %v8997_v60, 16 }
  0xe4   :  { %v2086_v28 = vor.u32 %v2084_v0, %v9009_v7  ;;  %v1978_v42 = vsel %vm1946_vm13, 65537, %v8904_v39  ;;  %v9081_v55 = vrot.slane %v2097_v30, 7  ;;  %v9087_v0 = vcombine.low %v1433_v37, %v8704_v47 }
  0xe5   :  { %v9056_v41 = vrot.slane %v2089_v4, 7  ;;  %vm11181_vm2 = vcmp.ne.s16.totalorder %v9016_v14, 0  ;;  %vm11132_vm13 = vcmp.ne.s16.totalorder %v9019_v16, 0  ;;  %vm11169_vm14 = vcmp.ne.s16.totalorder %v9027_v22, 0 }
  0xe6   :  { %v9079_v54 = vsel %vm1651_vm11, %v8976_v40, %v2086_v28  ;;  %v804_v28 = vadd.s32 224, %v8685_v38 }
  0xe7   :  { %v2094_v40 = vor.u32 %v2092_v34, %v9056_v41  ;;  %v1980_v34 = vsel %vm1948_vm1, 65537, %v8904_v39 }
  0xf3   :  { %v7798_v61 = vpop.f32.mrb[0].mxu0 }
  0xf4   :  { %v433_v3 = vadd.f32 %v7798_v61, %v8988_v50  ;;  %v424_v6 = vpop.f32.mrb[1].mxu0 }
  0xf5   :  { %v425_v12 = vadd.f32 %v8988_v50, %v424_v6  ;;  %v7799_v13 = vpop.f32.mrb[2].mxu0  ;;  %v9092_v6 = vcombine.low %v8704_v47, %v1978_v42 }
  0xf6   :  { %v436_v19 = vadd.f32 %v7799_v13, %v8988_v50  ;;  %v427_v21 = vpop.f32.mrb[3].mxu0  ;;  %v681_v25 = vmax.f32 %v433_v3, 0.0  ;;  %v994_v13 = vand.u32 15, %v802_v46  ;;  %v1586_v46 = vshll.u32 %v9087_v0, 16 }
  0xf7   :  { %v428_v18 = vadd.f32 %v8988_v50, %v427_v21  ;;  %v679_v31 = vmax.f32 %v425_v12, 0.0 }
  0xf8   :  { %v682_v27 = vmax.f32 %v436_v19, 0.0  ;;  %vm9125_vm6 = vcmp.ge.s32.totalorder %v994_v13, 1 }
  0xf9   :  { %v680_v33 = vmax.f32 %v428_v18, 0.0  ;;  %vm1403_vm7 = vmpackc.low %vm9125_vm6, %vm9125_vm6  ;;  %vm11125_vm6 = vcmp.ne.s16.totalorder %v9042_v26, 0 }
  0xfa   :  { %v9052_v36 = vpack.c.bf16 %v682_v27, %v681_v25 }
  0xfb   :  { %v743_v43 = vpack.c.bf16 %v680_v33, %v679_v31  ;;  %v7802_v44 = vpop.f32.mrb[4].mxu0  ;;  %v2102_v33 = vor.u32 %v2100_v35, %v9081_v55 }
  0xfc   :  { %1261 = vst [vmem:[#allocation2 + $0x18] sm:$0xff] %v9052_v36  ;;  %v449_v51 = vadd.f32 %v7802_v44, %v8988_v50  ;;  %v440_v52 = vpop.f32.mrb[5].mxu0  ;;  %v1637_v53 = vsel %vm1620_vm4, %v9052_v36, 0  ;;  %v1582_v44 = vshrl.u32 %v8963_v20, 16 }
  0xfd   :  { %1260 = vst [vmem:[#allocation2 + $0x10] sm:$0xff] %v743_v43  ;;  %v441_v57 = vadd.f32 %v8988_v50, %v440_v52  ;;  %v7803_v60 = vpop.f32.mrb[6].mxu0  ;;  %5417 = vmatprep.mubr.bf16.mxu0 %v743_v43  ;;  %v1636_v61 = vsel %vm11124_vm5, %v743_v43, 0  ;;  %v1673_v62 = vshrl.u32 %v1637_v53, 16  ;;  %v1676_v12 = vshll.u32 %v1637_v53, 16 }
  0xfe   :  { %v452_v1 = vadd.f32 %v7803_v60, %v8988_v50  ;;  %v443_v2 = vpop.f32.mrb[7].mxu0  ;;  %v1665_v3 = vshrl.u32 %v1636_v61, 16  ;;  %v685_v19 = vmax.f32 %v449_v51, 0.0  ;;  %v1668_v18 = vshll.u32 %v1636_v61, 16 }
  0xff   :  { %v444_v59 = vadd.f32 %v8988_v50, %v443_v2  ;;  %v9095_v8 = vrot.slane %v1673_v62, 7  ;;  %v683_v23 = vmax.f32 %v441_v57, 0.0  ;;  %v9120_v53 = vsel %vm1651_vm11, %v9009_v7, %v2094_v40 }
 0x100   :  { %v686_v21 = vmax.f32 %v452_v1, 0.0  ;;  %v1667_v4 = vrot.slane %v1665_v3, 7  ;;  %11236 = vst [vmem:[#allocation19_spill] sm:$0xff] %v9120_v53  ;;  %v1008_v2 = vand.u32 15, %v804_v28  ;;  %v2105_v3 = vshrl.u32 %v9092_v6, 16 }
 0x101   :  { %v684_v25 = vmax.f32 %v444_v59, 0.0  ;;  %v1678_v27 = vor.u32 %v1676_v12, %v9095_v8  ;;  %v9137_v13 = vsel %vm1651_vm11, %v9056_v41, %v2102_v33 }
 0x102   :  { %v9103_v30 = vpack.c.bf16 %v686_v21, %v685_v19  ;;  %v1670_v31 = vor.u32 %v1668_v18, %v1667_v4  ;;  %v9150_v33 = vrot.slane %v2105_v3, 7  ;;  %vm9158_vm0 = vcmp.ge.s32.totalorder %v1008_v2, 1 }
 0x103   :  { %v745_v37 = vpack.c.bf16 %v684_v25, %v683_v23  ;;  %v7806_v42 = vpop.f32.mrb[8].mxu0  ;;  %v1679_v43 = vsel %vm1651_vm11, %v1667_v4, %v1678_v27  ;;  %v1584_v27 = vor.u32 %v1582_v44, %v8993_v56  ;;  %vm1405_vm1 = vmpackc.low %vm9158_vm0, %vm9158_vm0 }
 0x104   :  { %1263 = vst [vmem:[#allocation2 + $0x28] sm:$0xff] %v9103_v30  ;;  %v465_v48 = vadd.f32 %v7806_v42, %v8988_v50  ;;  %v456_v51 = vpop.f32.mrb[9].mxu0  ;;  %v1671_v52 = vsel %vm1651_vm11, %v8764_v15, %v1670_v31  ;;  %v1639_v35 = vsel %vm1622_vm12, %v9103_v30, 0  ;;  %v9148_v31 = vrot.slane %v1586_v46, 1 }
 0x105   :  { %1262 = vst [vmem:[#allocation2 + $0x20] sm:$0xff] %v745_v37  ;;  %v457_v20 = vadd.f32 %v8988_v50, %v456_v51  ;;  %v7807_v57 = vpop.f32.mrb[10].mxu0  ;;  %5418 = vmatmul.mubr.bf16.gmra.mrb[68].mxu0 %v1671_v52  ;;  %v1638_v60 = vsel %vm11167_vm15, %v745_v37, 0  ;;  %v1689_v61 = vshrl.u32 %v1639_v35, 16  ;;  %v1692_v12 = vshll.u32 %v1639_v35, 16 }
 0x106   :  { %v468_v15 = vadd.f32 %v7807_v57, %v8988_v50  ;;  %v459_v1 = vpop.f32.mrb[11].mxu0  ;;  %5425 = vmatprep.mubr.bf16.mxu0 %v9052_v36  ;;  %v1681_v7 = vshrl.u32 %v1638_v60, 16  ;;  %v689_v19 = vmax.f32 %v465_v48, 0.0  ;;  %v1684_v18 = vshll.u32 %v1638_v60, 16 }
 0x107   :  { %v460_v40 = vadd.f32 %v8988_v50, %v459_v1  ;;  %v9133_v59 = vrot.slane %v1689_v61, 7  ;;  %v687_v36 = vmax.f32 %v457_v20, 0.0  ;;  %v1435_v52 = vsel %vm1403_vm7, 65537, %v8904_v39 }
 0x108   :  { %v690_v21 = vmax.f32 %v468_v15, 0.0  ;;  %v1683_v4 = vrot.slane %v1681_v7, 7  ;;  %v2108_v57 = vshll.u32 %v9092_v6, 16  ;;  %v9176_v1 = vcombine.low %v8704_v47, %v1980_v34 }
 0x109   :  { %v688_v23 = vmax.f32 %v460_v40, 0.0  ;;  %v1694_v25 = vor.u32 %v1692_v12, %v9133_v59  ;;  %v9181_v6 = vsel %vm1489_vm8, %v1584_v27, %v9148_v31  ;;  %v9184_v3 = vcombine.low %v1435_v52, %v8704_v47 }
 0x10a   :  { %v9145_v28 = vpack.c.bf16 %v690_v21, %v689_v19  ;;  %v1686_v41 = vor.u32 %v1684_v18, %v1683_v4  ;;  %11241 = vst [vmem:[#allocation20_spill] sm:$0xff] %v9181_v6  ;;  %v959_v12 = vand.u32 15, %v9070_v49  ;;  %vm11126_vm7 = vcmp.ne.s16.totalorder %v9038_v29, 0 }
 0x10b   :  { %v9152_v42 = vpack.c.bf16 %v688_v23, %v687_v36  ;;  %v7810_v48 = vpop.f32.mrb[12].mxu0  ;;  %v9155_v51 = vsel %vm1651_vm11, %v1683_v4, %v1694_v25  ;;  %v1437_v25 = vsel %vm1405_vm1, 65537, %v8904_v39  ;;  %vm11131_vm1 = vcmp.ne.s16.totalorder %v9181_v6, 0 }
 0x10c   :  { %1265 = vst [vmem:[#allocation2 + $0x38] sm:$0xff] %v9145_v28  ;;  %v481_v56 = vadd.f32 %v7810_v48, %v8988_v50  ;;  %v472_v44 = vpop.f32.mrb[13].mxu0  ;;  %v1687_v46 = vsel %vm1651_vm11, %v9095_v8, %v1686_v41  ;;  %v1641_v20 = vsel %vm11181_vm2, %v9145_v28, 0  ;;  %v2110_v48 = vor.u32 %v2108_v57, %v9150_v33 }
 0x10d   :  { %1264 = vst [vmem:[#allocation2 + $0x30] sm:$0xff] %v9152_v42  ;;  %v473_v60 = vadd.f32 %v8988_v50, %v472_v44  ;;  %v7811_v61 = vpop.f32.mrb[14].mxu0  ;;  %5426 = vmatmul.mubr.bf16.gmra.mrb[72].mxu0 %v1679_v43  ;;  %v1640_v62 = vsel %vm1623_vm3, %v9152_v42, 0  ;;  %v1705_v15 = vshrl.u32 %v1641_v20, 16  ;;  %v1708_v40 = vshll.u32 %v1641_v20, 16 }
 0x10e   :  { %v484_v8 = vadd.f32 %v7811_v61, %v8988_v50  ;;  %v475_v7 = vpop.f32.mrb[15].mxu0  ;;  %5433 = vmatprep.mubr.bf16.mxu0 %v745_v37  ;;  %v1697_v2 = vshrl.u32 %v1640_v62, 16  ;;  %v693_v37 = vmax.f32 %v481_v56, 0.0  ;;  %v1700_v4 = vshll.u32 %v1640_v62, 16 }
 0x10f   :  { %v476_v43 = vadd.f32 %v8988_v50, %v475_v7  ;;  %v9190_v34 = vrot.slane %v1705_v15, 7  ;;  %v691_v18 = vmax.f32 %v473_v60, 0.0  ;;  %v1594_v44 = vshll.u32 %v9184_v3, 16 }
 0x110   :  { %v694_v19 = vmax.f32 %v484_v8, 0.0  ;;  %v1699_v21 = vrot.slane %v1697_v2, 7  ;;  %v806_v20 = vadd.s32 240, %v8685_v38  ;;  %v9218_v15 = vcombine.low %v1437_v25, %v8704_v47 }
 0x111   :  { %v692_v36 = vmax.f32 %v476_v43, 0.0  ;;  %v1710_v23 = vor.u32 %v1708_v40, %v9190_v34  ;;  %vm9229_vm0 = vcmp.le.s32.totalorder %v959_v12, 14  ;;  %v9239_v12 = vsel %vm1651_vm11, %v9081_v55, %v2110_v48 }
 0x112   :  { %v9196_v27 = vpack.c.bf16 %v694_v19, %v693_v37  ;;  %v1702_v41 = vor.u32 %v1700_v4, %v1699_v21 }
 0x113   :  { %v9201_v52 = vpack.c.bf16 %v692_v36, %v691_v18  ;;  %v7814_v35 = vpop.f32.mrb[16].mxu0  ;;  %v9204_v56 = vsel %vm1651_vm11, %v1699_v21, %v1710_v23  ;;  %v1022_v23 = vand.u32 15, %v806_v20  ;;  %v799_v20 = vadd.s32 184, %v8685_v38 }
 0x114   :  { %1267 = vst [vmem:[#allocation2 + $0x48] sm:$0xff] %v9196_v27  ;;  %v497_v60 = vadd.f32 %v7814_v35, %v8988_v50  ;;  %v488_v61 = vpop.f32.mrb[17].mxu0  ;;  %v9212_v57 = vsel %vm1651_vm11, %v9133_v59, %v1702_v41  ;;  %v1643_v62 = vsel %vm11132_vm13, %v9196_v27, 0 }
 0x115   :  { %1266 = vst [vmem:[#allocation2 + $0x40] sm:$0xff] %v9201_v52  ;;  %v489_v8 = vadd.f32 %v8988_v50, %v488_v61  ;;  %v7815_v7 = vpop.f32.mrb[18].mxu0  ;;  %5434 = vmatmul.mubr.bf16.gmra.mrb[76].mxu0 %v1687_v46  ;;  %v1642_v2 = vsel %vm11169_vm14, %v9201_v52, 0  ;;  %v1721_v43 = vshrl.u32 %v1643_v62, 16  ;;  %v1724_v36 = vshll.u32 %v1643_v62, 16 }
 0x116   :  { %v500_v40 = vadd.f32 %v7815_v7, %v8988_v50  ;;  %v491_v37 = vpop.f32.mrb[19].mxu0  ;;  %5441 = vmatprep.mubr.bf16.mxu0 %v9103_v30  ;;  %v1713_v19 = vshrl.u32 %v1642_v2, 16  ;;  %v697_v25 = vmax.f32 %v497_v60, 0.0  ;;  %v1716_v61 = vshll.u32 %v1642_v2, 16 }
 0x117   :  { %v492_v46 = vadd.f32 %v8988_v50, %v491_v37  ;;  %v9234_v18 = vrot.slane %v1721_v43, 7  ;;  %v695_v7 = vmax.f32 %v489_v8, 0.0  ;;  %v9244_v43 = vrot.slane %v1594_v44, 1 }
 0x118   :  { %v698_v41 = vmax.f32 %v500_v40, 0.0  ;;  %v1715_v35 = vrot.slane %v1713_v19, 7  ;;  %v1598_v2 = vshrl.u32 %v9184_v3, 16  ;;  %vm9263_vm5 = vcmp.ge.s32.totalorder %v1022_v23, 1 }
 0x119   :  { %v696_v59 = vmax.f32 %v492_v46, 0.0  ;;  %v1726_v30 = vor.u32 %v1724_v36, %v9234_v18  ;;  %v801_v46 = vadd.s32 200, %v8685_v38 }
 0x11a   :  { %v9241_v49 = vpack.c.bf16 %v698_v41, %v697_v25  ;;  %v1718_v21 = vor.u32 %v1716_v61, %v1715_v35  ;;  %v973_v41 = vand.u32 15, %v799_v20 }
 0x11b   :  { %v9247_v60 = vpack.c.bf16 %v696_v59, %v695_v7  ;;  %v7818_v62 = vpop.f32.mrb[20].mxu0  ;;  %v9250_v8 = vsel %vm1651_vm11, %v1715_v35, %v1726_v30  ;;  %v803_v35 = vadd.s32 216, %v8685_v38  ;;  %v805_v30 = vadd.s32 232, %v8685_v38 }
 0x11c   :  { %1269 = vst [vmem:[#allocation2 + $0x58] sm:$0xff] %v9241_v49  ;;  %v513_v48 = vadd.f32 %v7818_v62, %v8988_v50  ;;  %v504_v40 = vpop.f32.mrb[21].mxu0  ;;  %v9258_v44 = vsel %vm1651_vm11, %v9190_v34, %v1718_v21  ;;  %v1645_v59 = vsel %vm11125_vm6, %v9241_v49, 0  ;;  %vm1950_vm6 = vmpackc.low %vm9229_vm0, %vm9229_vm0  ;;  %vm9296_vm0 = vcmp.le.s32.totalorder %v973_v41, 14 }
 0x11d   :  { %1268 = vst [vmem:[#allocation2 + $0x50] sm:$0xff] %v9247_v60  ;;  %v505_v3 = vadd.f32 %v8988_v50, %v504_v40  ;;  %v7819_v19 = vpop.f32.mrb[22].mxu0  ;;  %5442 = vmatmul.mubr.bf16.gmra.mrb[80].mxu0 %v9155_v51  ;;  %v1644_v34 = vsel %vm11126_vm7, %v9247_v60, 0  ;;  %v1737_v21 = vshrl.u32 %v1645_v59, 16  ;;  %v1740_v51 = vshll.u32 %v1645_v59, 16  ;;  %vm1407_vm7 = vmpackc.low %vm9263_vm5, %vm9263_vm5 }
 0x11e   :  { %v516_v36 = vadd.f32 %v7819_v19, %v8988_v50  ;;  %v507_v23 = vpop.f32.mrb[23].mxu0  ;;  %5449 = vmatprep.mubr.bf16.mxu0 %v9152_v42  ;;  %v1729_v25 = vshrl.u32 %v1644_v34, 16  ;;  %v701_v62 = vmax.f32 %v513_v48, 0.0  ;;  %v1732_v55 = vshll.u32 %v1644_v34, 16  ;;  %vm1952_vm5 = vmpackc.low %vm9296_vm0, %vm9296_vm0 }
 0x11f   :  { %v508_v61 = vadd.f32 %v8988_v50, %v507_v23  ;;  %v9278_v7 = vrot.slane %v1737_v21, 7  ;;  %v699_v42 = vmax.f32 %v505_v3, 0.0  ;;  %v987_v21 = vand.u32 15, %v801_v46 }
 0x120   :  { %v702_v40 = vmax.f32 %v516_v36, 0.0  ;;  %v1731_v19 = vrot.slane %v1729_v25, 7  ;;  %v1982_v23 = vsel %vm1950_vm6, 65537, %v8904_v39  ;;  %v1001_v58 = vand.u32 15, %v803_v35 }
 0x121   :  { %v700_v32 = vmax.f32 %v508_v61, 0.0  ;;  %v1742_v20 = vor.u32 %v1740_v51, %v9278_v7  ;;  %v1015_v36 = vand.u32 15, %v805_v30  ;;  %v1439_v41 = vsel %vm1407_vm7, 65537, %v8904_v39 }
 0x122   :  { %v9288_v59 = vpack.c.bf16 %v702_v40, %v701_v62  ;;  %v1734_v4 = vor.u32 %v1732_v55, %v1731_v19  ;;  %vm9322_vm6 = vcmp.le.s32.totalorder %v987_v21, 14  ;;  %v9329_v40 = vcombine.low %v8704_v47, %v1982_v23 }
 0x123   :  { %v9291_v26 = vpack.c.bf16 %v700_v32, %v699_v42  ;;  %v7822_v48 = vpop.f32.mrb[24].mxu0  ;;  %v9294_v34 = vsel %vm1651_vm11, %v1731_v19, %v1742_v20  ;;  %v11248_v32 = vshrl.u32 %v9087_v0, 16  ;;  %v1600_v0 = vor.u32 %v1598_v2, %v9244_v43  ;;  %vm1954_vm0 = vmpackc.low %vm9322_vm6, %vm9322_vm6 }
 0x124   :  { %1271 = vst [vmem:[#allocation2 + $0x68] sm:$0xff] %v9288_v59  ;;  %v529_v46 = vadd.f32 %v7822_v48, %v8988_v50  ;;  %v520_v25 = vpop.f32.mrb[25].mxu0  ;;  %v9304_v55 = vsel %vm1651_vm11, %v9234_v18, %v1734_v4  ;;  %vm9334_vm7 = vcmp.le.s32.totalorder %v1001_v58, 14  ;;  %v11253_v19 = vshll.u32 %v9218_v15, 16 }
 0x125   :  { %v1592_v35 = vor.u32 %v11248_v32, %v9148_v31  ;;  %1270 = vst [vmem:[#allocation2 + $0x60] sm:$0xff] %v9291_v26  ;;  %v521_v61 = vadd.f32 %v8988_v50, %v520_v25  ;;  %v7823_v51 = vpop.f32.mrb[26].mxu0  ;;  %5450 = vmatmul.mubr.bf16.gmra.mrb[84].mxu0 %v9212_v57  ;;  %v1646_v18 = vsel %vm11131_vm1, %v9291_v26, 0  ;;  %v9342_v20 = vcombine.low %v1439_v41, %v8704_v47  ;;  %vm1956_vm13 = vmpackc.low %vm9334_vm7, %vm9334_vm7 }
 0x126   :  { %v532_v37 = vadd.f32 %v7823_v51, %v8988_v50  ;;  %v523_v30 = vpop.f32.mrb[27].mxu0  ;;  %5457 = vmatprep.mubr.bf16.mxu0 %v9145_v28  ;;  %v1745_v62 = vshrl.u32 %v1646_v18, 16  ;;  %v1604_v42 = vrot.slane %v11253_v19, 1  ;;  %vm9344_vm1 = vcmp.le.s32.totalorder %v1015_v36, 14 }
 0x127   :  { %v524_v2 = vadd.f32 %v8988_v50, %v523_v30  ;;  %v705_v21 = vmax.f32 %v529_v46, 0.0  ;;  %v1748_v58 = vshll.u32 %v1646_v18, 16  ;;  %v703_v48 = vmax.f32 %v521_v61, 0.0  ;;  %vm1958_vm6 = vmpackc.low %vm9344_vm1, %vm9344_vm1 }
 0x128   :  { %v706_v4 = vmax.f32 %v532_v37, 0.0  ;;  %v9348_v23 = vrot.slane %v1745_v62, 7  ;;  %v1984_v25 = vsel %vm1952_vm5, 65537, %v8904_v39  ;;  %v807_v36 = vadd.s32 248, %v8685_v38 }
 0x129   :  { %v704_v3 = vmax.f32 %v524_v2, 0.0  ;;  %v11256_v41 = vshrl.u32 %v9176_v1, 16  ;;  %v2121_v18 = vshrl.u32 %v9329_v40, 16  ;;  %v1606_v37 = vshrl.u32 %v9218_v15, 16 }
 0x12a   :  { %v756_v32 = vpack.c.bf16 %v706_v4, %v705_v21  ;;  %v1750_v46 = vor.u32 %v1748_v58, %v9348_v23  ;;  %v1610_v30 = vshll.u32 %v9342_v20, 16  ;;  %v1986_v62 = vsel %vm1954_vm0, 65537, %v8904_v39 }
 0x12b   :  { %v9361_v51 = vrot.slane %v11256_v41, 7  ;;  %v9364_v31 = vpack.c.bf16 %v704_v3, %v703_v48  ;;  %v7826_v61 = vpop.f32.mrb[28].mxu0  ;;  %v9378_v4 = vcombine.low %v8704_v47, %v1984_v25  ;;  %v1988_v15 = vsel %vm1956_vm13, 65537, %v8904_v39 }
 0x12c   :  { %1273 = vst [vmem:[#allocation2 + $0x78] sm:$0xff] %v756_v32  ;;  %v545_v2 = vadd.f32 %v7826_v61, %v8988_v50  ;;  %v536_v19 = vpop.f32.mrb[29].mxu0  ;;  %v9375_v21 = vsel %vm1651_vm11, %v9278_v7, %v1750_v46  ;;  %v9391_v7 = vsel %vm1489_vm8, %v1592_v35, %v9244_v43  ;;  %v9394_v3 = vsel %vm1489_vm8, %v1600_v0, %v1604_v42 }
 0x12d   :  { %1272 = vst [vmem:[#allocation2 + $0x70] sm:$0xff] %v9364_v31  ;;  %v537_v58 = vadd.f32 %v8988_v50, %v536_v19  ;;  %v7827_v48 = vpop.f32.mrb[30].mxu0  ;;  %5458 = vmatmul.mubr.bf16.gmra.mrb[88].mxu0 %v9204_v56  ;;  %11257 = vst [vmem:[#allocation21_spill] sm:$0xff] %v9391_v7  ;;  %v1029_v25 = vand.u32 15, %v807_v36  ;;  %v2124_v46 = vshll.u32 %v9329_v40, 16  ;;  %v9400_v41 = vcombine.low %v8704_v47, %v1986_v62 }
 0x12e   :  { %11258 = vst [vmem:[#allocation22_spill] sm:$0xff] %v9394_v3  ;;  %v548_v32 = vadd.f32 %v7827_v48, %v8988_v50  ;;  %v539_v57 = vpop.f32.mrb[31].mxu0  ;;  %5465 = vmatprep.mubr.bf16.mxu0 %v9201_v52  ;;  %v1990_v56 = vsel %vm1958_vm6, 65537, %v8904_v39  ;;  %v1608_v35 = vor.u32 %v1606_v37, %v1604_v42  ;;  %v9409_v0 = vrot.slane %v2121_v18, 7  ;;  %v1309_v18 = vld [vmem:[#allocation2 + $0x68] sm:$0xff] }
 0x12f   :  { %v540_v43 = vadd.f32 %v8988_v50, %v539_v57  ;;  %v9412_v36 = vcombine.low %v8704_v47, %v1988_v15  ;;  %v709_v52 = vmax.f32 %v545_v2, 0.0  ;;  %v9414_v61 = vrot.slane %v1610_v30, 1 }
 0x130   :  { %v710_v40 = vmax.f32 %v548_v32, 0.0  ;;  %v2129_v62 = vshrl.u32 %v9378_v4, 16  ;;  %v707_v19 = vmax.f32 %v537_v58, 0.0  ;;  %v9418_v28 = vcombine.low %v8704_v47, %v1990_v56 }
 0x131   :  { %v708_v48 = vmax.f32 %v540_v43, 0.0  ;;  %vm9420_vm13 = vcmp.le.s32.totalorder %v1029_v25, 14  ;;  %vm1630_vm1 = vcmp.ne.s16.totalorder %v9391_v7, 0  ;;  %vm1631_vm5 = vcmp.ne.s16.totalorder %v9394_v3, 0 }
 0x132   :  { %v758_v42 = vpack.c.bf16 %v710_v40, %v709_v52  ;;  %v2137_v37 = vshrl.u32 %v9400_v41, 16  ;;  %v11261_v15 = vshll.u32 %v9176_v1, 16  ;;  %v2126_v32 = vor.u32 %v2124_v46, %v9409_v0  ;;  %vm1960_vm7 = vmpackc.low %vm9420_vm13, %vm9420_vm13 }
 0x133   :  { %v757_v30 = vpack.c.bf16 %v708_v48, %v707_v19  ;;  %v7830_v2 = vpop.f32.mrb[32].mxu0  ;;  %v2145_v25 = vshrl.u32 %v9412_v36, 16  ;;  %v9435_v43 = vsel %vm1489_vm8, %v1608_v35, %v9414_v61  ;;  %v9437_v52 = vrot.slane %v2129_v62, 7 }
 0x134   :  { %v2118_v58 = vor.u32 %v11261_v15, %v9361_v51  ;;  %1275 = vst [vmem:[#allocation2 + $0x88] sm:$0xff] %v758_v42  ;;  %v561_v57 = vadd.f32 %v7830_v2, %v8988_v50  ;;  %v552_v56 = vpop.f32.mrb[33].mxu0  ;;  %11262 = vst [vmem:[#allocation23_spill] sm:$0xff] %v9435_v43  ;;  %v2132_v40 = vshll.u32 %v9378_v4, 16  ;;  %v1647_v19 = vsel %vm1630_vm1, %v1309_v18, 0 }
 0x135   :  { %1274 = vst [vmem:[#allocation2 + $0x80] sm:$0xff] %v757_v30  ;;  %v553_v1 = vadd.f32 %v8988_v50, %v552_v56  ;;  %v7831_v46 = vpop.f32.mrb[34].mxu0  ;;  %5466 = vmatmul.mubr.bf16.gmra.mrb[92].mxu0 %v9258_v44  ;;  %v1648_v35 = vsel %vm1631_vm5, %v9364_v31, 0  ;;  %v2153_v62 = vshrl.u32 %v9418_v28, 16  ;;  %v9456_v42 = vsel %vm11143_vm9, %v8904_v39, 0 }
 0x136   :  { %v564_v4 = vadd.f32 %v7831_v46, %v8988_v50  ;;  %v555_v48 = vpop.f32.mrb[35].mxu0  ;;  %5473 = vmatprep.mubr.bf16.mxu0 %v9196_v27  ;;  %v2139_v44 = vrot.slane %v2137_v37, 7  ;;  %v2140_v30 = vshll.u32 %v9400_v41, 16  ;;  %v2147_v2 = vrot.slane %v2145_v25, 7 }
 0x137   :  { %v556_v18 = vadd.f32 %v8988_v50, %v555_v48  ;;  %v2148_v15 = vshll.u32 %v9412_v36, 16  ;;  %v1992_v27 = vsel %vm1960_vm7, 65537, %v8904_v39  ;;  %v713_v56 = vmax.f32 %v561_v57, 0.0 }
 0x138   :  { %v714_v46 = vmax.f32 %v564_v4, 0.0  ;;  %v1753_v5 = vshrl.u32 %v1647_v19, 16  ;;  %v1761_v3 = vshrl.u32 %v1648_v35, 16  ;;  %v711_v7 = vmax.f32 %v553_v1, 0.0 }
 0x139   :  { %v712_v37 = vmax.f32 %v556_v18, 0.0  ;;  %v9467_v6 = vrot.slane %v2153_v62, 7  ;;  %v2156_v41 = vshll.u32 %v9418_v28, 16  ;;  %v9472_v36 = vsel %vm1651_vm11, %v9150_v33, %v2118_v58 }
 0x13a   :  { %v760_v25 = vpack.c.bf16 %v714_v46, %v713_v56  ;;  %v9476_v38 = vsel %vm1651_vm11, %v9361_v51, %v2126_v32  ;;  %v9479_v39 = vcombine.low %v8704_v47, %v1992_v27  ;;  %v1614_v1 = vshrl.u32 %v9342_v20, 16 }
 0x13b   :  { %11263 = vst [vmem:[#allocation24_spill] sm:$0xff] %v9476_v38  ;;  %v759_v57 = vpack.c.bf16 %v712_v37, %v711_v7  ;;  %v7834_v4 = vpop.f32.mrb[36].mxu0  ;;  %v3261_v62 = vshrl.u32 %v9456_v42, 16  ;;  %v2134_v28 = vor.u32 %v2132_v40, %v9437_v52  ;;  %v1755_v58 = vrot.slane %v1753_v5, 7 }
 0x13c   :  { %1281 = vst [vmem:[#allocation2 + $0xb8] sm:$0xff] %v760_v25  ;;  %v577_v48 = vadd.f32 %v7834_v4, %v8988_v50  ;;  %v568_v33 = vpop.f32.mrb[37].mxu0  ;;  %v9485_v18 = vrot.slane %v1761_v3, 7  ;;  %vm1632_vm0 = vcmp.ne.s16.totalorder %v9435_v43, 0  ;;  %vm11157_vm6 = vcmp.ne.s16.totalorder %v9030_v24, 0 }
 0x13d   :  { %1280 = vst [vmem:[#allocation2 + $0xb0] sm:$0xff] %v759_v57  ;;  %v569_v51 = vadd.f32 %v8988_v50, %v568_v33  ;;  %v7835_v7 = vpop.f32.mrb[38].mxu0  ;;  %5474 = vmatmul.mubr.bf16.gmra.mrb[96].mxu0 %v9250_v8  ;;  %v2142_v20 = vor.u32 %v2140_v30, %v2139_v44  ;;  %v2150_v32 = vor.u32 %v2148_v15, %v2147_v2  ;;  %vm11159_vm13 = vcmp.ne.s16.totalorder %v9023_v17, 0  ;;  %v9497_v8 = vld [vmem:[#allocation2 + $0x78] sm:$0xff] }
 0x13e   :  { %v2158_v40 = vor.u32 %v2156_v41, %v9467_v6  ;;  %v580_v27 = vadd.f32 %v7835_v7, %v8988_v50  ;;  %v571_v56 = vpop.f32.mrb[39].mxu0  ;;  %5481 = vmatprep.mubr.bf16.mxu0 %v9247_v60  ;;  %v1756_v5 = vshll.u32 %v1647_v19, 16  ;;  %v1764_v3 = vshll.u32 %v1648_v35, 16  ;;  %v3222_v35 = vld [vmem:[#allocation2 + $0xa0] sm:$0x80] }
 0x13f   :  { %v2161_v46 = vshrl.u32 %v9479_v39, 16  ;;  %v572_v37 = vadd.f32 %v8988_v50, %v571_v56  ;;  %v9500_v30 = vor.u32 %v1614_v1, %v9414_v61  ;;  %v9502_v15 = vrot.slane %v3261_v62, 7 }
 0x140   :  { %v9506_v41 = vsel %vm1651_vm11, %v9409_v0, %v2134_v28  ;;  %v717_v60 = vmax.f32 %v577_v48, 0.0  ;;  %v718_v25 = vmax.f32 %v580_v27, 0.0  ;;  %v1758_v57 = vor.u32 %v1756_v5, %v1755_v58 }
 0x141   :  { %11264 = vst [vmem:[#allocation25_spill] sm:$0xff] %v9500_v30  ;;  %v1766_v19 = vor.u32 %v1764_v3, %v9485_v18  ;;  %v715_v4 = vmax.f32 %v569_v51, 0.0  ;;  %v716_v33 = vmax.f32 %v572_v37, 0.0  ;;  %v9511_v7 = vsel %vm1651_vm11, %v9437_v52, %v2142_v20 }
 0x142   :  { %v9514_v61 = vsel %vm1651_vm11, %v2139_v44, %v2150_v32  ;;  %v762_v1 = vpack.c.bf16 %v718_v25, %v717_v60  ;;  %v9519_v0 = vsel %vm1632_vm0, %v9497_v8, 0  ;;  %v9522_v62 = vsel %vm1651_vm11, %v2147_v2, %v2158_v40 }
 0x143   :  { %v9524_v28 = vrot.slane %v2161_v46, 7  ;;  %v761_v48 = vpack.c.bf16 %v716_v33, %v715_v4  ;;  %v7838_v51 = vpop.f32.mrb[40].mxu0  ;;  %vm11152_vm7 = vcmp.ne.s16.totalorder %v9120_v53, 0  ;;  %v9529_v52 = vsel %vm11149_vm10, %v3222_v35, 0  ;;  %v9591_v53 = vld [vmem:[#allocation2] sm:$0xff] }
 0x144   :  { %1283 = vst [vmem:[#allocation2 + $0xc8] sm:$0xff] %v762_v1  ;;  %v593_v32 = vadd.f32 %v7838_v51, %v8988_v50  ;;  %v584_v27 = vpop.f32.mrb[41].mxu0  ;;  %v3671_v2 = vsel %vm11167_vm15, %v762_v1, 0  ;;  %vm11155_vm9 = vcmp.ne.s16.totalorder %v9079_v54, 0  ;;  %v9539_v40 = vsel %vm1651_vm11, %v9348_v23, %v1758_v57 }
 0x145   :  { %v9542_v56 = vsel %vm1651_vm11, %v1755_v58, %v1766_v19  ;;  %1282 = vst [vmem:[#allocation2 + $0xc0] sm:$0xff] %v761_v48  ;;  %v585_v5 = vadd.f32 %v8988_v50, %v584_v27  ;;  %v7839_v3 = vpop.f32.mrb[42].mxu0  ;;  %5482 = vmatmul.mubr.bf16.gmra.mrb[100].mxu0 %v9304_v55  ;;  %v9548_v46 = vsel %vm1620_vm4, %v761_v48, 0  ;;  %v3713_v37 = vshrl.u32 %v3671_v2, 16 }
 0x146   :  { %11265 = vst [vmem:[#allocation26_spill] sm:$0xff] %v9548_v46  ;;  %v1769_v60 = vshrl.u32 %v9519_v0, 16  ;;  %v596_v25 = vadd.f32 %v7839_v3, %v8988_v50  ;;  %v587_v23 = vpop.f32.mrb[43].mxu0  ;;  %5489 = vmatprep.mubr.bf16.mxu0 %v9241_v49  ;;  %v3705_v58 = vshrl.u32 %v9548_v46, 16  ;;  %v3473_v57 = vsel %vm11157_vm6, %v762_v1, 0 }
 0x147   :  { %v588_v55 = vadd.f32 %v8988_v50, %v587_v23  ;;  %v9558_v35 = vrot.slane %v3713_v37, 7  ;;  %v3716_v4 = vshll.u32 %v3671_v2, 16  ;;  %v3472_v33 = vsel %vm11159_vm13, %v761_v48, 0 }
 0x148   :  { %v721_v51 = vmax.f32 %v593_v32, 0.0  ;;  %v722_v27 = vmax.f32 %v596_v25, 0.0  ;;  %v9562_v3 = vrot.slane %v3705_v58, 7  ;;  %v3510_v49 = vshll.u32 %v3472_v33, 16 }
 0x149   :  { %v719_v44 = vmax.f32 %v585_v5, 0.0  ;;  %v720_v20 = vmax.f32 %v588_v55, 0.0  ;;  %v3718_v46 = vor.u32 %v3716_v4, %v9558_v35  ;;  %v3518_v1 = vshll.u32 %v3473_v57, 16  ;;  %v8430_v4 = vld [vmem:[#allocation4 + $0x100] sm:$0xff]  }
 0x14a   :  { %11266 = vst [vmem:[#allocation27_spill] sm:$0xff] %v9562_v3  ;;  %v764_v63 = vpack.c.bf16 %v722_v27, %v721_v51  ;;  %v9565_v19 = vrot.slane %v3510_v49, 1  ;;  %v3514_v23 = vshrl.u32 %v3472_v33, 16  ;;  %v9567_v37 = vrot.slane %v1769_v60, 7 }
 0x14b   :  { %v763_v2 = vpack.c.bf16 %v720_v20, %v719_v44  ;;  %v7842_v24 = vpop.f32.mrb[44].mxu0  ;;  %v3719_v48 = vsel %vm1651_vm11, %v9562_v3, %v3718_v46  ;;  %v3520_v32 = vrot.slane %v3518_v1, 1  ;;  %v3522_v25 = vshrl.u32 %v3473_v57, 16 }
 0x14c   :  { %11267 = vst [vmem:[#allocation28_spill] sm:$0xff] %v9565_v19  ;;  %1285 = vst [vmem:[#allocation2 + $0xd8] sm:$0xff] %v764_v63  ;;  %v609_v5 = vadd.f32 %v7842_v24, %v8988_v50  ;;  %v600_v58 = vpop.f32.mrb[45].mxu0  ;;  %5850 = vmatprep.mubr.bf16.mxu1 %v3719_v48  ;;  %v3516_v55 = vor.u32 %v3514_v23, %v9565_v19  ;;  %v3673_v33 = vsel %vm1623_vm3, %v764_v63, 0  ;;  %v9577_v44 = vsel %vm11152_vm7, %v764_v63, 0 }
 0x14d   :  { %vm11156_vm10 = vcmp.ne.s16.totalorder %v9137_v13, 0  ;;  %1284 = vst [vmem:[#allocation2 + $0xd0] sm:$0xff] %v763_v2  ;;  %v601_v20 = vadd.f32 %v8988_v50, %v600_v58  ;;  %v7843_v46 = vpop.f32.mrb[46].mxu0  ;;  %5490 = vmatmul.mubr.bf16.gmra.mrb[104].mxu0 %v9294_v34  ;;  %v3672_v24 = vsel %vm1622_vm12, %v763_v2, 0  ;;  %v3474_v60 = vsel %vm11155_vm9, %v763_v2, 0  ;;  %v8431_v2 = vld [vmem:[#allocation4 + $0x108] sm:$0xff]  }
 0x14e   :  { %v3524_v57 = vor.u32 %v3522_v25, %v3520_v32  ;;  %v725_v51 = vmax.f32 %v609_v5, 0.0  ;;  %v612_v27 = vadd.f32 %v7843_v46, %v8988_v50  ;;  %v603_v63 = vpop.f32.mrb[47].mxu0  ;;  %v3521_v49 = vsel %vm1489_vm8, %v3516_v55, %v3520_v32  ;;  %5497 = vmatprep.mubr.bf16.mxu0 %v9291_v26 }
 0x14f   :  { %v3721_v1 = vshrl.u32 %v3672_v24, 16  ;;  %v723_v23 = vmax.f32 %v601_v20, 0.0  ;;  %v604_v48 = vadd.f32 %v8988_v50, %v603_v63  ;;  %5851 = vmatmul.mubr.bf16.vlgmr.msra.gmra.mrb[0].mxu1 %v3521_v49  ;;  %v3724_v34 = vshll.u32 %v3672_v24, 16 }
 0x150   :  { %v3526_v58 = vshll.u32 %v3474_v60, 16  ;;  %v726_v19 = vmax.f32 %v612_v27, 0.0  ;;  %5956 = vmatpush1.bf16.msra.mxu1 %v8430_v4  ;;  %v3729_v25 = vshrl.u32 %v3673_v33, 16  ;;  %v3732_v5 = vshll.u32 %v3673_v33, 16 }
 0x151   :  { %v3723_v3 = vrot.slane %v3721_v1, 7  ;;  %vm11158_vm7 = vcmp.ne.s16.totalorder %v9239_v12, 0  ;;  %v724_v46 = vmax.f32 %v604_v48, 0.0  ;;  %5957 = vmatprep.subr.bf16.mxu1 %v9591_v53  ;;  %v3530_v32 = vshrl.u32 %v3474_v60, 16  ;;  %v9602_v48 = vld [vmem:[%s11120_s2] ss:$0 sm:$0xff] }
 0x152   :  { %v3528_v26 = vrot.slane %v3526_v58, 1  ;;  %v3534_v50 = vshll.u32 %v9577_v44, 16  ;;  %v766_v55 = vpack.c.bf16 %v726_v19, %v725_v51  ;;  %v9595_v24 = vrot.slane %v3729_v25, 7 }
 0x153   :  { %v3726_v20 = vor.u32 %v3724_v34, %v3723_v3  ;;  %v3538_v4 = vshrl.u32 %v9577_v44, 16  ;;  %v765_v27 = vpack.c.bf16 %v724_v46, %v723_v23  ;;  %v7846_v63 = vpop.f32.mrb[48].mxu0  ;;  %v8432_v23 = vld [vmem:[#allocation4 + $0x110] sm:$0xff]   ;;  %vm11163_vm9 = vcmp.ne.s16.totalorder %v9472_v36, 0 }
 0x154   :  { %v3529_v33 = vsel %vm1489_vm8, %v3524_v57, %v3528_v26  ;;  %v3532_v49 = vor.u32 %v3530_v32, %v3528_v26  ;;  %v3536_v1 = vrot.slane %v3534_v50, 1  ;;  %1287 = vst [vmem:[#allocation2 + $0xe8] sm:$0xff] %v766_v55  ;;  %v625_v60 = vadd.f32 %v9602_v48, %v7846_v63  ;;  %v616_v19 = vpop.f32.mrb[49].mxu0  ;;  %5958 = vmatpush1.bf16.msra.mxu1 %v8431_v2 }
 0x155   :  { %v3727_v51 = vsel %vm1651_vm11, %v9558_v35, %v3726_v20  ;;  %v3734_v44 = vor.u32 %v3732_v5, %v9595_v24  ;;  %v3675_v57 = vsel %vm11169_vm14, %v766_v55, 0  ;;  %1286 = vst [vmem:[#allocation2 + $0xe0] sm:$0xff] %v765_v27  ;;  %v617_v34 = vadd.f32 %v9602_v48, %v616_v19  ;;  %v7847_v58 = vpop.f32.mrb[50].mxu0  ;;  %5498 = vmatmul.mubr.bf16.gmra.mrb[108].mxu0 %v9375_v21  ;;  %v8433_v19 = vld [vmem:[#allocation4 + $0x118] sm:$0xff]  }
 0x156   :  { %5858 = vmatprep.mubr.bf16.mxu1 %v3727_v51  ;;  %v9613_v25 = vsel %vm1489_vm8, %v3532_v49, %v3536_v1  ;;  %v3674_v35 = vsel %vm11181_vm2, %v765_v27, 0  ;;  %v3476_v2 = vsel %vm11156_vm10, %v765_v27, 0  ;;  %v729_v5 = vmax.f32 %v625_v60, 0.0  ;;  %v619_v26 = vpop.f32.mrb[51].mxu0  ;;  %5505 = vmatprep.mubr.bf16.mxu0 %v9288_v59 }
 0x157   :  { %v628_v46 = vadd.f32 %v9602_v48, %v7847_v58  ;;  %v3735_v32 = vsel %vm1651_vm11, %v3723_v3, %v3734_v44  ;;  %5959 = vmatprep.subr.bf16.mxu1 %v9591_v53  ;;  %v3737_v21 = vshrl.u32 %v3674_v35, 16  ;;  %v727_v50 = vmax.f32 %v617_v34, 0.0  ;;  %5859 = vmatmul.mubr.bf16.gmra.mrb[4].mxu1 %v3529_v33 }
 0x158   :  { %v620_v20 = vadd.f32 %v9602_v48, %v619_v26  ;;  %v3740_v63 = vshll.u32 %v3674_v35, 16  ;;  %v3540_v49 = vor.u32 %v3538_v4, %v3536_v1  ;;  %5866 = vmatprep.mubr.bf16.mxu1 %v3735_v32  ;;  %5960 = vmatpush1.bf16.msra.mxu1 %v8432_v23  ;;  %v3542_v51 = vshll.u32 %v3476_v2, 16 }
 0x159   :  { %v730_v27 = vmax.f32 %v628_v46, 0.0  ;;  %v3739_v60 = vrot.slane %v3737_v21, 7  ;;  %v3745_v59 = vshrl.u32 %v3675_v57, 16  ;;  %vm11160_vm10 = vcmp.ne.s16.totalorder %v9476_v38, 0  ;;  %5961 = vmatprep.subr.bf16.mxu1 %v9591_v53 }
 0x15a   :  { %v728_v3 = vmax.f32 %v620_v20, 0.0  ;;  %v3748_v44 = vshll.u32 %v3675_v57, 16  ;;  %v3477_v33 = vsel %vm11158_vm7, %v766_v55, 0  ;;  %v3546_v34 = vshrl.u32 %v3476_v2, 16 }
 0x15b   :  { %v768_v4 = vpack.c.bf16 %v730_v27, %v729_v5  ;;  %v3742_v1 = vor.u32 %v3740_v63, %v3739_v60  ;;  %v3544_v58 = vrot.slane %v3542_v51, 1  ;;  %v3747_v35 = vrot.slane %v3745_v59, 7  ;;  %v7850_v23 = vpop.f32.mrb[52].mxu0  ;;  %v8434_v63 = vld [vmem:[#allocation4 + $0x120] sm:$0xff]  }
 0x15c   :  { %v767_v46 = vpack.c.bf16 %v728_v3, %v727_v50  ;;  %v11268_v26 = vshll.u32 %v9519_v0, 16  ;;  %v3550_v21 = vshll.u32 %v3477_v33, 16  ;;  %vm1633_vm6 = vcmp.ne.s16.totalorder %v9500_v30, 0  ;;  %v632_v55 = vpop.f32.mrb[53].mxu0  ;;  %5962 = vmatpush1.bf16.msra.mxu1 %v8433_v19 }
 0x15d   :  { %v3554_v20 = vshrl.u32 %v3477_v33, 16  ;;  %1289 = vst [vmem:[#allocation2 + $0xf8] sm:$0xff] %v768_v4  ;;  %v641_v57 = vadd.f32 %v9602_v48, %v7850_v23  ;;  %v3743_v2 = vsel %vm1651_vm11, %v9595_v24, %v3742_v1  ;;  %v9639_v5 = vsel %vm1489_vm8, %v3540_v49, %v3544_v58  ;;  %v7851_v27 = vpop.f32.mrb[54].mxu0  ;;  %5506 = vmatmul.mubr.bf16.gmra.mrb[112].mxu0 %v9539_v40 }
 0x15e   :  { %v9632_v32 = vor.u32 %v11268_v26, %v9567_v37  ;;  %v3750_v50 = vor.u32 %v3748_v44, %v3747_v35  ;;  %1288 = vst [vmem:[#allocation2 + $0xf0] sm:$0xff] %v767_v46  ;;  %v633_v0 = vadd.f32 %v9602_v48, %v632_v55  ;;  %5963 = vmatprep.subr.bf16.mxu1 %v9591_v53  ;;  %v3552_v59 = vrot.slane %v3550_v21, 1  ;;  %v635_v49 = vpop.f32.mrb[55].mxu0  ;;  %v8435_v21 = vld [vmem:[#allocation4 + $0x128] sm:$0xff]   ;;  %v9657_v55 = vld [vmem:[#allocation2 + $0x80] sm:$0xff] }
 0x15f   :  { %v3548_v51 = vor.u32 %v3546_v34, %v3544_v58  ;;  %vm11269_vm7 = vcmp.ne.s16.totalorder %v9019_v16, 0  ;;  %v733_v24 = vmax.f32 %v641_v57, 0.0  ;;  %v644_v19 = vadd.f32 %v9602_v48, %v7851_v27  ;;  %5513 = vmatprep.mubr.bf16.mxu0 %v9364_v31  ;;  %5867 = vmatmul.mubr.bf16.gmra.mrb[8].mxu1 %v9613_v25 }
 0x160   :  { %v3676_v3 = vsel %vm11269_vm7, %v767_v46, 0  ;;  %v3751_v44 = vsel %vm1651_vm11, %v3739_v60, %v3750_v50  ;;  %v731_v1 = vmax.f32 %v633_v0, 0.0  ;;  %v636_v23 = vadd.f32 %v9602_v48, %v635_v49  ;;  %5874 = vmatprep.mubr.bf16.mxu1 %v3743_v2  ;;  %5964 = vmatpush1.bf16.msra.mxu1 %v8434_v63 }
 0x161   :  { %v3753_v33 = vshrl.u32 %v3676_v3, 16  ;;  %v9652_v40 = vsel %vm1489_vm8, %v3548_v51, %v3552_v59  ;;  %v3756_v34 = vshll.u32 %v3676_v3, 16  ;;  %v734_v58 = vmax.f32 %v644_v19, 0.0  ;;  %5965 = vmatprep.subr.bf16.mxu1 %v9591_v53 }
 0x162   :  { %v3478_v31 = vsel %vm11163_vm9, %v767_v46, 0  ;;  %v3556_v57 = vor.u32 %v3554_v20, %v3552_v59  ;;  %vm2179_vm7 = vcmp.ne.s16.totalorder %v9506_v41, 0  ;;  %v732_v60 = vmax.f32 %v636_v23, 0.0 }
 0x163   :  { %v3755_v26 = vrot.slane %v3753_v33, 7  ;;  %v3558_v25 = vshll.u32 %v3478_v31, 16  ;;  %vm11270_vm13 = vcmp.ne.s16.totalorder %v9038_v29, 0  ;;  %v3479_v2 = vsel %vm11160_vm10, %v768_v4, 0  ;;  %v7854_v51 = vpop.f32.mrb[56].mxu0 }
 0x164   :  { %v3677_v50 = vsel %vm11270_vm13, %v768_v4, 0  ;;  %v9664_v63 = vpack.c.bf16 %v734_v58, %v733_v24  ;;  %v769_v20 = vpack.c.bf16 %v732_v60, %v731_v1  ;;  %v3562_v3 = vshrl.u32 %v3478_v31, 16  ;;  %v648_v33 = vpop.f32.mrb[57].mxu0  ;;  %5966 = vmatpush1.bf16.msra.mxu1 %v8435_v21  ;;  %v8436_v24 = vld [vmem:[#allocation4 + $0x130] sm:$0xff]  }
 0x165   :  { %v3758_v0 = vor.u32 %v3756_v34, %v3755_v26  ;;  %v3761_v27 = vshrl.u32 %v3677_v50, 16  ;;  %v3764_v46 = vshll.u32 %v3677_v50, 16  ;;  %v3560_v59 = vrot.slane %v3558_v25, 1  ;;  %5514 = vmatmul.mubr.bf16.gmra.mrb[116].mxu0 %v9542_v56  ;;  %v7855_v58 = vpop.f32.mrb[58].mxu0  ;;  %5967 = vmatprep.subr.bf16.mxu1 %v9591_v53 }
 0x166   :  { %v3566_v19 = vshll.u32 %v3479_v2, 16  ;;  %1291 = vst [vmem:[#allocation2 + $0x108] sm:$0xff] %v9664_v63  ;;  %v657_v49 = vadd.f32 %v9602_v48, %v7854_v51  ;;  %v9674_v4 = vsel %vm1633_vm6, %v9657_v55, 0  ;;  %1290 = vst [vmem:[#allocation2 + $0x100] sm:$0xff] %v769_v20  ;;  %v649_v34 = vadd.f32 %v9602_v48, %v648_v33  ;;  %5521 = vmatprep.mubr.bf16.mxu0 %v9497_v8  ;;  %v651_v50 = vpop.f32.mrb[59].mxu0 }
 0x167   :  { %v9669_v23 = vsel %vm1651_vm11, %v3747_v35, %v3758_v0  ;;  %v3763_v1 = vrot.slane %v3761_v27, 7  ;;  %v9680_v31 = vsel %vm1489_vm8, %v3556_v57, %v3560_v59  ;;  %v3564_v35 = vor.u32 %v3562_v3, %v3560_v59  ;;  %v11271_v27 = vld [vmem:[#allocation18_spill] sm:$0xff]  ;;  %5875 = vmatmul.mubr.bf16.gmra.mrb[12].mxu1 %v9639_v5 }
 0x168   :  { %v3568_v21 = vrot.slane %v3566_v19, 1  ;;  %v737_v60 = vmax.f32 %v657_v49, 0.0  ;;  %v660_v25 = vadd.f32 %v9602_v48, %v7855_v58  ;;  %vm11272_vm13 = vcmp.ne.s16.totalorder %v11271_v27, 0  ;;  %5882 = vmatprep.mubr.bf16.mxu1 %v3751_v44  ;;  %5968 = vmatpush1.bf16.msra.mxu1 %v8436_v24  ;;  %v8437_v49 = vld [vmem:[#allocation4 + $0x138] sm:$0xff]  }
 0x169   :  { %v3766_v0 = vor.u32 %v3764_v46, %v3763_v1  ;;  %v3678_v56 = vsel %vm11272_vm13, %v769_v20, 0  ;;  %vm11168_vm10 = vcmp.ne.s16.totalorder %v9511_v7, 0  ;;  %v735_v51 = vmax.f32 %v649_v34, 0.0  ;;  %5969 = vmatprep.subr.bf16.mxu1 %v9591_v53 }
 0x16a   :  { %v652_v57 = vadd.f32 %v9602_v48, %v651_v50  ;;  %v9690_v59 = vsel %vm1489_vm8, %v3564_v35, %v3568_v21  ;;  %v3769_v3 = vshrl.u32 %v3678_v56, 16  ;;  %v738_v8 = vmax.f32 %v660_v25, 0.0 }
 0x16b   :  { %v1777_v19 = vshrl.u32 %v9674_v4, 16  ;;  %v9694_v46 = vsel %vm1651_vm11, %v3755_v26, %v3766_v0  ;;  %v3772_v33 = vshll.u32 %v3678_v56, 16  ;;  %v3480_v34 = vsel %vm2179_vm7, %v769_v20, 0  ;;  %v11273_v26 = vld [vmem:[#allocation20_spill] sm:$0xff]  ;;  %v7858_v56 = vpop.f32.mrb[60].mxu0 }
 0x16c   :  { %v736_v58 = vmax.f32 %v652_v57, 0.0  ;;  %v3771_v5 = vrot.slane %v3769_v3, 7  ;;  %v3570_v35 = vshrl.u32 %v3479_v2, 16  ;;  %v9699_v50 = vpack.c.bf16 %v738_v8, %v737_v60  ;;  %v664_v60 = vpop.f32.mrb[61].mxu0  ;;  %5970 = vmatpush1.bf16.msra.mxu1 %v8437_v49 }
 0x16d   :  { %v1775_v44 = vsel %vm1651_vm11, %v9485_v18, %v9632_v32  ;;  %v3574_v24 = vshll.u32 %v3480_v34, 16  ;;  %vm11274_vm13 = vcmp.ne.s16.totalorder %v11273_v26, 0  ;;  %vm11164_vm9 = vcmp.ne.s16.totalorder %v9514_v61, 0  ;;  %v8438_v18 = vld [vmem:[#allocation4 + $0x140] sm:$0xff]   ;;  %5971 = vmatprep.subr.bf16.mxu1 %v9591_v53 }
 0x16e   :  { %v3679_v25 = vsel %vm11274_vm13, %v9664_v63, 0  ;;  %v771_v0 = vpack.c.bf16 %v736_v58, %v735_v51  ;;  %v3774_v57 = vor.u32 %v3772_v33, %v3771_v5  ;;  %v3572_v38 = vor.u32 %v3570_v35, %v3568_v21  ;;  %1293 = vst [vmem:[#allocation2 + $0x118] sm:$0xff] %v9699_v50  ;;  %5522 = vmatmul.mubr.bf16.gmra.mrb[120].mxu0 %v1775_v44  ;;  %v7859_v58 = vpop.f32.mrb[62].mxu0 }
 0x16f   :  { %v3777_v3 = vshrl.u32 %v3679_v25, 16  ;;  %v1779_v2 = vrot.slane %v1777_v19, 7  ;;  %v673_v20 = vadd.f32 %v9602_v48, %v7858_v56  ;;  %v3576_v32 = vrot.slane %v3574_v24, 1  ;;  %5529 = vmatprep.mubr.bf16.mxu0 %v9657_v55  ;;  %v667_v44 = vpop.f32.mrb[63].mxu0  ;;  %5883 = vmatmul.mubr.bf16.gmra.mrb[16].mxu1 %v9652_v40 }
 0x170   :  { %v3780_v8 = vshll.u32 %v3679_v25, 16  ;;  %1292 = vst [vmem:[#allocation2 + $0x110] sm:$0xff] %v771_v0  ;;  %v665_v51 = vadd.f32 %v9602_v48, %v664_v60  ;;  %v3257_v21 = vshrl.u32 %v9529_v52, 16  ;;  %v9713_v33 = vsel %vm1651_vm11, %v3763_v1, %v3774_v57  ;;  %5890 = vmatprep.mubr.bf16.mxu1 %v9669_v23  ;;  %5972 = vmatpush1.bf16.msra.mxu1 %v8438_v18  ;;  %v3421_v18 = vld [vmem:[#allocation2 + $0xb0] sm:$0xff] }
 0x171   :  { %v9716_v19 = vrot.slane %v3777_v3, 7  ;;  %v1780_v49 = vshll.u32 %v9674_v4, 16  ;;  %v741_v35 = vmax.f32 %v673_v20, 0.0  ;;  %v676_v24 = vadd.f32 %v9602_v48, %v7859_v58  ;;  %v8439_v3 = vld [vmem:[#allocation4 + $0x148] sm:$0xff]   ;;  %5973 = vmatprep.subr.bf16.mxu1 %v9591_v53 }
 0x172   :  { %v9722_v25 = vsel %vm1489_vm8, %v3572_v38, %v3576_v32  ;;  %v739_v52 = vmax.f32 %v665_v51, 0.0  ;;  %v668_v1 = vadd.f32 %v9602_v48, %v667_v44  ;;  %v3481_v55 = vsel %vm11168_vm10, %v9664_v63, 0 }
 0x173   :  { %v3782_v56 = vor.u32 %v3780_v8, %v9716_v19  ;;  %v1782_v4 = vor.u32 %v1780_v49, %v1779_v2  ;;  %v742_v57 = vmax.f32 %v676_v24, 0.0  ;;  %v3578_v20 = vshrl.u32 %v3480_v34, 16 }
 0x174   :  { %v3582_v38 = vshll.u32 %v3481_v55, 16  ;;  %v740_v60 = vmax.f32 %v668_v1, 0.0  ;;  %v3680_v8 = vsel %vm1630_vm1, %v771_v0, 0  ;;  %v11276_v63 = vshll.u32 %v9479_v39, 16  ;;  %5974 = vmatpush1.bf16.msra.mxu1 %v8439_v3 }
 0x175   :  { %v9732_v40 = vsel %vm1651_vm11, %v3771_v5, %v3782_v56  ;;  %v9740_v23 = vpack.c.bf16 %v742_v57, %v741_v35  ;;  %v11277_v2 = vshll.u32 %v9456_v42, 16  ;;  %v3580_v58 = vor.u32 %v3578_v20, %v3576_v32  ;;  %v8440_v35 = vld [vmem:[#allocation4 + $0x150] sm:$0xff]   ;;  %v11278_v32 = vld [vmem:[#allocation14_spill] sm:$0xff]  ;;  %5975 = vmatprep.subr.bf16.mxu1 %v9591_v53 }
 0x176   :  { %v2166_v51 = vor.u32 %v11276_v63, %v9524_v28  ;;  %v3584_v49 = vrot.slane %v3582_v38, 1  ;;  %v773_v5 = vpack.c.bf16 %v740_v60, %v739_v52  ;;  %v3259_v24 = vrot.slane %v3257_v21, 7  ;;  %v8441_v63 = vld [vmem:[#allocation4 + $0x158] sm:$0xff]  }
 0x177   :  { %v3266_v34 = vor.u32 %v11277_v2, %v9502_v15  ;;  %v3785_v44 = vshrl.u32 %v3680_v8, 16  ;;  %v3788_v1 = vshll.u32 %v3680_v8, 16  ;;  %v1783_v56 = vsel %vm1651_vm11, %v9567_v37, %v1782_v4  ;;  %1295 = vst [vmem:[#allocation2 + $0x128] sm:$0xff] %v9740_v23  ;;  %5891 = vmatmul.mubr.bf16.gmra.mrb[20].mxu1 %v9680_v31 }
 0x178   :  { %v9749_v39 = vsel %vm1489_vm8, %v3580_v58, %v3584_v49  ;;  %v3482_v42 = vsel %vm11164_vm9, %v771_v0, 0  ;;  %v3586_v57 = vshrl.u32 %v3481_v55, 16  ;;  %5530 = vmatmul.mubr.bf16.gmra.mrb[124].mxu0 %v1783_v56  ;;  %1294 = vst [vmem:[#allocation2 + $0x120] sm:$0xff] %v773_v5  ;;  %vm11279_vm13 = vcmp.ne.s16.totalorder %v11278_v32, 0  ;;  %5898 = vmatprep.mubr.bf16.mxu1 %v9694_v46  ;;  %v3422_v56 = vld [vmem:[#allocation2 + $0xb8] sm:$0xff] }
 0x179   :  { %v3241_v21 = vsel %vm11279_vm13, %v3421_v18, 0  ;;  %v3787_v52 = vrot.slane %v3785_v44, 7  ;;  %v3590_v37 = vshll.u32 %v3482_v42, 16  ;;  %v3681_v3 = vsel %vm1631_vm5, %v9699_v50, 0  ;;  %5537 = vmatprep.mubr.bf16.mxu0 %v9591_v53  ;;  %5976 = vmatpush1.bf16.msra.mxu1 %v8440_v35 }
 0x17a   :  { %v3588_v20 = vor.u32 %v3586_v57, %v3584_v49  ;;  %v3793_v38 = vshrl.u32 %v3681_v3, 16  ;;  %v3796_v60 = vshll.u32 %v3681_v3, 16  ;;  %vm11166_vm9 = vcmp.ne.s16.totalorder %v9522_v62, 0  ;;  %5977 = vmatprep.subr.bf16.mxu1 %v9591_v53 }
 0x17b   :  { %v3790_v0 = vor.u32 %v3788_v1, %v3787_v52  ;;  %v3592_v55 = vrot.slane %v3590_v37, 1  ;;  %v3269_v8 = vshrl.u32 %v3241_v21, 16  ;;  %v3483_v58 = vsel %vm11166_vm9, %v9699_v50, 0 }
 0x17c   :  { %v3795_v2 = vrot.slane %v3793_v38, 7  ;;  %v3594_v44 = vshrl.u32 %v3482_v42, 16  ;;  %v3267_v49 = vsel %vm1651_vm11, %v3259_v24, %v3266_v34  ;;  %v9777_v46 = vsel %vm1651_vm11, %v9467_v6, %v2166_v51  ;;  %v8442_v6 = vld [vmem:[#allocation4 + $0x160] sm:$0xff]  }
 0x17d   :  { %v9769_v31 = vsel %vm1651_vm11, %v9716_v19, %v3790_v0  ;;  %v9773_v1 = vsel %vm1489_vm8, %v3588_v20, %v3592_v55  ;;  %v3598_v50 = vshll.u32 %v3483_v58, 16  ;;  %v3682_v34 = vsel %vm1632_vm0, %v773_v5, 0  ;;  %v11281_v19 = vld [vmem:[#allocation10_spill] sm:$0xff]  ;;  %5978 = vmatpush1.bf16.msra.mxu1 %v8441_v63 }
 0x17e   :  { %v3798_v35 = vor.u32 %v3796_v60, %v3795_v2  ;;  %v3596_v57 = vor.u32 %v3594_v44, %v3592_v55  ;;  %v3801_v24 = vshrl.u32 %v3682_v34, 16  ;;  %v3804_v42 = vshll.u32 %v3682_v34, 16  ;;  %5979 = vmatprep.subr.bf16.mxu1 %v9591_v53 }
 0x17f   :  { %v777_v37 = vadd.s32 8, %v11281_v19  ;;  %v779_v3 = vadd.s32 24, %v11281_v19  ;;  %v3271_v38 = vrot.slane %v3269_v8, 7  ;;  %v3600_v51 = vrot.slane %v3598_v50, 1  ;;  %5899 = vmatmul.mubr.bf16.gmra.mrb[24].mxu1 %v9690_v59  ;;  %v3423_v19 = vld [vmem:[#allocation2 + $0xc0] sm:$0xff] }
 0x180   :  { %v9784_v20 = vsel %vm1651_vm11, %v3787_v52, %v3798_v35  ;;  %vm11165_vm13 = vcmp.ne.s16.totalorder %v9777_v46, 0  ;;  %5538 = vmatmul.mubr.bf16.gmra.mrb[128].mxu0 %v3267_v49  ;;  %v3242_v60 = vsel %vm1620_vm4, %v3422_v56, 0  ;;  %v3803_v0 = vrot.slane %v3801_v24, 7  ;;  %5906 = vmatprep.mubr.bf16.mxu1 %v9713_v33 }
 0x181   :  { %v9792_v55 = vsel %vm11165_vm13, %v773_v5, 0  ;;  %v3602_v8 = vshrl.u32 %v3483_v58, 16  ;;  %5545 = vmatprep.mubr.bf16.mxu0 %v3421_v18  ;;  %v3272_v63 = vshll.u32 %v3241_v21, 16  ;;  %v9795_v52 = vsel %vm1489_vm8, %v3596_v57, %v3600_v51  ;;  %5980 = vmatpush1.bf16.msra.mxu1 %v8442_v6  ;;  %v8443_v21 = vld [vmem:[#allocation4 + $0x168] sm:$0xff]  }
 0x182   :  { %v3606_v44 = vshll.u32 %v9792_v55, 16  ;;  %v3683_v49 = vsel %vm1633_vm6, %v9740_v23, 0  ;;  %v3806_v35 = vor.u32 %v3804_v42, %v3803_v0  ;;  %v3277_v18 = vshrl.u32 %v3242_v60, 16  ;;  %5981 = vmatprep.subr.bf16.mxu1 %v9591_v53 }
 0x183   :  { %v3604_v50 = vor.u32 %v3602_v8, %v3600_v51  ;;  %v3809_v34 = vshrl.u32 %v3683_v49, 16  ;;  %v3812_v24 = vshll.u32 %v3683_v49, 16  ;;  %v3274_v5 = vor.u32 %v3272_v63, %v3271_v38  ;;  %v8444_v63 = vld [vmem:[#allocation4 + $0x170] sm:$0xff]  }
 0x184   :  { %v9803_v58 = vrot.slane %v3606_v44, 1  ;;  %v9806_v57 = vsel %vm1651_vm11, %v3795_v2, %v3806_v35  ;;  %v819_v42 = vand.u32 15, %v777_v37  ;;  %v833_v33 = vand.u32 15, %v779_v3  ;;  %v8445_v35 = vld [vmem:[#allocation4 + $0x178] sm:$0xff]  }
 0x185   :  { %v3811_v23 = vrot.slane %v3809_v34, 7  ;;  %v3275_v6 = vsel %vm1651_vm11, %v9502_v15, %v3274_v5  ;;  %v3279_v8 = vrot.slane %v3277_v18, 7  ;;  %5982 = vmatpush1.bf16.msra.mxu1 %v8443_v21  ;;  %v3243_v2 = vsel %vm11167_vm15, %v3423_v19, 0  ;;  %v3425_v21 = vld [vmem:[#allocation2 + $0xd0] sm:$0xff]  ;;  %v3426_v37 = vld [vmem:[#allocation2 + $0xd8] sm:$0xff] }
 0x186   :  { %v9811_v59 = vsel %vm1489_vm8, %v3604_v50, %v9803_v58  ;;  %5983 = vmatprep.subr.bf16.mxu1 %v9591_v53  ;;  %v3280_v49 = vshll.u32 %v3242_v60, 16  ;;  %vm1225_vm13 = vcmp.le.s32.totalorder %v819_v42, 14  ;;  %vm9822_vm9 = vcmp.le.s32.totalorder %v833_v33, 14 }
 0x187   :  { %v3814_v51 = vor.u32 %v3812_v24, %v3811_v23  ;;  %5907 = vmatmul.mubr.bf16.gmra.mrb[28].mxu1 %v9722_v25  ;;  %v3285_v3 = vshrl.u32 %v3243_v2, 16  ;;  %vm1930_vm15 = vmpackc.low %vm1225_vm13, %vm1225_vm13  ;;  %v3288_v34 = vshll.u32 %v3243_v2, 16 }
 0x188   :  { %5546 = vmatmul.mubr.bf16.gmra.mrb[132].mxu0 %v3275_v6  ;;  %5914 = vmatprep.mubr.bf16.mxu1 %v9732_v40  ;;  %v3282_v15 = vor.u32 %v3280_v49, %v3279_v8  ;;  %vm1932_vm10 = vmpackc.low %vm9822_vm9, %vm9822_vm9  ;;  %v1962_v60 = vsel %vm1930_vm15, 65537, %v9591_v53 }
 0x189   :  { %v9818_v44 = vsel %vm1651_vm11, %v3803_v0, %v3814_v51  ;;  %5553 = vmatprep.mubr.bf16.mxu0 %v3422_v56  ;;  %5984 = vmatpush1.bf16.msra.mxu1 %v8444_v63  ;;  %v3424_v0 = vld [vmem:[#allocation2 + $0xc8] sm:$0xff]  ;;  %v3287_v56 = vrot.slane %v3285_v3, 7  ;;  %v1964_v50 = vsel %vm1932_vm10, 65537, %v9591_v53  ;;  %v7307_v24 = vcombine.low %v8704_v47, %v1962_v60 }
 0x18a   :  { %5985 = vmatprep.subr.bf16.mxu1 %v9591_v53  ;;  %v3283_v25 = vsel %vm1651_vm11, %v3271_v38, %v3282_v15  ;;  %v3244_v40 = vsel %vm1622_vm12, %v3424_v0, 0  ;;  %v7308_v18 = vcombine.low %v8704_v47, %v1964_v50  ;;  %vm11170_vm10 = vcmp.ne.s16.totalorder %v9524_v28, 0 }
 0x18b   :  { %v3290_v38 = vor.u32 %v3288_v34, %v3287_v56  ;;  %v3293_v5 = vshrl.u32 %v3244_v40, 16  ;;  %v2042_v23 = vshrl.u32 %v7307_v24, 16  ;;  %v3427_v34 = vld [vmem:[#allocation2 + $0xe0] sm:$0xff] }
 0x18c   :  { %v2049_v33 = vshrl.u32 %v7308_v18, 16  ;;  %v2052_v49 = vshll.u32 %v7308_v18, 16  ;;  %v3247_v18 = vsel %vm11169_vm14, %v3427_v34, 0  ;;  %vm11285_vm14 = vcmp.ne.s16.totalorder %v9019_v16, 0 }
 0x18d   :  { %5986 = vmatpush1.bf16.msra.mxu1 %v8445_v35  ;;  %v3291_v42 = vsel %vm1651_vm11, %v3279_v8, %v3290_v38  ;;  %v3295_v51 = vrot.slane %v3293_v5, 7  ;;  %v2044_v6 = vrot.slane %v2042_v23, 7  ;;  %v3610_v23 = vshrl.u32 %v9792_v55, 16 }
 0x18e   :  { %6244 = vmatprep.subr.bf16.mxu1 %v9591_v53  ;;  %v2051_v2 = vrot.slane %v2049_v33, 7 }
 0x18f   :  { %5915 = vmatmul.mubr.bf16.gmra.mrb[32].mxu1 %v9749_v39  ;;  %v3296_v39 = vshll.u32 %v3244_v40, 16  ;;  %v3468_v40 = vld [vmem:[#allocation2 + $0x128] sm:$0x1]  ;;  %v3612_v55 = vor.u32 %v3610_v23, %v9803_v58  ;;  %v8446_v23 = vld [vmem:[#allocation4 + $0x180] sm:$0xff]  }
 0x190   :  { %5554 = vmatmul.mubr.bf16.gmra.mrb[136].mxu0 %v3283_v25  ;;  %5922 = vmatprep.mubr.bf16.mxu1 %v9769_v31  ;;  %v2045_v31 = vshll.u32 %v7307_v24, 16  ;;  %v2054_v35 = vor.u32 %v2052_v49, %v2051_v2  ;;  %v9866_v24 = vld [vmem:[#allocation2 + $0x18] sm:$0xff]  ;;  %v9881_v49 = vld [vmem:[#allocation2 + $0x20] sm:$0xff] }
 0x191   :  { %5561 = vmatprep.mubr.bf16.mxu0 %v3423_v19  ;;  %v3245_v19 = vsel %vm1623_vm3, %v3425_v21, 0  ;;  %v3298_v63 = vor.u32 %v3296_v39, %v3295_v51  ;;  %v3317_v39 = vshrl.u32 %v3247_v18, 16 }
 0x192   :  { %v3301_v47 = vshrl.u32 %v3245_v19, 16  ;;  %v9846_v8 = vor.u32 %v2045_v31, %v2044_v6  ;;  %v3304_v25 = vshll.u32 %v3245_v19, 16 }
 0x193   :  { %v3299_v15 = vsel %vm1651_vm11, %v3287_v56, %v3298_v63  ;;  %v9857_v56 = vsel %vm1651_vm11, %v2044_v6, %v2054_v35  ;;  %v11284_v6 = vld [vmem:[#allocation13_spill] sm:$0xff] }
 0x194   :  { %v3303_v3 = vrot.slane %v3301_v47, 7  ;;  %vm2168_vm9 = vcmp.ne.s16.totalorder %v9846_v8, 0  ;;  %vm2169_vm15 = vcmp.ne.s16.totalorder %v9857_v56, 0  ;;  %v9879_v31 = vsel %vm1651_vm11, %v2051_v2, %v11284_v6 }
 0x195   :  { %v2614_v33 = vsel %vm2169_vm15, %v9866_v24, 0  ;;  %vm2170_vm13 = vcmp.ne.s16.totalorder %v9879_v31, 0 }
 0x196   :  { %v2638_v47 = vshll.u32 %v2614_v33, 16  ;;  %v2615_v2 = vsel %vm2170_vm13, %v9881_v49, 0 }
 0x197   :  { %5923 = vmatmul.mubr.bf16.gmra.mrb[36].mxu1 %v9773_v1  ;;  %v9851_v1 = vld [vmem:[#allocation2 + $0x10] sm:$0xff] }
 0x198   :  { %5562 = vmatmul.mubr.bf16.gmra.mrb[140].mxu0 %v3291_v42  ;;  %5930 = vmatprep.mubr.bf16.mxu1 %v9784_v20  ;;  %v3306_v20 = vor.u32 %v3304_v25, %v3303_v3  ;;  %v2613_v50 = vsel %vm2168_vm9, %v9851_v1, 0  ;;  %v2640_v25 = vrot.slane %v2638_v47, 1  ;;  %v2650_v47 = vshrl.u32 %v2615_v2, 16 }
 0x199   :  { %5569 = vmatprep.mubr.bf16.mxu0 %v3424_v0  ;;  %v3246_v0 = vsel %vm11181_vm2, %v3426_v37, 0  ;;  %v2631_v63 = vshrl.u32 %v2613_v50, 16 }
 0x19a   :  { %v3309_v60 = vshrl.u32 %v3246_v0, 16  ;;  %v3307_v38 = vsel %vm1651_vm11, %v3295_v51, %v3306_v20 }
 0x19c   :  { %v3311_v5 = vrot.slane %v3309_v60, 7 }
 0x19f   :  { %5931 = vmatmul.mubr.bf16.gmra.mrb[40].mxu1 %v9795_v52  ;;  %v3485_v52 = vsel %vm11170_vm10, %v3468_v40, 0  ;;  %v2646_v40 = vshll.u32 %v2615_v2, 16  ;;  %vm11287_vm10 = vcmp.ne.s16.totalorder %v9023_v17, 0 }
 0x1a0   :  { %5570 = vmatmul.mubr.bf16.gmra.mrb[144].mxu0 %v3299_v15  ;;  %5938 = vmatprep.mubr.bf16.mxu1 %v9806_v57  ;;  %v2633_v57 = vshll.u32 %v2613_v50, 16  ;;  %v3614_v42 = vshll.u32 %v3485_v52, 16  ;;  %v3428_v15 = vld [vmem:[#allocation2 + $0xe8] sm:$0xff]  ;;  %v3429_v52 = vld [vmem:[#allocation2 + $0xf0] sm:$0xff] }
 0x1a1   :  { %5577 = vmatprep.mubr.bf16.mxu0 %v3425_v21  ;;  %v3312_v21 = vshll.u32 %v3246_v0, 16  ;;  %v3320_v0 = vshll.u32 %v3247_v18, 16  ;;  %v3248_v20 = vsel %vm11285_vm14, %v3428_v15, 0  ;;  %v9893_v18 = vld [vmem:[#allocation2 + $0x28] sm:$0xff]  ;;  %vm11286_vm14 = vcmp.ne.s16.totalorder %v9038_v29, 0 }
 0x1a2   :  { %v2635_v19 = vrot.slane %v2633_v57, 1  ;;  %v3325_v50 = vshrl.u32 %v3248_v20, 16  ;;  %v2642_v57 = vshrl.u32 %v2614_v33, 16 }
 0x1a3   :  { %v3314_v51 = vor.u32 %v3312_v21, %v3311_v5 }
 0x1a4   :  { %v2636_v35 = vor.u32 %v2635_v19, %v2631_v63  ;;  %v3328_v19 = vshll.u32 %v3248_v20, 16  ;;  %v8447_v63 = vld [vmem:[#allocation4 + $0x188] sm:$0xff]   ;;  %v11288_v20 = vld [vmem:[#allocation17_spill] sm:$0xff] }
 0x1a6   :  { %v2641_v60 = vsel %vm1489_vm8, %v2636_v35, %v2640_v25 }
 0x1a7   :  { %5939 = vmatmul.mubr.bf16.gmra.mrb[44].mxu1 %v9811_v59  ;;  %v3315_v59 = vsel %vm1651_vm11, %v3303_v3, %v3314_v51  ;;  %v3249_v51 = vsel %vm11286_vm14, %v3429_v52, 0  ;;  %vm11290_vm14 = vcmp.ne.s16.totalorder %v11271_v27, 0 }
 0x1a8   :  { %5578 = vmatmul.mubr.bf16.gmra.mrb[148].mxu0 %v3307_v38  ;;  %5946 = vmatprep.mubr.bf16.mxu1 %v9818_v44  ;;  %v3319_v44 = vrot.slane %v3317_v39, 7  ;;  %v2648_v38 = vrot.slane %v2646_v40, 1  ;;  %v2616_v39 = vsel %vm11287_vm10, %v9893_v18, 0  ;;  %v3333_v6 = vshrl.u32 %v3249_v51, 16 }
 0x1a9   :  { %5585 = vmatprep.mubr.bf16.mxu0 %v3426_v37  ;;  %v3616_v37 = vrot.slane %v3614_v42, 1  ;;  %v3327_v42 = vrot.slane %v3325_v50, 7  ;;  %vm11289_vm10 = vcmp.ne.s16.totalorder %v11288_v20, 0 }
 0x1aa   :  { %v3322_v3 = vor.u32 %v3320_v0, %v3319_v44  ;;  %v2652_v35 = vor.u32 %v2650_v47, %v2648_v38  ;;  %v3335_v0 = vrot.slane %v3333_v6, 7 }
 0x1ab   :  { %v3617_v58 = vsel %vm1489_vm8, %v3612_v55, %v3616_v37  ;;  %v2654_v55 = vshll.u32 %v2616_v39, 16  ;;  %v9904_v37 = vld [vmem:[#allocation2 + $0x30] sm:$0xff] }
 0x1ac   :  { %v3323_v21 = vsel %vm1651_vm11, %v3311_v5, %v3322_v3  ;;  %v3330_v5 = vor.u32 %v3328_v19, %v3327_v42 }
 0x1ad   :  { %v2656_v40 = vrot.slane %v2654_v55, 1 }
 0x1af   :  { %5947 = vmatmul.mubr.bf16.gmra.mrb[48].mxu1 %v3617_v58  ;;  %v2617_v58 = vsel %vm11289_vm10, %v9904_v37, 0  ;;  %vm11291_vm10 = vcmp.ne.s16.totalorder %v11273_v26, 0 }
 0x1b0   :  { %5586 = vmatmul.mubr.bf16.gmra.mrb[152].mxu0 %v3315_v59  ;;  %5987 = vmatprep.mubr.bf16.mxu1 %v2641_v60  ;;  %v3331_v59 = vsel %vm1651_vm11, %v3319_v44, %v3330_v5  ;;  %v8448_v60 = vld [vmem:[#allocation4 + $0x190] sm:$0xff]   ;;  %v2657_v44 = vsel %vm1489_vm8, %v2652_v35, %v2656_v40  ;;  %v2662_v3 = vshll.u32 %v2617_v58, 16  ;;  %v8450_v5 = vld [vmem:[#allocation4 + $0x1a0] sm:$0xff]   ;;  %v8451_v35 = vld [vmem:[#allocation4 + $0x1a8] sm:$0xff]  }
 0x1b1   :  { %5593 = vmatprep.mubr.bf16.mxu0 %v3427_v34  ;;  %v2644_v34 = vor.u32 %v2642_v57, %v2640_v25  ;;  %v3336_v25 = vshll.u32 %v3249_v51, 16 }
 0x1b2   :  { %v2664_v19 = vrot.slane %v2662_v3, 1 }
 0x1b3   :  { %v2649_v33 = vsel %vm1489_vm8, %v2644_v34, %v2648_v38  ;;  %v3338_v50 = vor.u32 %v3336_v25, %v3335_v0  ;;  %v8449_v38 = vld [vmem:[#allocation4 + $0x198] sm:$0xff]  }
 0x1b4   :  { %v9916_v34 = vld [vmem:[#allocation2 + $0x38] sm:$0xff] }
 0x1b5   :  { %v3339_v51 = vsel %vm1651_vm11, %v3327_v42, %v3338_v50  ;;  %v11293_v50 = vld [vmem:[#allocation19_spill] sm:$0xff] }
 0x1b7   :  { %5988 = vmatmul.mubr.bf16.vlgmr.msra.gmra.mrb[52].mxu1 %v9851_v1 }
 0x1b8   :  { %5594 = vmatmul.mubr.bf16.gmra.mrb[156].mxu0 %v3323_v21  ;;  %6245 = vmatpush1.bf16.msra.mxu1 %v8446_v23  ;;  %v3431_v21 = vld [vmem:[#allocation2 + $0x100] sm:$0xff]  ;;  %v2658_v23 = vshrl.u32 %v2616_v39, 16 }
 0x1b9   :  { %5601 = vmatprep.mubr.bf16.mxu0 %v3428_v15  ;;  %5995 = vmatprep.mubr.bf16.mxu1 %v2649_v33  ;;  %v3430_v15 = vld [vmem:[#allocation2 + $0xf8] sm:$0xff] }
 0x1ba   :  { %6246 = vmatprep.subr.bf16.mxu1 %v9591_v53  ;;  %v3250_v2 = vsel %vm11290_vm14, %v3430_v15, 0  ;;  %v2660_v6 = vor.u32 %v2658_v23, %v2656_v40  ;;  %vm11292_vm14 = vcmp.ne.s16.totalorder %v9079_v54, 0 }
 0x1bb   :  { %v3341_v57 = vshrl.u32 %v3250_v2, 16  ;;  %v3344_v33 = vshll.u32 %v3250_v2, 16  ;;  %v2618_v39 = vsel %vm11292_vm14, %v9916_v34, 0  ;;  %vm11295_vm14 = vcmp.ne.s16.totalorder %v9137_v13, 0 }
 0x1bc   :  { %6247 = vmatpush1.bf16.msra.mxu1 %v8447_v63  ;;  %v3251_v63 = vsel %vm11291_vm10, %v3431_v21, 0  ;;  %v2665_v42 = vsel %vm1489_vm8, %v2660_v6, %v2664_v19  ;;  %v2670_v25 = vshll.u32 %v2618_v39, 16  ;;  %vm11294_vm10 = vcmp.ne.s16.totalorder %v11293_v50, 0  ;;  %v3433_v6 = vld [vmem:[#allocation2 + $0x110] sm:$0xff] }
 0x1bd   :  { %6248 = vmatprep.subr.bf16.mxu1 %v9591_v53  ;;  %v3349_v55 = vshrl.u32 %v3251_v63, 16  ;;  %v3352_v3 = vshll.u32 %v3251_v63, 16  ;;  %v2674_v63 = vshrl.u32 %v2618_v39, 16 }
 0x1be   :  { %v2672_v23 = vrot.slane %v2670_v25, 1 }
 0x1bf   :  { %5996 = vmatmul.mubr.bf16.gmra.mrb[56].mxu1 %v9866_v24 }
 0x1c0   :  { %5602 = vmatmul.mubr.bf16.gmra.mrb[160].mxu0 %v3331_v59  ;;  %6003 = vmatprep.mubr.bf16.mxu1 %v2657_v44  ;;  %v2666_v59 = vshrl.u32 %v2617_v58, 16  ;;  %v3351_v44 = vrot.slane %v3349_v55, 7  ;;  %v2676_v25 = vor.u32 %v2674_v63, %v2672_v23 }
 0x1c1   :  { %5609 = vmatprep.mubr.bf16.mxu0 %v3429_v52  ;;  %6249 = vmatpush1.bf16.msra.mxu1 %v8448_v60  ;;  %v3343_v52 = vrot.slane %v3341_v57, 7  ;;  %v9927_v60 = vld [vmem:[#allocation2 + $0x40] sm:$0xff] }
 0x1c2   :  { %6250 = vmatprep.subr.bf16.mxu1 %v9591_v53  ;;  %v2668_v40 = vor.u32 %v2666_v59, %v2664_v19  ;;  %v2619_v57 = vsel %vm11294_vm10, %v9927_v60, 0  ;;  %v8454_v59 = vld [vmem:[#allocation4 + $0x1c0] sm:$0xff]   ;;  %vm11296_vm10 = vcmp.ne.s16.totalorder %v9239_v12, 0 }
 0x1c3   :  { %v3346_v47 = vor.u32 %v3344_v33, %v3343_v52  ;;  %v2678_v19 = vshll.u32 %v2619_v57, 16 }
 0x1c5   :  { %6251 = vmatpush1.bf16.msra.mxu1 %v8449_v38  ;;  %v3347_v2 = vsel %vm1651_vm11, %v3335_v0, %v3346_v47  ;;  %v8452_v38 = vld [vmem:[#allocation4 + $0x1b0] sm:$0xff]   ;;  %v2673_v0 = vsel %vm1489_vm8, %v2668_v40, %v2672_v23  ;;  %v9940_v47 = vld [vmem:[#allocation2 + $0x48] sm:$0xff]  ;;  %v3253_v40 = vsel %vm1631_vm5, %v3433_v6, 0  ;;  %v2682_v23 = vshrl.u32 %v2619_v57, 16 }
 0x1c6   :  { %6252 = vmatprep.subr.bf16.mxu1 %v9591_v53 }
 0x1c7   :  { %6004 = vmatmul.mubr.bf16.gmra.mrb[60].mxu1 %v9881_v49 }
 0x1c8   :  { %5610 = vmatmul.mubr.bf16.gmra.mrb[164].mxu0 %v3339_v51  ;;  %6011 = vmatprep.mubr.bf16.mxu1 %v2665_v42  ;;  %v3354_v51 = vor.u32 %v3352_v3, %v3351_v44  ;;  %v2680_v42 = vrot.slane %v2678_v19, 1  ;;  %v3365_v3 = vshrl.u32 %v3253_v40, 16 }
 0x1c9   :  { %5617 = vmatprep.mubr.bf16.mxu0 %v3430_v15  ;;  %6253 = vmatpush1.bf16.msra.mxu1 %v8450_v5  ;;  %v3432_v15 = vld [vmem:[#allocation2 + $0x108] sm:$0xff]  ;;  %v8453_v5 = vld [vmem:[#allocation4 + $0x1b8] sm:$0xff]  }
 0x1ca   :  { %6254 = vmatprep.subr.bf16.mxu1 %v9591_v53  ;;  %v3252_v58 = vsel %vm1630_vm1, %v3432_v15, 0  ;;  %v3355_v55 = vsel %vm1651_vm11, %v3343_v52, %v3354_v51  ;;  %v2681_v52 = vsel %vm1489_vm8, %v2676_v25, %v2680_v42  ;;  %v2684_v19 = vor.u32 %v2682_v23, %v2680_v42 }
 0x1cb   :  { %v3357_v33 = vshrl.u32 %v3252_v58, 16 }
 0x1cd   :  { %6255 = vmatpush1.bf16.msra.mxu1 %v8451_v35  ;;  %v3360_v35 = vshll.u32 %v3252_v58, 16 }
 0x1ce   :  { %6256 = vmatprep.subr.bf16.mxu1 %v9591_v53 }
 0x1cf   :  { %6012 = vmatmul.mubr.bf16.gmra.mrb[64].mxu1 %v9893_v18 }
 0x1d0   :  { %5618 = vmatmul.mubr.bf16.gmra.mrb[168].mxu0 %v3347_v2  ;;  %6019 = vmatprep.mubr.bf16.mxu1 %v2673_v0  ;;  %v9945_v2 = vld [vmem:[#allocation2] sm:$0xff]  ;;  %v9953_v0 = vld [vmem:[#allocation2 + $0x50] sm:$0xff] }
 0x1d1   :  { %5625 = vmatprep.mubr.bf16.mxu0 %v3431_v21  ;;  %6257 = vmatpush1.bf16.msra.mxu1 %v8452_v38  ;;  %v3359_v21 = vrot.slane %v3357_v33, 7  ;;  %v8455_v38 = vld [vmem:[#allocation4 + $0x1c8] sm:$0xff]   ;;  %v3367_v33 = vrot.slane %v3365_v3, 7  ;;  %v2621_v63 = vsel %vm11296_vm10, %v9953_v0, 0  ;;  %v9966_v3 = vld [vmem:[#allocation2 + $0x58] sm:$0xff] }
 0x1d2   :  { %6258 = vmatprep.subr.bf16.mxu1 %v9591_v53  ;;  %v2620_v53 = vsel %vm11295_vm14, %v9940_v47, 0  ;;  %v2694_v42 = vshll.u32 %v2621_v63, 16  ;;  %vm11297_vm14 = vcmp.ne.s16.totalorder %v9472_v36, 0 }
 0x1d3   :  { %v3362_v39 = vor.u32 %v3360_v35, %v3359_v21  ;;  %v2686_v58 = vshll.u32 %v2620_v53, 16 }
 0x1d5   :  { %6259 = vmatpush1.bf16.msra.mxu1 %v8453_v5  ;;  %v3363_v51 = vsel %vm1651_vm11, %v3351_v44, %v3362_v39  ;;  %v3368_v5 = vshll.u32 %v3253_v40, 16  ;;  %v2688_v35 = vrot.slane %v2686_v58, 1  ;;  %v3435_v40 = vld [vmem:[#allocation2 + $0x120] sm:$0xff]  ;;  %v2696_v39 = vrot.slane %v2694_v42, 1 }
 0x1d6   :  { %6260 = vmatprep.subr.bf16.mxu1 %v9945_v2  ;;  %v2698_v42 = vshrl.u32 %v2621_v63, 16 }
 0x1d7   :  { %6020 = vmatmul.mubr.bf16.gmra.mrb[68].mxu1 %v9904_v37  ;;  %v2689_v44 = vsel %vm1489_vm8, %v2684_v19, %v2688_v35  ;;  %v3255_v19 = vsel %vm1633_vm6, %v3435_v40, 0 }
 0x1d8   :  { %5626 = vmatmul.mubr.bf16.gmra.mrb[172].mxu0 %v3355_v55  ;;  %6027 = vmatprep.mubr.bf16.mxu1 %v2681_v52  ;;  %v8456_v55 = vld [vmem:[#allocation4 + $0x1d0] sm:$0xff]   ;;  %v2690_v52 = vshrl.u32 %v2620_v53, 16  ;;  %v3384_v43 = vshll.u32 %v3255_v19, 16 }
 0x1d9   :  { %5633 = vmatprep.mubr.bf16.mxu0 %v3432_v15  ;;  %6261 = vmatpush1.bf16.msra.mxu1 %v8454_v59  ;;  %v3434_v15 = vld [vmem:[#allocation2 + $0x118] sm:$0xff]  ;;  %v3370_v59 = vor.u32 %v3368_v5, %v3367_v33  ;;  %v11298_v5 = vld [vmem:[#allocation12_spill] sm:$0xff] }
 0x1da   :  { %6262 = vmatprep.subr.bf16.mxu1 %v9945_v2  ;;  %v3254_v57 = vsel %vm1632_vm0, %v3434_v15, 0  ;;  %v2692_v58 = vor.u32 %v2690_v52, %v2688_v35  ;;  %vm11299_vm10 = vcmp.ne.s16.totalorder %v11298_v5, 0  ;;  %v11300_v52 = vld [vmem:[#allocation11_spill] sm:$0xff]  ;;  %v2700_v5 = vor.u32 %v2698_v42, %v2696_v39 }
 0x1db   :  { %v3373_v25 = vshrl.u32 %v3254_v57, 16  ;;  %v2384_v53 = vsel %vm11299_vm10, %v9851_v1, 0 }
 0x1dd   :  { %6263 = vmatpush1.bf16.msra.mxu1 %v8455_v38  ;;  %v3371_v38 = vsel %vm1651_vm11, %v3359_v21, %v3370_v59  ;;  %v3375_v23 = vrot.slane %v3373_v25, 7  ;;  %v2697_v21 = vsel %vm1489_vm8, %v2692_v58, %v2696_v39  ;;  %v9979_v25 = vld [vmem:[#allocation2 + $0x60] sm:$0xff] }
 0x1de   :  { %6264 = vmatprep.subr.bf16.mxu1 %v9945_v2 }
 0x1df   :  { %6028 = vmatmul.mubr.bf16.gmra.mrb[72].mxu1 %v9916_v34 }
 0x1e0   :  { %5634 = vmatmul.mubr.bf16.gmra.mrb[176].mxu0 %v3363_v51  ;;  %6035 = vmatprep.mubr.bf16.mxu1 %v2689_v44  ;;  %v2622_v51 = vsel %vm11297_vm14, %v9966_v3, 0  ;;  %v3381_v44 = vshrl.u32 %v3255_v19, 16  ;;  %vm11301_vm14 = vcmp.ne.s16.totalorder %v11300_v52, 0  ;;  %v2408_v19 = vshll.u32 %v2384_v53, 16 }
 0x1e1   :  { %5641 = vmatprep.mubr.bf16.mxu0 %v3433_v6  ;;  %6265 = vmatpush1.bf16.msra.mxu1 %v8456_v55  ;;  %v3376_v6 = vshll.u32 %v3254_v57, 16  ;;  %v2366_v55 = vld [vmem:[#allocation2 + $0x8] sm:$0x80]  ;;  %v8457_v57 = vld [vmem:[#allocation4 + $0x1d8] sm:$0xff]   ;;  %v2702_v59 = vshll.u32 %v2622_v51, 16 }
 0x1e2   :  { %6266 = vmatprep.subr.bf16.mxu1 %v9945_v2  ;;  %v3383_v58 = vrot.slane %v3381_v44, 7 }
 0x1e3   :  { %v3378_v35 = vor.u32 %v3376_v6, %v3375_v23  ;;  %v2704_v63 = vrot.slane %v2702_v59, 1  ;;  %v2186_v59 = vsel %vm2169_vm15, %v9851_v1, 0 }
 0x1e5   :  { %6267 = vmatpush1.bf16.msra.mxu1 %v8457_v57  ;;  %v3379_v30 = vsel %vm1651_vm11, %v3367_v33, %v3378_v35  ;;  %v2185_v57 = vsel %vm2168_vm9, %v9945_v2, 0  ;;  %v2705_v33 = vsel %vm1489_vm8, %v2700_v5, %v2704_v63 }
 0x1e6   :  { %6268 = vmatprep.subr.bf16.mxu1 %v9945_v2  ;;  %v2205_v35 = vshll.u32 %v2185_v57, 16  ;;  %v2203_v26 = vshrl.u32 %v2185_v57, 16 }
 0x1e7   :  { %6036 = vmatmul.mubr.bf16.gmra.mrb[76].mxu1 %v9927_v60 }
 0x1e8   :  { %5642 = vmatmul.mubr.bf16.gmra.mrb[180].mxu0 %v3371_v38  ;;  %6043 = vmatprep.mubr.bf16.mxu1 %v2697_v21  ;;  %v2383_v38 = vsel %vm11301_vm14, %v2366_v55, 0  ;;  %v11302_v21 = vld [vmem:[#allocation24_spill] sm:$0xff]  ;;  %vm11304_vm14 = vcmp.ne.s16.totalorder %v11278_v32, 0  ;;  %v9999_v32 = vld [vmem:[#allocation2 + $0x68] sm:$0xff]  ;;  %v2207_v5 = vrot.slane %v2205_v35, 1 }
 0x1e9   :  { %5649 = vmatprep.mubr.bf16.mxu0 %v3434_v15  ;;  %v2405_v15 = vshrl.u32 %v2384_v53, 16  ;;  %vm11303_vm10 = vcmp.ne.s16.totalorder %v11302_v21, 0  ;;  %v2401_v4 = vshrl.u32 %v2383_v38, 16  ;;  %v2385_v39 = vsel %vm11304_vm14, %v9866_v24, 0 }
 0x1ea   :  { %v2623_v6 = vsel %vm11303_vm10, %v9979_v25, 0  ;;  %v2210_v53 = vshll.u32 %v2186_v59, 16  ;;  %v2624_v1 = vsel %vm2179_vm7, %v9999_v32, 0  ;;  %v2416_v57 = vshll.u32 %v2385_v39, 16 }
 0x1eb   :  { %v2407_v48 = vrot.slane %v2405_v15, 7  ;;  %v2710_v55 = vshll.u32 %v2623_v6, 16  ;;  %v2403_v44 = vrot.slane %v2401_v4, 7  ;;  %v2706_v15 = vshrl.u32 %v2622_v51, 16 }
 0x1ec   :  { %v2386_v51 = vsel %vm1620_vm4, %v9881_v49, 0  ;;  %v2718_v35 = vshll.u32 %v2624_v1, 16  ;;  %vm11305_vm10 = vcmp.ne.s16.totalorder %v9511_v7, 0  ;;  %vm11306_vm14 = vcmp.ne.s16.totalorder %v8951_v10, 0 }
 0x1ed   :  { %v2410_v42 = vor.u32 %v2408_v19, %v2407_v48  ;;  %v2712_v38 = vrot.slane %v2710_v55, 1  ;;  %v2212_v19 = vrot.slane %v2210_v53, 1 }
 0x1ee   :  { %v2720_v53 = vrot.slane %v2718_v35, 1 }
 0x1ef   :  { %6044 = vmatmul.mubr.bf16.gmra.mrb[80].mxu1 %v9940_v47 }
 0x1f0   :  { %5650 = vmatmul.mubr.bf16.gmra.mrb[184].mxu0 %v3379_v30  ;;  %6051 = vmatprep.mubr.bf16.mxu1 %v2705_v33  ;;  %v3386_v30 = vor.u32 %v3384_v43, %v3383_v58  ;;  %v2411_v43 = vsel %vm1651_vm11, %v2403_v44, %v2410_v42  ;;  %v2708_v58 = vor.u32 %v2706_v15, %v2704_v63  ;;  %v8458_v33 = vld [vmem:[#allocation4 + $0x200] sm:$0xff]   ;;  %v2421_v44 = vshrl.u32 %v2386_v51, 16  ;;  %v10013_v42 = vld [vmem:[#allocation2 + $0x70] sm:$0xff]  ;;  %v8460_v15 = vld [vmem:[#allocation4 + $0x208] sm:$0xff]  }
 0x1f1   :  { %5657 = vmatprep.mubr.bf16.mxu0 %v3435_v40  ;;  %v2413_v40 = vshrl.u32 %v2385_v39, 16  ;;  %7860 = vmatprep.subr.bf16.mxu0 %v8458_v33  ;;  %v10011_v63 = vor.u32 %v2207_v5, %v2203_v26  ;;  %v2187_v39 = vsel %vm2170_vm13, %v9866_v24, 0  ;;  %v2387_v24 = vsel %vm11306_vm14, %v9893_v18, 0 }
 0x1f2   :  { %v3387_v52 = vsel %vm1651_vm11, %v3375_v23, %v3386_v30  ;;  %v2713_v23 = vsel %vm1489_vm8, %v2708_v58, %v2712_v38  ;;  %v2714_v30 = vshrl.u32 %v2623_v6, 16  ;;  %v2625_v6 = vsel %vm11305_vm10, %v10013_v42, 0 }
 0x1f3   :  { %v2415_v4 = vrot.slane %v2413_v40, 7  ;;  %v2213_v26 = vsel %vm1489_vm8, %v10011_v63, %v2212_v19  ;;  %v2214_v58 = vshrl.u32 %v2186_v59, 16  ;;  %vm11307_vm10 = vcmp.ne.s16.totalorder %v9023_v17, 0 }
 0x1f4   :  { %v2716_v40 = vor.u32 %v2714_v30, %v2712_v38  ;;  %v2218_v38 = vshll.u32 %v2187_v39, 16  ;;  %v8461_v30 = vld [vmem:[#allocation4 + $0x210] sm:$0xff]   ;;  %v2188_v59 = vsel %vm11307_vm10, %v9881_v49, 0  ;;  %v2429_v35 = vshrl.u32 %v2387_v24, 16 }
 0x1f5   :  { %v2418_v55 = vor.u32 %v2416_v57, %v2415_v4  ;;  %v2424_v57 = vshll.u32 %v2386_v51, 16  ;;  %v2226_v10 = vshll.u32 %v2188_v59, 16  ;;  %vm11308_vm14 = vcmp.ne.s16.totalorder %v9514_v61, 0 }
 0x1f6   :  { %vm11309_vm10 = vcmp.ne.s16.totalorder %v11288_v20, 0 }
 0x1f7   :  { %6052 = vmatmul.mubr.bf16.gmra.mrb[84].mxu1 %v9953_v0  ;;  %v2419_v5 = vsel %vm1651_vm11, %v2407_v48, %v2418_v55  ;;  %v2216_v48 = vor.u32 %v2214_v58, %v2212_v19 }
 0x1f8   :  { %5658 = vmatmul.mubr.bf16.gmra.mrb[188].mxu0 %v3387_v52  ;;  %v8459_v52 = vld [vmem:[#allocation4 + $0x1e0] sm:$0xff]   ;;  %6059 = vmatprep.mubr.bf16.mxu1 %v2713_v23  ;;  %v2721_v23 = vsel %vm1489_vm8, %v2716_v40, %v2720_v53  ;;  %v8462_v40 = vld [vmem:[#allocation4 + $0x218] sm:$0xff]  }
 0x1f9   :  { %5698 = vmatprep.mubr.bf16.mxu0 %v2411_v43  ;;  %6269 = vmatpush1.bf16.msra.mxu1 %v8459_v52  ;;  %v2423_v43 = vrot.slane %v2421_v44, 7  ;;  %v2726_v52 = vshll.u32 %v2625_v6, 16  ;;  %v2220_v44 = vrot.slane %v2218_v38, 1  ;;  %v2432_v38 = vshll.u32 %v2387_v24, 16 }
 0x1fa   :  { %6270 = vmatprep.subr.bf16.mxu1 %v9945_v2  ;;  %v2189_v24 = vsel %vm11309_vm10, %v9893_v18, 0  ;;  %v2389_v18 = vsel %vm1623_vm3, %v9916_v34, 0  ;;  %vm11311_vm10 = vcmp.ne.s16.totalorder %v9079_v54, 0 }
 0x1fb   :  { %v2426_v55 = vor.u32 %v2424_v57, %v2423_v43  ;;  %v2221_v51 = vsel %vm1489_vm8, %v2216_v48, %v2220_v44  ;;  %v8463_v57 = vld [vmem:[#allocation4 + $0x220] sm:$0xff]  }
 0x1fd   :  { %v2427_v19 = vsel %vm1651_vm11, %v2415_v4, %v2426_v55  ;;  %v8464_v4 = vld [vmem:[#allocation4 + $0x1e8] sm:$0xff]   ;;  %v2730_v55 = vshrl.u32 %v2625_v6, 16 }
 0x1fe   :  { %6271 = vmatpush1.bf16.msra.mxu1 %v8464_v4 }
 0x1ff   :  { %6060 = vmatmul.mubr.bf16.gmra.mrb[88].mxu1 %v9966_v3  ;;  %6272 = vmatprep.subr.bf16.mxu1 %v9945_v2 }
 0x200   :  { %5699 = vmatmul.mubr.bf16.vlgmr.msra.gmra.mrb[64].mxu0 %v2213_v26  ;;  %6067 = vmatprep.mubr.bf16.mxu1 %v2721_v23  ;;  %v2722_v26 = vshrl.u32 %v2624_v1, 16  ;;  %v2431_v23 = vrot.slane %v2429_v35, 7  ;;  %v2388_v1 = vsel %vm1622_vm12, %v9904_v37, 0 }
 0x201   :  { %5706 = vmatprep.mubr.bf16.mxu0 %v2419_v5  ;;  %7861 = vmatpush3.bf16.msra.mxu0 %v8458_v33  ;;  %v2728_v33 = vrot.slane %v2726_v52, 1  ;;  %v10033_v5 = vld [vmem:[#allocation2 + $0x78] sm:$0xff]  ;;  %v2228_v52 = vrot.slane %v2226_v10, 1  ;;  %v2440_v4 = vshll.u32 %v2388_v1, 16 }
 0x202   :  { %7862 = vmatprep.subr.bf16.mxu0 %v8460_v15  ;;  %v2724_v58 = vor.u32 %v2722_v26, %v2720_v53  ;;  %v2626_v49 = vsel %vm11308_vm14, %v10033_v5, 0  ;;  %v2222_v53 = vshrl.u32 %v2187_v39, 16  ;;  %v2434_v48 = vor.u32 %v2432_v38, %v2431_v23 }
 0x203   :  { %v2734_v35 = vshll.u32 %v2626_v49, 16  ;;  %v2437_v26 = vshrl.u32 %v2388_v1, 16  ;;  %vm11310_vm14 = vcmp.ne.s16.totalorder %v9522_v62, 0 }
 0x204   :  { %v2435_v6 = vsel %vm1651_vm11, %v2423_v43, %v2434_v48 }
 0x205   :  { %7863 = vmatpush3.bf16.msra.mxu0 %v8460_v15  ;;  %v2729_v15 = vsel %vm1489_vm8, %v2724_v58, %v2728_v33  ;;  %v8465_v58 = vld [vmem:[#allocation4 + $0x228] sm:$0xff]  }
 0x206   :  { %7864 = vmatprep.subr.bf16.mxu0 %v8461_v30 }
 0x207   :  { %6068 = vmatmul.mubr.bf16.gmra.mrb[92].mxu1 %v9979_v25 }
 0x208   :  { %5707 = vmatmul.mubr.bf16.gmra.mrb[68].mxu0 %v2221_v51  ;;  %6075 = vmatprep.mubr.bf16.mxu1 %v2729_v15  ;;  %v10045_v51 = vld [vmem:[#allocation2 + $0x80] sm:$0xff]  ;;  %v2230_v15 = vshrl.u32 %v2188_v59, 16  ;;  %v2190_v59 = vsel %vm11311_vm10, %v9904_v37, 0  ;;  %vm11313_vm10 = vcmp.ne.s16.totalorder %v11293_v50, 0 }
 0x209   :  { %5714 = vmatprep.mubr.bf16.mxu0 %v2427_v19  ;;  %7865 = vmatpush3.bf16.msra.mxu0 %v8461_v30  ;;  %v2224_v19 = vor.u32 %v2222_v53, %v2220_v44  ;;  %v2732_v30 = vor.u32 %v2730_v55, %v2728_v33  ;;  %v2627_v39 = vsel %vm11310_vm14, %v10045_v51, 0  ;;  %v2736_v44 = vrot.slane %v2734_v35, 1  ;;  %v8466_v55 = vld [vmem:[#allocation4 + $0x230] sm:$0xff]  }
 0x20a   :  { %7866 = vmatprep.subr.bf16.mxu0 %v8462_v40  ;;  %v2234_v33 = vshll.u32 %v2189_v24, 16  ;;  %v2742_v53 = vshll.u32 %v2627_v39, 16  ;;  %v2232_v43 = vor.u32 %v2230_v15, %v2228_v52  ;;  %v2445_v35 = vshrl.u32 %v2389_v18, 16 }
 0x20b   :  { %v2229_v10 = vsel %vm1489_vm8, %v2224_v19, %v2228_v52  ;;  %v2737_v38 = vsel %vm1489_vm8, %v2732_v30, %v2736_v44  ;;  %v2738_v19 = vshrl.u32 %v2626_v49, 16  ;;  %v8467_v30 = vld [vmem:[#allocation4 + $0x238] sm:$0xff]   ;;  %vm11312_vm14 = vcmp.ne.s16.totalorder %v9777_v46, 0 }
 0x20c   :  { %v2390_v49 = vsel %vm11181_vm2, %v9927_v60, 0  ;;  %vm11315_vm2 = vcmp.ne.s16.totalorder %v9027_v22, 0 }
 0x20d   :  { %7867 = vmatpush3.bf16.msra.mxu0 %v8462_v40  ;;  %v2439_v40 = vrot.slane %v2437_v26, 7  ;;  %v2236_v26 = vrot.slane %v2234_v33, 1  ;;  %v2740_v15 = vor.u32 %v2738_v19, %v2736_v44  ;;  %v2448_v33 = vshll.u32 %v2389_v18, 16  ;;  %v2612_v19 = vld [vmem:[#allocation2 + $0x90] sm:$0x1] }
 0x20e   :  { %7868 = vmatprep.subr.bf16.mxu0 %v8463_v57  ;;  %v2191_v18 = vsel %vm11313_vm10, %v9916_v34, 0  ;;  %vm11316_vm10 = vcmp.ne.s16.totalorder %v9137_v13, 0 }
 0x20f   :  { %6076 = vmatmul.mubr.bf16.gmra.mrb[96].mxu1 %v9999_v32  ;;  %v2442_v48 = vor.u32 %v2440_v4, %v2439_v40  ;;  %v2237_v1 = vsel %vm1489_vm8, %v2232_v43, %v2236_v26  ;;  %v8468_v4 = vld [vmem:[#allocation4 + $0x1f0] sm:$0xff]   ;;  %v2746_v43 = vshrl.u32 %v2627_v39, 16 }
 0x210   :  { %5715 = vmatmul.mubr.bf16.gmra.mrb[72].mxu0 %v2229_v10  ;;  %6083 = vmatprep.mubr.bf16.mxu1 %v2737_v38  ;;  %v10064_v10 = vld [vmem:[#allocation2 + $0x88] sm:$0xff]  ;;  %v2447_v38 = vrot.slane %v2445_v35, 7  ;;  %v2453_v35 = vshrl.u32 %v2390_v49, 16 }
 0x211   :  { %5722 = vmatprep.mubr.bf16.mxu0 %v2435_v6  ;;  %7869 = vmatpush3.bf16.msra.mxu0 %v8463_v57  ;;  %v2744_v57 = vrot.slane %v2742_v53, 1  ;;  %v2242_v6 = vshll.u32 %v2190_v59, 16  ;;  %v2443_v52 = vsel %vm1651_vm11, %v2431_v23, %v2442_v48  ;;  %v2628_v37 = vsel %vm11312_vm14, %v10064_v10, 0 }
 0x212   :  { %7870 = vmatprep.subr.bf16.mxu0 %v8465_v58  ;;  %v2238_v23 = vshrl.u32 %v2189_v24, 16  ;;  %v2450_v53 = vor.u32 %v2448_v33, %v2447_v38  ;;  %v2750_v48 = vshll.u32 %v2628_v37, 16  ;;  %6273 = vmatpush1.bf16.msra.mxu1 %v8468_v4  ;;  %vm11314_vm14 = vcmp.ne.s16.totalorder %v9524_v28, 0 }
 0x213   :  { %v2244_v44 = vrot.slane %v2242_v6, 1  ;;  %6274 = vmatprep.subr.bf16.mxu1 %v9945_v2  ;;  %v2629_v24 = vsel %vm11314_vm14, %v2612_v19, 0  ;;  %v2250_v2 = vshll.u32 %v2191_v18, 16  ;;  %vm11318_vm14 = vcmp.ne.s16.totalorder %v9239_v12, 0 }
 0x214   :  { %v2451_v39 = vsel %vm1651_vm11, %v2439_v40, %v2450_v53  ;;  %v2752_v6 = vrot.slane %v2750_v48, 1  ;;  %v2758_v33 = vshll.u32 %v2629_v24, 16  ;;  %v2754_v53 = vshrl.u32 %v2628_v37, 16 }
 0x215   :  { %7871 = vmatpush3.bf16.msra.mxu0 %v8465_v58  ;;  %v2745_v58 = vsel %vm1489_vm8, %v2740_v15, %v2744_v57  ;;  %v2455_v15 = vrot.slane %v2453_v35, 7  ;;  %v2252_v48 = vrot.slane %v2250_v2, 1  ;;  %v8469_v2 = vld [vmem:[#allocation4 + $0x1f8] sm:$0xff]  }
 0x216   :  { %7872 = vmatprep.subr.bf16.mxu0 %v8466_v55  ;;  %v2756_v35 = vor.u32 %v2754_v53, %v2752_v6  ;;  %v2760_v19 = vrot.slane %v2758_v33, 1  ;;  %v10109_v53 = vld [vmem:[#allocation2 + $0xc0] sm:$0xff]  ;;  %6275 = vmatpush1.bf16.msra.mxu1 %v8469_v2 }
 0x217   :  { %6084 = vmatmul.mubr.bf16.gmra.mrb[100].mxu1 %v10013_v42 }
 0x218   :  { %5723 = vmatmul.mubr.bf16.gmra.mrb[76].mxu0 %v2237_v1  ;;  %6091 = vmatprep.mubr.bf16.mxu1 %v2745_v58  ;;  %v2240_v1 = vor.u32 %v2238_v23, %v2236_v26  ;;  %v10084_v58 = vld [vmem:[#allocation2 + $0xb0] sm:$0xff]  ;;  %v2246_v26 = vshrl.u32 %v2190_v59, 16  ;;  %v2192_v59 = vsel %vm11316_vm10, %v9927_v60, 0  ;;  %vm11319_vm10 = vcmp.ne.s16.totalorder %v9038_v29, 0 }
 0x219   :  { %5730 = vmatprep.mubr.bf16.mxu0 %v2443_v52  ;;  %7873 = vmatpush3.bf16.msra.mxu0 %v8466_v55  ;;  %v2748_v55 = vor.u32 %v2746_v43, %v2744_v57  ;;  %v2391_v57 = vsel %vm11315_vm2, %v9940_v47, 0  ;;  %v3897_v40 = vsel %vm2168_vm9, %v10084_v58, 0  ;;  %vm11317_vm2 = vcmp.ne.s16.totalorder %v9019_v16, 0 }
 0x21a   :  { %7874 = vmatprep.subr.bf16.mxu0 %v8467_v30  ;;  %v2245_v52 = vsel %vm1489_vm8, %v2240_v1, %v2244_v44  ;;  %v2248_v4 = vor.u32 %v2246_v26, %v2244_v44  ;;  %v2461_v43 = vshrl.u32 %v2391_v57, 16  ;;  %v10097_v1 = vld [vmem:[#allocation2 + $0xb8] sm:$0xff]  ;;  %v2258_v44 = vshll.u32 %v2192_v59, 16 }
 0x21b   :  { %v2753_v34 = vsel %vm1489_vm8, %v2748_v55, %v2752_v6  ;;  %v3898_v37 = vsel %vm2169_vm15, %v10097_v1, 0  ;;  %v2392_v60 = vsel %vm11317_vm2, %v9953_v0, 0  ;;  %v2464_v6 = vshll.u32 %v2391_v57, 16 }
 0x21c   :  { %v2253_v55 = vsel %vm1489_vm8, %v2248_v4, %v2252_v48  ;;  %v2463_v24 = vrot.slane %v2461_v43, 7  ;;  %v3915_v33 = vshrl.u32 %v3897_v40, 16  ;;  %v3922_v4 = vshll.u32 %v3898_v37, 16 }
 0x21d   :  { %7875 = vmatpush3.bf16.msra.mxu0 %v8467_v30  ;;  %v2456_v30 = vshll.u32 %v2390_v49, 16  ;;  %v3917_v49 = vshll.u32 %v3897_v40, 16  ;;  %vm11320_vm2 = vcmp.ne.s16.totalorder %v9472_v36, 0 }
 0x21f   :  { %6092 = vmatmul.mubr.bf16.gmra.mrb[104].mxu1 %v10033_v5  ;;  %v2458_v23 = vor.u32 %v2456_v30, %v2455_v15  ;;  %v3919_v26 = vrot.slane %v3917_v49, 1  ;;  %v2466_v30 = vor.u32 %v2464_v6, %v2463_v24  ;;  %v2262_v49 = vshrl.u32 %v2192_v59, 16 }
 0x220   :  { %5731 = vmatmul.mubr.bf16.gmra.mrb[80].mxu0 %v2245_v52  ;;  %6099 = vmatprep.mubr.bf16.mxu1 %v2753_v34  ;;  %v2254_v34 = vshrl.u32 %v2191_v18, 16  ;;  %v3899_v18 = vsel %vm2170_vm13, %v10109_v53, 0 }
 0x221   :  { %5738 = vmatprep.mubr.bf16.mxu0 %v2451_v39  ;;  %v2459_v52 = vsel %vm1651_vm11, %v2447_v38, %v2458_v23  ;;  %v2761_v39 = vsel %vm1489_vm8, %v2756_v35, %v2760_v19  ;;  %v2260_v38 = vrot.slane %v2258_v44, 1  ;;  %v2469_v23 = vshrl.u32 %v2392_v60, 16 }
 0x222   :  { %v2256_v43 = vor.u32 %v2254_v34, %v2252_v48  ;;  %v2467_v40 = vsel %vm1651_vm11, %v2455_v15, %v2466_v30  ;;  %v3924_v35 = vrot.slane %v3922_v4, 1  ;;  %v2393_v48 = vsel %vm11319_vm10, %v9966_v3, 0  ;;  %v10127_v4 = vld [vmem:[#allocation2 + $0xc8] sm:$0xff] }
 0x223   :  { %v2471_v19 = vrot.slane %v2469_v23, 7  ;;  %v3930_v6 = vshll.u32 %v3899_v18, 16  ;;  %v2194_v15 = vsel %vm11320_vm2, %v9953_v0, 0  ;;  %v2477_v34 = vshrl.u32 %v2393_v48, 16 }
 0x224   :  { %v2261_v57 = vsel %vm1489_vm8, %v2256_v43, %v2260_v38  ;;  %v3926_v30 = vshrl.u32 %v3898_v37, 16  ;;  %v2274_v43 = vshll.u32 %v2194_v15, 16  ;;  %vm11322_vm10 = vcmp.ne.s16.totalorder %v11271_v27, 0 }
 0x225   :  { %v2394_v0 = vsel %vm11322_vm10, %v9979_v25, 0  ;;  %vm11323_vm2 = vcmp.ne.s16.totalorder %v11302_v21, 0 }
 0x227   :  { %6100 = vmatmul.mubr.bf16.gmra.mrb[108].mxu1 %v10045_v51 }
 0x228   :  { %5739 = vmatmul.mubr.bf16.gmra.mrb[84].mxu0 %v2253_v55  ;;  %6107 = vmatprep.mubr.bf16.mxu1 %v2761_v39  ;;  %v3920_v55 = vor.u32 %v3919_v26, %v3915_v33  ;;  %v2472_v39 = vshll.u32 %v2392_v60, 16  ;;  %v2264_v26 = vor.u32 %v2262_v49, %v2260_v38  ;;  %v3932_v33 = vrot.slane %v3930_v6, 1  ;;  %v10139_v6 = vld [vmem:[#allocation2 + $0xd0] sm:$0xff] }
 0x229   :  { %5746 = vmatprep.mubr.bf16.mxu0 %v2459_v52  ;;  %v2193_v52 = vsel %vm11318_vm14, %v9940_v47, 0  ;;  %vm11321_vm14 = vcmp.ne.s16.totalorder %v9023_v17, 0 }
 0x22a   :  { %v2266_v44 = vshll.u32 %v2193_v52, 16  ;;  %v3925_v47 = vsel %vm1489_vm8, %v3920_v55, %v3924_v35  ;;  %v2474_v2 = vor.u32 %v2472_v39, %v2471_v19  ;;  %v3928_v55 = vor.u32 %v3926_v30, %v3924_v35 }
 0x22b   :  { %v3900_v38 = vsel %vm11321_vm14, %v10127_v4, 0  ;;  %v2270_v49 = vshrl.u32 %v2193_v52, 16  ;;  %v3934_v35 = vshrl.u32 %v3899_v18, 16  ;;  %v2485_v39 = vshrl.u32 %v2394_v0, 16 }
 0x22c   :  { %v2268_v59 = vrot.slane %v2266_v44, 1  ;;  %v2475_v60 = vsel %vm1651_vm11, %v2463_v24, %v2474_v2  ;;  %v3933_v37 = vsel %vm1489_vm8, %v3928_v55, %v3932_v33  ;;  %v2276_v44 = vrot.slane %v2274_v43, 1 }
 0x22d   :  { %v3936_v2 = vor.u32 %v3934_v35, %v3932_v33  ;;  %vm11324_vm14 = vcmp.ne.s16.totalorder %v11288_v20, 0  ;;  %v2278_v43 = vshrl.u32 %v2194_v15, 16  ;;  %v2488_v55 = vshll.u32 %v2394_v0, 16 }
 0x22e   :  { %v2269_v23 = vsel %vm1489_vm8, %v2264_v26, %v2268_v59  ;;  %v2272_v26 = vor.u32 %v2270_v49, %v2268_v59  ;;  %v11325_v59 = vld [vmem:[#allocation20_spill] sm:$0xff]  ;;  %v3942_v35 = vshrl.u32 %v3900_v38, 16 }
 0x22f   :  { %6108 = vmatmul.mubr.bf16.gmra.mrb[112].mxu1 %v10064_v10  ;;  %vm11326_vm10 = vcmp.ne.s16.totalorder %v11325_v59, 0  ;;  %v10372_v59 = vld [vmem:[#allocation2 + $0x58] sm:$0xff] }
 0x230   :  { %5747 = vmatmul.mubr.bf16.gmra.mrb[88].mxu0 %v2261_v57  ;;  %6115 = vmatprep.mubr.bf16.mxu1 %v3925_v47  ;;  %v2479_v57 = vrot.slane %v2477_v34, 7  ;;  %v3938_v47 = vshll.u32 %v3900_v38, 16  ;;  %v2195_v34 = vsel %vm11323_vm2, %v9966_v3, 0  ;;  %v2277_v30 = vsel %vm1489_vm8, %v2272_v26, %v2276_v44 }
 0x231   :  { %5754 = vmatprep.mubr.bf16.mxu0 %v2467_v40  ;;  %v2480_v40 = vshll.u32 %v2393_v48, 16  ;;  %v3901_v48 = vsel %vm11324_vm14, %v10139_v6, 0  ;;  %v2395_v33 = vsel %vm11326_vm10, %v9999_v32, 0  ;;  %vm11327_vm2 = vcmp.ne.s16.totalorder %v9079_v54, 0 }
 0x232   :  { %v3940_v18 = vrot.slane %v3938_v47, 1  ;;  %v2396_v38 = vsel %vm1630_vm1, %v10013_v42, 0  ;;  %vm11329_vm14 = vcmp.ne.s16.totalorder %v9511_v7, 0  ;;  %vm11330_vm10 = vcmp.ne.s16.totalorder %v11293_v50, 0 }
 0x233   :  { %v2482_v24 = vor.u32 %v2480_v40, %v2479_v57  ;;  %v2280_v40 = vor.u32 %v2278_v43, %v2276_v44 }
 0x234   :  { %v3941_v3 = vsel %vm1489_vm8, %v3936_v2, %v3940_v18  ;;  %v3944_v2 = vor.u32 %v3942_v35, %v3940_v18  ;;  %v3950_v18 = vshrl.u32 %v3901_v48, 16 }
 0x235   :  { %v2483_v52 = vsel %vm1651_vm11, %v2471_v19, %v2482_v24  ;;  %v2196_v19 = vsel %vm2179_vm7, %v9979_v25, 0  ;;  %v2493_v24 = vshrl.u32 %v2395_v33, 16 }
 0x237   :  { %6116 = vmatmul.mubr.bf16.gmra.mrb[116].mxu1 %v10084_v58 }
 0x238   :  { %5755 = vmatmul.mubr.bf16.gmra.mrb[92].mxu0 %v2269_v23  ;;  %6123 = vmatprep.mubr.bf16.mxu1 %v3933_v37  ;;  %v2487_v23 = vrot.slane %v2485_v39, 7  ;;  %v3946_v37 = vshll.u32 %v3901_v48, 16  ;;  %v10157_v39 = vld [vmem:[#allocation2 + $0xd8] sm:$0xff] }
 0x239   :  { %5762 = vmatprep.mubr.bf16.mxu0 %v2475_v60  ;;  %v2282_v60 = vshll.u32 %v2195_v34, 16  ;;  %v3902_v44 = vsel %vm11327_vm2, %v10157_v39, 0  ;;  %vm11332_vm2 = vcmp.ne.s16.totalorder %v9514_v61, 0 }
 0x23a   :  { %v2490_v49 = vor.u32 %v2488_v55, %v2487_v23  ;;  %v3948_v47 = vrot.slane %v3946_v37, 1  ;;  %v3954_v37 = vshll.u32 %v3902_v44, 16 }
 0x23b   :  { %v2284_v15 = vrot.slane %v2282_v60, 1  ;;  %v2496_v60 = vshll.u32 %v2395_v33, 16 }
 0x23c   :  { %v2491_v0 = vsel %vm1651_vm11, %v2479_v57, %v2490_v49  ;;  %v3949_v43 = vsel %vm1489_vm8, %v3944_v2, %v3948_v47  ;;  %v10169_v49 = vld [vmem:[#allocation2 + $0xe0] sm:$0xff]  ;;  %v3952_v35 = vor.u32 %v3950_v18, %v3948_v47  ;;  %v3956_v48 = vrot.slane %v3954_v37, 1 }
 0x23d   :  { %v2285_v26 = vsel %vm1489_vm8, %v2280_v40, %v2284_v15  ;;  %v2501_v40 = vshrl.u32 %v2396_v38, 16  ;;  %v3903_v33 = vsel %vm11330_vm10, %v10169_v49, 0  ;;  %v2397_v47 = vsel %vm1631_vm5, %v10033_v5, 0 }
 0x23e   :  { %v3958_v37 = vshrl.u32 %v3902_v44, 16  ;;  %v2398_v44 = vsel %vm1632_vm0, %v10045_v51, 0  ;;  %vm11335_vm10 = vcmp.ne.s16.totalorder %v9522_v62, 0 }
 0x23f   :  { %6124 = vmatmul.mubr.bf16.gmra.mrb[120].mxu1 %v10097_v1 }
 0x240   :  { %5763 = vmatmul.mubr.bf16.gmra.mrb[96].mxu0 %v2277_v30  ;;  %6131 = vmatprep.mubr.bf16.mxu1 %v3941_v3  ;;  %v2290_v30 = vshll.u32 %v2196_v19, 16  ;;  %v2286_v3 = vshrl.u32 %v2195_v34, 16 }
 0x241   :  { %5770 = vmatprep.mubr.bf16.mxu0 %v2483_v52  ;;  %v2495_v52 = vrot.slane %v2493_v24, 7 }
 0x242   :  { %v2292_v55 = vrot.slane %v2290_v30, 1  ;;  %v2288_v24 = vor.u32 %v2286_v3, %v2284_v15  ;;  %v2503_v30 = vrot.slane %v2501_v40, 7  ;;  %v3896_v15 = vld [vmem:[#allocation2 + $0x130] sm:$0x1] }
 0x243   :  { %v2498_v57 = vor.u32 %v2496_v60, %v2495_v52  ;;  %v3962_v60 = vshll.u32 %v3903_v33, 16 }
 0x245   :  { %v2499_v34 = vsel %vm1651_vm11, %v2487_v23, %v2498_v57  ;;  %v2198_v23 = vsel %vm11332_vm2, %v10013_v42, 0  ;;  %v2509_v57 = vshrl.u32 %v2397_v47, 16  ;;  %v3964_v40 = vrot.slane %v3962_v60, 1 }
 0x246   :  { %vm11336_vm2 = vcmp.ne.s16.totalorder %v9239_v12, 0 }
 0x247   :  { %6132 = vmatmul.mubr.bf16.gmra.mrb[124].mxu1 %v10109_v53  ;;  %v2293_v53 = vsel %vm1489_vm8, %v2288_v24, %v2292_v55  ;;  %v10187_v24 = vld [vmem:[#allocation2 + $0xe8] sm:$0xff] }
 0x248   :  { %5771 = vmatmul.mubr.bf16.gmra.mrb[100].mxu0 %v2285_v26  ;;  %6139 = vmatprep.mubr.bf16.mxu1 %v3949_v43  ;;  %v2197_v26 = vsel %vm11329_vm14, %v9999_v32, 0  ;;  %v3957_v32 = vsel %vm1489_vm8, %v3952_v35, %v3956_v48  ;;  %v2504_v43 = vshll.u32 %v2396_v38, 16  ;;  %v3960_v35 = vor.u32 %v3958_v37, %v3956_v48 }
 0x249   :  { %5778 = vmatprep.mubr.bf16.mxu0 %v2491_v0  ;;  %v2294_v0 = vshrl.u32 %v2196_v19, 16  ;;  %v2298_v2 = vshll.u32 %v2197_v26, 16  ;;  %vm11333_vm14 = vcmp.ne.s16.totalorder %v9137_v13, 0 }
 0x24a   :  { %v2506_v18 = vor.u32 %v2504_v43, %v2503_v30  ;;  %v2302_v43 = vshrl.u32 %v2197_v26, 16 }
 0x24b   :  { %v2296_v3 = vor.u32 %v2294_v0, %v2292_v55  ;;  %v2300_v19 = vrot.slane %v2298_v2, 1  ;;  %v3904_v55 = vsel %vm11333_vm14, %v10187_v24, 0  ;;  %v3965_v0 = vsel %vm1489_vm8, %v3960_v35, %v3964_v40 }
 0x24c   :  { %v2507_v38 = vsel %vm1651_vm11, %v2495_v52, %v2506_v18  ;;  %v2512_v2 = vshll.u32 %v2397_v47, 16  ;;  %v3970_v60 = vshll.u32 %v3904_v55, 16  ;;  %v10199_v18 = vld [vmem:[#allocation2 + $0xf0] sm:$0xff]  ;;  %vm11338_vm14 = vcmp.ne.s16.totalorder %v9777_v46, 0 }
 0x24e   :  { %v3972_v47 = vrot.slane %v3970_v60, 1 }
 0x24f   :  { %6140 = vmatmul.mubr.bf16.gmra.mrb[0].mxu1 %v10127_v4  ;;  %v2306_v4 = vshll.u32 %v2198_v23, 16 }
 0x250   :  { %5779 = vmatmul.mubr.bf16.gmra.mrb[104].mxu0 %v2293_v53  ;;  %6147 = vmatprep.mubr.bf16.mxu1 %v3957_v32  ;;  %v2301_v53 = vsel %vm1489_vm8, %v2296_v3, %v2300_v19  ;;  %v3966_v32 = vshrl.u32 %v3903_v33, 16  ;;  %v2517_v3 = vshrl.u32 %v2398_v44, 16  ;;  %v3905_v33 = vsel %vm11336_vm2, %v10199_v18, 0 }
 0x251   :  { %5786 = vmatprep.mubr.bf16.mxu0 %v2499_v34  ;;  %v2511_v34 = vrot.slane %v2509_v57, 7  ;;  %v2308_v52 = vrot.slane %v2306_v4, 1  ;;  %v2304_v57 = vor.u32 %v2302_v43, %v2300_v19  ;;  %v11344_v19 = vld [vmem:[#allocation11_spill] sm:$0xff] }
 0x252   :  { %v3968_v37 = vor.u32 %v3966_v32, %v3964_v40  ;;  %v2519_v4 = vrot.slane %v2517_v3, 7  ;;  %v2399_v40 = vsel %vm1633_vm6, %v10064_v10, 0  ;;  %v10217_v3 = vld [vmem:[#allocation2 + $0xf8] sm:$0xff] }
 0x253   :  { %v2514_v48 = vor.u32 %v2512_v2, %v2511_v34  ;;  %v3978_v2 = vshll.u32 %v3905_v33, 16 }
 0x255   :  { %v2515_v26 = vsel %vm1651_vm11, %v2503_v30, %v2514_v48  ;;  %v2200_v30 = vsel %vm11338_vm14, %v10045_v51, 0  ;;  %v3980_v60 = vrot.slane %v3978_v2, 1  ;;  %v11340_v51 = vld [vmem:[#allocation12_spill] sm:$0xff]  ;;  %v1864_v2 = vld [vmem:[#allocation2 + $0x88] sm:$0x1]  ;;  %vm11345_vm14 = vcmp.ne.s16.totalorder %v11344_v19, 0 }
 0x256   :  { %vm11341_vm2 = vcmp.ne.s16.totalorder %v11340_v51, 0 }
 0x257   :  { %6148 = vmatmul.mubr.bf16.gmra.mrb[4].mxu1 %v10139_v6  ;;  %v2309_v6 = vsel %vm1489_vm8, %v2304_v57, %v2308_v52  ;;  %v3974_v57 = vshrl.u32 %v3904_v55, 16 }
 0x258   :  { %5787 = vmatmul.mubr.bf16.gmra.mrb[108].mxu0 %v2301_v53  ;;  %6155 = vmatprep.mubr.bf16.mxu1 %v3965_v0  ;;  %v2199_v53 = vsel %vm11335_vm10, %v10033_v5, 0  ;;  %v3973_v5 = vsel %vm1489_vm8, %v3968_v37, %v3972_v47  ;;  %v2520_v0 = vshll.u32 %v2398_v44, 16  ;;  %vm11339_vm10 = vcmp.ne.s16.totalorder %v9472_v36, 0 }
 0x259   :  { %5794 = vmatprep.mubr.bf16.mxu0 %v2507_v38  ;;  %v2310_v38 = vshrl.u32 %v2198_v23, 16  ;;  %v2314_v35 = vshll.u32 %v2199_v53, 16  ;;  %v2525_v23 = vshrl.u32 %v2399_v40, 16  ;;  %v3976_v37 = vor.u32 %v3974_v57, %v3972_v47 }
 0x25a   :  { %v2522_v43 = vor.u32 %v2520_v0, %v2519_v4  ;;  %v3906_v55 = vsel %vm11339_vm10, %v10217_v3, 0  ;;  %v2318_v47 = vshrl.u32 %v2199_v53, 16  ;;  %vm11346_vm10 = vcmp.ne.s16.totalorder %v9524_v28, 0 }
 0x25b   :  { %v2312_v32 = vor.u32 %v2310_v38, %v2308_v52  ;;  %v2316_v48 = vrot.slane %v2314_v35, 1  ;;  %v3668_v52 = vsel %vm11341_vm2, %v10084_v58, 0  ;;  %v2528_v38 = vshll.u32 %v2399_v40, 16 }
 0x25c   :  { %v2523_v44 = vsel %vm1651_vm11, %v2511_v34, %v2522_v43  ;;  %v3982_v35 = vshrl.u32 %v3905_v33, 16  ;;  %v3986_v57 = vshll.u32 %v3906_v55, 16  ;;  %vm11347_vm2 = vcmp.ne.s16.totalorder %v11302_v21, 0 }
 0x25d   :  { %v2317_v10 = vsel %vm1489_vm8, %v2312_v32, %v2316_v48 }
 0x25f   :  { %6156 = vmatmul.mubr.bf16.gmra.mrb[8].mxu1 %v10157_v39  ;;  %v2322_v39 = vshll.u32 %v2200_v30, 16 }
 0x260   :  { %5795 = vmatmul.mubr.bf16.gmra.mrb[112].mxu0 %v2309_v6  ;;  %6163 = vmatprep.mubr.bf16.mxu1 %v3973_v5  ;;  %v2527_v6 = vrot.slane %v2525_v23, 7  ;;  %v3650_v5 = vld [vmem:[#allocation2 + $0xa8] sm:$0x80]  ;;  %v3689_v23 = vshrl.u32 %v3668_v52, 16 }
 0x261   :  { %5802 = vmatprep.mubr.bf16.mxu0 %v2515_v26  ;;  %v3981_v26 = vsel %vm1489_vm8, %v3976_v37, %v3980_v60  ;;  %v2324_v0 = vrot.slane %v2322_v39, 1  ;;  %v3667_v40 = vsel %vm11345_vm14, %v3650_v5, 0  ;;  %v3984_v37 = vor.u32 %v3982_v35, %v3980_v60  ;;  %v11348_v60 = vld [vmem:[#allocation14_spill] sm:$0xff] }
 0x262   :  { %v2530_v43 = vor.u32 %v2528_v38, %v2527_v6  ;;  %v3988_v38 = vrot.slane %v3986_v57, 1  ;;  %vm11349_vm14 = vcmp.ne.s16.totalorder %v11348_v60, 0 }
 0x263   :  { %v3669_v35 = vsel %vm11349_vm14, %v10097_v1, 0  ;;  %vm11362_vm14 = vcmp.ne.s16.totalorder %v9023_v17, 0 }
 0x264   :  { %v2531_v6 = vsel %vm1651_vm11, %v2519_v4, %v2530_v43 }
 0x267   :  { %6164 = vmatmul.mubr.bf16.gmra.mrb[12].mxu1 %v10169_v49  ;;  %v2320_v49 = vor.u32 %v2318_v47, %v2316_v48  ;;  %v3691_v48 = vrot.slane %v3689_v23, 7  ;;  %v2326_v47 = vshrl.u32 %v2200_v30, 16  ;;  %v3470_v30 = vsel %vm2169_vm15, %v10084_v58, 0 }
 0x268   :  { %5803 = vmatmul.mubr.bf16.gmra.mrb[116].mxu0 %v2317_v10  ;;  %6171 = vmatprep.mubr.bf16.mxu1 %v3981_v26  ;;  %v10231_v10 = vld [vmem:[#allocation2 + $0x100] sm:$0xff]  ;;  %v2201_v26 = vsel %vm11346_vm10, %v1864_v2, 0  ;;  %v3989_v2 = vsel %vm1489_vm8, %v3984_v37, %v3988_v38  ;;  %vm11354_vm10 = vcmp.ne.s16.totalorder %v9511_v7, 0 }
 0x269   :  { %5810 = vmatprep.mubr.bf16.mxu0 %v2523_v44  ;;  %v2325_v53 = vsel %vm1489_vm8, %v2320_v49, %v2324_v0  ;;  %v3907_v39 = vsel %vm11347_vm2, %v10231_v10, 0  ;;  %v2330_v5 = vshll.u32 %v2201_v26, 16  ;;  %v3692_v49 = vshll.u32 %v3668_v52, 16 }
 0x26a   :  { %v2328_v4 = vor.u32 %v2326_v47, %v2324_v0  ;;  %vm11359_vm2 = vcmp.ne.s16.totalorder %v9514_v61, 0 }
 0x26b   :  { %v10229_v34 = vpop.f32.mrb[140].mxu0  ;;  %v3694_v23 = vor.u32 %v3692_v49, %v3691_v48 }
 0x26c   :  { %11342 = vst [vmem:[#allocation10_spill] sm:$0xff] %v10229_v34  ;;  %v5565_v32 = vpop.f32.mrb[141].mxu0 }
 0x26d   :  { %v10233_v44 = vpop.f32.mrb[142].mxu0  ;;  %v3685_v32 = vshrl.u32 %v3667_v40, 16  ;;  %v3697_v40 = vshrl.u32 %v3669_v35, 16 }
 0x26e   :  { %11343 = vst [vmem:[#allocation13_spill] sm:$0xff] %v10233_v44  ;;  %v5568_v33 = vpop.f32.mrb[143].mxu0  ;;  %v3994_v44 = vshll.u32 %v3907_v39, 16 }
 0x26f   :  { %6172 = vmatmul.mubr.bf16.gmra.mrb[16].mxu1 %v10187_v24  ;;  %v3990_v33 = vshrl.u32 %v3906_v55, 16  ;;  %v3687_v57 = vrot.slane %v3685_v32, 7  ;;  %v2332_v24 = vrot.slane %v2330_v5, 1  ;;  %v10256_v55 = vld [vmem:[#allocation2 + $0x108] sm:$0xff]  ;;  %v3699_v32 = vrot.slane %v3697_v40, 7 }
 0x270   :  { %5811 = vmatmul.mubr.bf16.gmra.mrb[120].mxu0 %v2325_v53  ;;  %6179 = vmatprep.mubr.bf16.mxu1 %v3989_v2  ;;  %v3996_v52 = vrot.slane %v3994_v44, 1  ;;  %v3908_v58 = vsel %vm2179_vm7, %v10256_v55, 0  ;;  %v3998_v44 = vshrl.u32 %v3907_v39, 16 }
 0x271   :  { %5818 = vmatprep.mubr.bf16.mxu0 %v2531_v6  ;;  %v3992_v37 = vor.u32 %v3990_v33, %v3988_v38  ;;  %v2333_v2 = vsel %vm1489_vm8, %v2328_v4, %v2332_v24  ;;  %v3695_v0 = vsel %vm1651_vm11, %v3687_v57, %v3694_v23  ;;  %v3700_v38 = vshll.u32 %v3669_v35, 16  ;;  %v10267_v57 = vld [vmem:[#allocation2 + $0x110] sm:$0xff] }
 0x272   :  { %v4000_v24 = vor.u32 %v3998_v44, %v3996_v52  ;;  %v3909_v35 = vsel %vm11354_vm10, %v10267_v57, 0  ;;  %v10285_v44 = vld [vmem:[#allocation2 + $0x20] sm:$0xff]  ;;  %vm11364_vm10 = vcmp.ne.s16.totalorder %v9522_v62, 0 }
 0x273   :  { %v10249_v53 = vpop.f32.mrb[144].mxu0  ;;  %v3997_v47 = vsel %vm1489_vm8, %v3992_v37, %v3996_v52  ;;  %v3702_v4 = vor.u32 %v3700_v38, %v3699_v32  ;;  %v10280_v37 = vld [vmem:[#allocation2 + $0x18] sm:$0xff]  ;;  %v4010_v38 = vshll.u32 %v3909_v35, 16 }
 0x274   :  { %11350 = vst [vmem:[#allocation17_spill] sm:$0xff] %v10249_v53  ;;  %v5573_v43 = vpop.f32.mrb[145].mxu0  ;;  %v3494_v53 = vshll.u32 %v3470_v30, 16 }
 0x275   :  { %v10254_v26 = vpop.f32.mrb[146].mxu0  ;;  %v4002_v43 = vshll.u32 %v3908_v58, 16 }
 0x276   :  { %11351 = vst [vmem:[#allocation19_spill] sm:$0xff] %v10254_v26  ;;  %v5576_v6 = vpop.f32.mrb[147].mxu0  ;;  %v3496_v49 = vrot.slane %v3494_v53, 1  ;;  %v3703_v53 = vsel %vm1651_vm11, %v3691_v48, %v3702_v4  ;;  %v3041_v4 = vsel %vm2168_vm9, %v10280_v37, 0 }
 0x277   :  { %6180 = vmatmul.mubr.bf16.gmra.mrb[20].mxu1 %v10199_v18  ;;  %v3471_v18 = vsel %vm2170_vm13, %v10097_v1, 0  ;;  %v4004_v6 = vrot.slane %v4002_v43, 1  ;;  %v11357_v43 = vld [vmem:[#allocation27_spill] sm:$0xff] }
 0x278   :  { %5819 = vmatmul.mubr.bf16.gmra.mrb[124].mxu0 %v2333_v2  ;;  %6187 = vmatprep.mubr.bf16.mxu1 %v3997_v47  ;;  %v3497_v39 = vsel %vm1489_vm8, %v10011_v63, %v3496_v49  ;;  %v3498_v2 = vshrl.u32 %v3470_v30, 16  ;;  %v3502_v52 = vshll.u32 %v3471_v18, 16  ;;  %v4006_v63 = vshrl.u32 %v3908_v58, 16 }
 0x279   :  { %5826 = vmatprep.mubr.bf16.mxu0 %v3695_v0  ;;  %v11355_v0 = vld [vmem:[#allocation26_spill] sm:$0xff]  ;;  %v4005_v1 = vsel %vm1489_vm8, %v4000_v24, %v4004_v6  ;;  %v3042_v58 = vsel %vm2169_vm15, %v10285_v44, 0 }
 0x27a   :  { %v3708_v47 = vshll.u32 %v11355_v0, 16  ;;  %v3500_v48 = vor.u32 %v3498_v2, %v3496_v49  ;;  %v4012_v0 = vrot.slane %v4010_v38, 1  ;;  %v4014_v38 = vshrl.u32 %v3909_v35, 16 }
 0x27b   :  { %v10265_v5 = vpop.f32.mrb[148].mxu0  ;;  %v3070_v26 = vshrl.u32 %v3042_v58, 16 }
 0x27c   :  { %11352 = vst [vmem:[#allocation24_spill] sm:$0xff] %v10265_v5  ;;  %v5581_v33 = vpop.f32.mrb[149].mxu0  ;;  %v10329_v5 = vld [vmem:[#allocation2 + $0x38] sm:$0xff] }
 0x27d   :  { %v10269_v23 = vpop.f32.mrb[150].mxu0 }
 0x27e   :  { %11353 = vst [vmem:[#allocation29_spill] sm:$0xff] %v10269_v23  ;;  %v5584_v40 = vpop.f32.mrb[151].mxu0  ;;  %v10316_v23 = vld [vmem:[#allocation2 + $0x120] sm:$0xff] }
 0x27f   :  { %6188 = vmatmul.mubr.bf16.gmra.mrb[24].mxu1 %v10217_v3  ;;  %v3710_v40 = vor.u32 %v3708_v47, %v11357_v43  ;;  %v3504_v3 = vrot.slane %v3502_v52, 1  ;;  %v10302_v47 = vld [vmem:[#allocation2 + $0x28] sm:$0xff]  ;;  %v3506_v52 = vshrl.u32 %v3471_v18, 16 }
 0x280   :  { %5827 = vmatmul.mubr.bf16.gmra.mrb[128].mxu0 %v3497_v39  ;;  %6195 = vmatprep.mubr.bf16.mxu1 %v4005_v1  ;;  %v3061_v1 = vshll.u32 %v3041_v4, 16  ;;  %v3043_v18 = vsel %vm2170_vm13, %v10302_v47, 0 }
 0x281   :  { %5834 = vmatprep.mubr.bf16.mxu0 %v3703_v53  ;;  %v4008_v53 = vor.u32 %v4006_v63, %v4004_v6  ;;  %v3505_v49 = vsel %vm1489_vm8, %v3500_v48, %v3504_v3  ;;  %v3711_v2 = vsel %vm1651_vm11, %v3699_v32, %v3710_v40  ;;  %v3508_v32 = vor.u32 %v3506_v52, %v3504_v3  ;;  %v11363_v52 = vld [vmem:[#allocation28_spill] sm:$0xff] }
 0x282   :  { %v3063_v63 = vrot.slane %v3061_v1, 1  ;;  %v3074_v3 = vshll.u32 %v3043_v18, 16 }
 0x283   :  { %v10287_v33 = vpop.f32.mrb[152].mxu0  ;;  %v4013_v6 = vsel %vm1489_vm8, %v4008_v53, %v4012_v0 }
 0x284   :  { %11356 = vst [vmem:[#allocation26_spill] sm:$0xff] %v10287_v33  ;;  %v5589_v30 = vpop.f32.mrb[153].mxu0  ;;  %v10298_v33 = vld [vmem:[#allocation2 + $0x118] sm:$0xff] }
 0x285   :  { %v10293_v39 = vpop.f32.mrb[154].mxu0  ;;  %v3066_v30 = vshll.u32 %v3042_v58, 16  ;;  %v3910_v43 = vsel %vm11359_vm2, %v10298_v33, 0  ;;  %vm11366_vm2 = vcmp.ne.s16.totalorder %v11288_v20, 0  ;;  %v3078_v58 = vshrl.u32 %v3043_v18, 16 }
 0x286   :  { %11358 = vst [vmem:[#allocation27_spill] sm:$0xff] %v10293_v39  ;;  %v5592_v24 = vpop.f32.mrb[155].mxu0  ;;  %v4018_v39 = vshll.u32 %v3910_v43, 16 }
 0x287   :  { %6196 = vmatmul.mubr.bf16.gmra.mrb[28].mxu1 %v10231_v10  ;;  %v10309_v24 = vld [vmem:[#allocation2 + $0x30] sm:$0xff] }
 0x288   :  { %5835 = vmatmul.mubr.bf16.gmra.mrb[132].mxu0 %v3505_v49  ;;  %6203 = vmatprep.mubr.bf16.mxu1 %v4013_v6  ;;  %v3059_v49 = vshrl.u32 %v3041_v4, 16  ;;  %v3044_v35 = vsel %vm11362_vm14, %v10309_v24, 0  ;;  %v4016_v6 = vor.u32 %v4014_v38, %v4012_v0  ;;  %v3911_v4 = vsel %vm11364_vm10, %v10316_v23, 0 }
 0x289   :  { %5842 = vmatprep.mubr.bf16.mxu0 %v3711_v2  ;;  %v3068_v2 = vrot.slane %v3066_v30, 1  ;;  %v4022_v38 = vshrl.u32 %v3910_v43, 16  ;;  %vm11368_vm14 = vcmp.ne.s16.totalorder %v9079_v54, 0  ;;  %vm11369_vm10 = vcmp.ne.s16.totalorder %v9777_v46, 0 }
 0x28a   :  { %v3064_v1 = vor.u32 %v3063_v63, %v3059_v49  ;;  %v3076_v63 = vrot.slane %v3074_v3, 1  ;;  %v10333_v49 = vld [vmem:[#allocation2 + $0x40] sm:$0xff] }
 0x28b   :  { %v10311_v48 = vpop.f32.mrb[156].mxu0  ;;  %v3046_v43 = vsel %vm11368_vm14, %v10333_v49, 0  ;;  %vm11373_vm14 = vcmp.ne.s16.totalorder %v9137_v13, 0 }
 0x28c   :  { %11360 = vst [vmem:[#allocation30_spill] sm:$0xff] %v10311_v48  ;;  %v5597_v40 = vpop.f32.mrb[157].mxu0  ;;  %v3513_v48 = vsel %vm1489_vm8, %v3508_v32, %v11363_v52  ;;  %v3069_v30 = vsel %vm1489_vm8, %v3064_v1, %v3068_v2  ;;  %v4026_v32 = vshll.u32 %v3911_v4, 16  ;;  %v3080_v3 = vor.u32 %v3078_v58, %v3076_v63  ;;  %v10356_v58 = vld [vmem:[#allocation2 + $0x50] sm:$0xff] }
 0x28d   :  { %v10318_v10 = vpop.f32.mrb[158].mxu0  ;;  %v4020_v40 = vrot.slane %v4018_v39, 1  ;;  %v3045_v39 = vsel %vm11366_vm2, %v10329_v5, 0  ;;  %v3098_v18 = vshll.u32 %v3046_v43, 16  ;;  %vm11371_vm2 = vcmp.ne.s16.totalorder %v11293_v50, 0 }
 0x28e   :  { %11361 = vst [vmem:[#allocation31_spill] sm:$0xff] %v10318_v10  ;;  %v5600_v53 = vpop.f32.mrb[159].mxu0  ;;  %v3082_v10 = vshll.u32 %v3044_v35, 16 }
 0x28f   :  { %6204 = vmatmul.mubr.bf16.gmra.mrb[32].mxu1 %v10256_v55  ;;  %v4021_v0 = vsel %vm1489_vm8, %v4016_v6, %v4020_v40  ;;  %v3072_v53 = vor.u32 %v3070_v26, %v3068_v2  ;;  %v4024_v34 = vor.u32 %v4022_v38, %v4020_v40  ;;  %v4028_v26 = vrot.slane %v4026_v32, 1 }
 0x290   :  { %5843 = vmatmul.mubr.bf16.gmra.mrb[136].mxu0 %v3513_v48  ;;  %6211 = vmatprep.mubr.bf16.mxu1 %v4021_v0  ;;  %v3084_v52 = vrot.slane %v3082_v10, 1  ;;  %v3090_v2 = vshll.u32 %v3045_v39, 16  ;;  %v10345_v0 = vld [vmem:[#allocation2 + $0x128] sm:$0xff]  ;;  %v4030_v32 = vshrl.u32 %v3911_v4, 16 }
 0x291   :  { %7876 = vmatprep.mubr.bf16.mxu0 %v3069_v30  ;;  %v10349_v10 = vld [vmem:[#allocation2 + $0x48] sm:$0xff]  ;;  %v4029_v40 = vsel %vm1489_vm8, %v4024_v34, %v4028_v26  ;;  %v3048_v34 = vsel %vm11373_vm14, %v10356_v58, 0  ;;  %vm11378_vm14 = vcmp.ne.s16.totalorder %v9472_v36, 0 }
 0x292   :  { %v3092_v38 = vrot.slane %v3090_v2, 1 }
 0x293   :  { %v10335_v48 = vpop.f32.mrb[160].mxu0 }
 0x294   :  { %11365 = vst [vmem:[#allocation28_spill] sm:$0xff] %v10335_v48  ;;  %v5605_v1 = vpop.f32.mrb[161].mxu0  ;;  %v3077_v48 = vsel %vm1489_vm8, %v3072_v53, %v3076_v63 }
 0x295   :  { %v10340_v30 = vpop.f32.mrb[162].mxu0  ;;  %v3085_v1 = vsel %vm1489_vm8, %v3080_v3, %v3084_v52  ;;  %v3094_v3 = vshrl.u32 %v3045_v39, 16 }
 0x296   :  { %11367 = vst [vmem:[#allocation32_spill] sm:$0xff] %v10340_v30  ;;  %v5608_v6 = vpop.f32.mrb[163].mxu0  ;;  %v3086_v30 = vshrl.u32 %v3044_v35, 16  ;;  %v3047_v35 = vsel %vm11371_vm2, %v10349_v10, 0  ;;  %vm11376_vm2 = vcmp.ne.s16.totalorder %v9239_v12, 0 }
 0x297   :  { %v3912_v6 = vsel %vm11369_vm10, %v10345_v0, 0  ;;  %6212 = vmatmul.mubr.bf16.gmra.mrb[36].mxu1 %v10267_v57  ;;  %v3096_v2 = vor.u32 %v3094_v3, %v3092_v38  ;;  %vm11374_vm10 = vcmp.ne.s16.totalorder %v9524_v28, 0 }
 0x298   :  { %7877 = vmatmul.mubr.bf16.vlgmr.msra.gmra.mrb[192].mxu0 %v3077_v48  ;;  %6219 = vmatprep.mubr.bf16.mxu1 %v4029_v40  ;;  %v3088_v53 = vor.u32 %v3086_v30, %v3084_v52  ;;  %v4034_v42 = vshll.u32 %v3912_v6, 16  ;;  %v4032_v40 = vor.u32 %v4030_v32, %v4028_v26  ;;  %v3913_v30 = vsel %vm11374_vm10, %v3896_v15, 0 }
 0x299   :  { %7880 = vmatprep.mubr.bf16.mxu0 %v3085_v1  ;;  %v3100_v1 = vrot.slane %v3098_v18, 1  ;;  %v4038_v32 = vshrl.u32 %v3912_v6, 16  ;;  %vm11379_vm10 = vcmp.ne.s16.totalorder %v11340_v51, 0 }
 0x29a   :  { %v3093_v52 = vsel %vm1489_vm8, %v3088_v53, %v3092_v38  ;;  %v4036_v18 = vrot.slane %v4034_v42, 1  ;;  %v10376_v38 = vld [vmem:[#allocation2 + $0x60] sm:$0xff]  ;;  %v3049_v42 = vsel %vm11376_vm2, %v10372_v59, 0  ;;  %vm11382_vm2 = vcmp.ne.s16.totalorder %v11302_v21, 0 }
 0x29b   :  { %v10358_v63 = vpop.f32.mrb[164].mxu0  ;;  %v3101_v39 = vsel %vm1489_vm8, %v3096_v2, %v3100_v1  ;;  %v3050_v6 = vsel %vm11378_vm14, %v10376_v38, 0  ;;  %v3122_v27 = vshll.u32 %v3049_v42, 16  ;;  %vm11384_vm14 = vcmp.ne.s16.totalorder %v11344_v19, 0 }
 0x29c   :  { %11370 = vst [vmem:[#allocation33_spill] sm:$0xff] %v10358_v63  ;;  %v5613_v48 = vpop.f32.mrb[165].mxu0  ;;  %v3106_v63 = vshll.u32 %v3047_v35, 16  ;;  %v4037_v3 = vsel %vm1489_vm8, %v4032_v40, %v4036_v18 }
 0x29d   :  { %v10363_v25 = vpop.f32.mrb[166].mxu0  ;;  %v3114_v48 = vshll.u32 %v3048_v34, 16 }
 0x29e   :  { %11372 = vst [vmem:[#allocation34_spill] sm:$0xff] %v10363_v25  ;;  %v5616_v4 = vpop.f32.mrb[167].mxu0  ;;  %v3102_v25 = vshrl.u32 %v3046_v43, 16  ;;  %v3108_v26 = vrot.slane %v3106_v63, 1 }
 0x29f   :  { %6220 = vmatmul.mubr.bf16.gmra.mrb[40].mxu1 %v10298_v33  ;;  %v4042_v4 = vshll.u32 %v3913_v30, 16  ;;  %v3116_v43 = vrot.slane %v3114_v48, 1  ;;  %v4040_v30 = vor.u32 %v4038_v32, %v4036_v18  ;;  %v2812_v18 = vsel %vm11379_vm10, %v10280_v37, 0  ;;  %v10397_v32 = vld [vmem:[#allocation2 + $0x70] sm:$0xff] }
 0x2a0   :  { %7881 = vmatmul.mubr.bf16.gmra.mrb[196].mxu0 %v3093_v52  ;;  %6227 = vmatprep.mubr.bf16.mxu1 %v4037_v3  ;;  %v3104_v53 = vor.u32 %v3102_v25, %v3100_v1  ;;  %v3110_v52 = vshrl.u32 %v3047_v35, 16  ;;  %v3118_v35 = vshrl.u32 %v3048_v34, 16  ;;  %11380 = vst [vmem:[#allocation37_spill] sm:$0xff] %v10397_v32  ;;  %v2794_v34 = vld [vmem:[#allocation2 + $0x10] sm:$0x80]  ;;  %vm11385_vm10 = vcmp.ne.s16.totalorder %v11348_v60, 0 }
 0x2a1   :  { %7884 = vmatprep.mubr.bf16.mxu0 %v3101_v39  ;;  %v4044_v3 = vrot.slane %v4042_v4, 1 }
 0x2a2   :  { %v3112_v40 = vor.u32 %v3110_v52, %v3108_v26  ;;  %v3109_v25 = vsel %vm1489_vm8, %v3104_v53, %v3108_v26  ;;  %v3120_v4 = vor.u32 %v3118_v35, %v3116_v43 }
 0x2a3   :  { %v10378_v15 = vpop.f32.mrb[168].mxu0  ;;  %v4045_v48 = vsel %vm1489_vm8, %v4040_v30, %v4044_v3  ;;  %v3052_v3 = vsel %vm2179_vm7, %v10397_v32, 0 }
 0x2a4   :  { %11375 = vst [vmem:[#allocation35_spill] sm:$0xff] %v10378_v15  ;;  %v5621_v2 = vpop.f32.mrb[169].mxu0  ;;  %v3117_v1 = vsel %vm1489_vm8, %v3112_v40, %v3116_v43  ;;  %v3130_v15 = vshll.u32 %v3050_v6, 16  ;;  %v2811_v43 = vsel %vm11384_vm14, %v2794_v34, 0  ;;  %v10419_v34 = vld [vmem:[#allocation2 + $0x80] sm:$0xff]  ;;  %vm11390_vm14 = vcmp.ne.s16.totalorder %v9514_v61, 0 }
 0x2a5   :  { %v10383_v39 = vpop.f32.mrb[170].mxu0  ;;  %v10390_v2 = vld [vmem:[#allocation2 + $0x68] sm:$0xff]  ;;  %11386 = vst [vmem:[#allocation40_spill] sm:$0xff] %v10419_v34 }
 0x2a6   :  { %11377 = vst [vmem:[#allocation36_spill] sm:$0xff] %v10383_v39  ;;  %v5624_v63 = vpop.f32.mrb[171].mxu0  ;;  %v3124_v39 = vrot.slane %v3122_v27, 1  ;;  %v3051_v53 = vsel %vm11382_vm2, %v10390_v2, 0  ;;  %v3132_v40 = vrot.slane %v3130_v15, 1  ;;  %v2833_v27 = vshrl.u32 %v2812_v18, 16 }
 0x2a7   :  { %6228 = vmatmul.mubr.bf16.gmra.mrb[44].mxu1 %v10316_v23  ;;  %v3126_v63 = vshrl.u32 %v3049_v42, 16  ;;  %v3146_v42 = vshll.u32 %v3052_v3, 16  ;;  %v10413_v15 = vld [vmem:[#allocation2 + $0x78] sm:$0xff]  ;;  %vm11388_vm2 = vcmp.ne.s16.totalorder %v9511_v7, 0 }
 0x2a8   :  { %7885 = vmatmul.mubr.bf16.gmra.mrb[200].mxu0 %v3109_v25  ;;  %6235 = vmatprep.mubr.bf16.mxu1 %v4045_v48  ;;  %v3138_v48 = vshll.u32 %v3051_v53, 16  ;;  %v3125_v35 = vsel %vm1489_vm8, %v3120_v4, %v3124_v39  ;;  %v2835_v51 = vrot.slane %v2833_v27, 7 }
 0x2a9   :  { %7888 = vmatprep.mubr.bf16.mxu0 %v3117_v1  ;;  %v3128_v1 = vor.u32 %v3126_v63, %v3124_v39  ;;  %v2813_v63 = vsel %vm11385_vm10, %v10285_v44, 0  ;;  %vm11392_vm10 = vcmp.ne.s16.totalorder %v9522_v62, 0 }
 0x2aa   :  { %v2841_v19 = vshrl.u32 %v2813_v63, 16 }
 0x2ab   :  { %v10399_v26 = vpop.f32.mrb[172].mxu0 }
 0x2ac   :  { %11381 = vst [vmem:[#allocation38_spill] sm:$0xff] %v10399_v26  ;;  %v5629_v52 = vpop.f32.mrb[173].mxu0  ;;  %v2829_v26 = vshrl.u32 %v2811_v43, 16  ;;  %v3142_v43 = vshrl.u32 %v3051_v53, 16 }
 0x2ad   :  { %v10404_v30 = vpop.f32.mrb[174].mxu0  ;;  %v3133_v52 = vsel %vm1489_vm8, %v3128_v1, %v3132_v40  ;;  %v2836_v1 = vshll.u32 %v2812_v18, 16  ;;  %v10432_v18 = vld [vmem:[#allocation2 + $0x88] sm:$0xff] }
 0x2ae   :  { %11383 = vst [vmem:[#allocation39_spill] sm:$0xff] %v10404_v30  ;;  %v5632_v25 = vpop.f32.mrb[175].mxu0  ;;  %v3134_v30 = vshrl.u32 %v3050_v6, 16  ;;  %v3053_v6 = vsel %vm11388_vm2, %v10413_v15, 0  ;;  %11391 = vst [vmem:[#allocation43_spill] sm:$0xff] %v10432_v18  ;;  %vm11395_vm2 = vcmp.ne.s16.totalorder %v9777_v46, 0 }
 0x2af   :  { %6236 = vmatmul.mubr.bf16.gmra.mrb[48].mxu1 %v10345_v0  ;;  %v3140_v25 = vrot.slane %v3138_v48, 1  ;;  %v2838_v60 = vor.u32 %v2836_v1, %v2835_v51  ;;  %v2843_v1 = vrot.slane %v2841_v19, 7 }
 0x2b0   :  { %7889 = vmatmul.mubr.bf16.gmra.mrb[204].mxu0 %v3125_v35  ;;  %6276 = vmatprep.mubr.bf16.mxu1 %v10280_v37  ;;  %v3136_v4 = vor.u32 %v3134_v30, %v3132_v40  ;;  %v3148_v35 = vrot.slane %v3146_v42, 1  ;;  %v3054_v37 = vsel %vm11390_vm14, %v10419_v34, 0  ;;  %v3154_v40 = vshll.u32 %v3053_v6, 16  ;;  %v10448_v34 = vld [vmem:[#allocation2] sm:$0xff] }
 0x2b1   :  { %7892 = vmatprep.mubr.bf16.mxu0 %v3133_v52  ;;  %v2831_v52 = vrot.slane %v2829_v26, 7  ;;  %v3150_v42 = vshrl.u32 %v3052_v3, 16  ;;  %vm11396_vm14 = vcmp.ne.s16.totalorder %v9524_v28, 0 }
 0x2b2   :  { %v3141_v30 = vsel %vm1489_vm8, %v3136_v4, %v3140_v25 }
 0x2b3   :  { %v10422_v39 = vpop.f32.mrb[176].mxu0  ;;  %v2839_v26 = vsel %vm1651_vm11, %v2831_v52, %v2838_v60  ;;  %v3152_v3 = vor.u32 %v3150_v42, %v3148_v35  ;;  %v3158_v60 = vshrl.u32 %v3053_v6, 16 }
 0x2b4   :  { %11387 = vst [vmem:[#allocation41_spill] sm:$0xff] %v10422_v39  ;;  %v5637_v27 = vpop.f32.mrb[177].mxu0  ;;  %v3144_v39 = vor.u32 %v3142_v43, %v3140_v25  ;;  %v3156_v43 = vrot.slane %v3154_v40, 1  ;;  %v3056_v40 = vsel %vm11395_vm2, %v10448_v34, 0  ;;  %vm11406_vm2 = vcmp.ne.s16.totalorder %v9016_v14, 0 }
 0x2b5   :  { %v10427_v48 = vpop.f32.mrb[178].mxu0  ;;  %v3162_v27 = vshll.u32 %v3054_v37, 16 }
 0x2b6   :  { %11389 = vst [vmem:[#allocation42_spill] sm:$0xff] %v10427_v48  ;;  %v5640_v32 = vpop.f32.mrb[179].mxu0  ;;  %v3149_v53 = vsel %vm1489_vm8, %v3144_v39, %v3148_v35  ;;  %v3055_v48 = vsel %vm11392_vm10, %v10432_v18, 0  ;;  %v2844_v39 = vshll.u32 %v2813_v63, 16  ;;  %v3040_v35 = vld [vmem:[#allocation2 + $0x98] sm:$0x1] }
 0x2b7   :  { %v2814_v32 = vsel %vm1620_vm4, %v10302_v47, 0  ;;  %6277 = vmatmul.mubr.bf16.vlgmr.msra.gmra.mrb[52].mxu1 %v2839_v26  ;;  %v3164_v52 = vrot.slane %v3162_v27, 1  ;;  %v3170_v19 = vshll.u32 %v3055_v48, 16  ;;  %v3178_v27 = vshll.u32 %v3056_v40, 16 }
 0x2b8   :  { %7893 = vmatmul.mubr.bf16.gmra.mrb[208].mxu0 %v3141_v30  ;;  %6284 = vmatprep.mubr.bf16.mxu1 %v10285_v44  ;;  %v2849_v30 = vshrl.u32 %v2814_v32, 16  ;;  %v2846_v18 = vor.u32 %v2844_v39, %v2843_v1  ;;  %v3160_v44 = vor.u32 %v3158_v60, %v3156_v43  ;;  %v2852_v46 = vshll.u32 %v2814_v32, 16 }
 0x2b9   :  { %7896 = vmatprep.mubr.bf16.mxu0 %v3149_v53  ;;  %v3172_v6 = vrot.slane %v3170_v19, 1  ;;  %v3174_v9 = vshrl.u32 %v3055_v48, 16  ;;  %v3057_v60 = vsel %vm11396_vm14, %v3040_v35, 0  ;;  %v10471_v32 = vrot.slane %v3178_v27, 1  ;;  %v10481_v27 = vld [vmem:[#allocation2 + $0xc8] sm:$0xff] }
 0x2ba   :  { %v3165_v63 = vsel %vm1489_vm8, %v3160_v44, %v3164_v52  ;;  %v2851_v42 = vrot.slane %v2849_v30, 7  ;;  %v2847_v39 = vsel %vm1651_vm11, %v2835_v51, %v2846_v18  ;;  %v3182_v44 = vshrl.u32 %v3056_v40, 16 }
 0x2bb   :  { %v10444_v25 = vpop.f32.mrb[180].mxu0  ;;  %v3176_v18 = vor.u32 %v3174_v9, %v3172_v6  ;;  %v3186_v35 = vshll.u32 %v3057_v60, 16  ;;  %vm11408_vm14 = vcmp.ne.s16.totalorder %v11293_v50, 0 }
 0x2bc   :  { %11393 = vst [vmem:[#allocation44_spill] sm:$0xff] %v10444_v25  ;;  %v5645_v4 = vpop.f32.mrb[181].mxu0  ;;  %v3157_v25 = vsel %vm1489_vm8, %v3152_v3, %v3156_v43  ;;  %v11397_v43 = vld [vmem:[#allocation16_spill] sm:$0xff]  ;;  %v10463_v3 = vld [vmem:[#allocation2 + $0xc0] sm:$0xff]  ;;  %v2854_v48 = vor.u32 %v2852_v46, %v2851_v42  ;;  %v10485_v40 = vor.u32 %v3182_v44, %v10471_v32 }
 0x2bd   :  { %v10446_v53 = vpop.f32.mrb[182].mxu0  ;;  %v10455_v4 = vld [vmem:[#allocation2 + $0xb8] sm:$0xff]  ;;  %vm11398_vm10 = vcmp.ne.s16.totalorder %v11397_v43, 0  ;;  %v3181_v8 = vsel %vm1489_vm8, %v3176_v18, %v10471_v32  ;;  %v3188_v60 = vrot.slane %v3186_v35, 1 }
 0x2be   :  { %11394 = vst [vmem:[#allocation45_spill] sm:$0xff] %v10446_v53  ;;  %v5648_v26 = vpop.f32.mrb[183].mxu0  ;;  %v3166_v53 = vshrl.u32 %v3054_v37, 16  ;;  %v4325_v51 = vsel %vm2168_vm9, %v10455_v4, 0  ;;  %v2855_v46 = vsel %vm1651_vm11, %v2843_v1, %v2854_v48  ;;  %v4327_v1 = vsel %vm2170_vm13, %v10481_v27, 0 }
 0x2bf   :  { %6285 = vmatmul.mubr.bf16.gmra.mrb[56].mxu1 %v2847_v39  ;;  %v4343_v44 = vshrl.u32 %v4325_v51, 16  ;;  %vm11403_vm9 = vcmp.ne.s16.totalorder %v9023_v17, 0  ;;  %v2817_v17 = vsel %vm1623_vm3, %v10333_v49, 0  ;;  %vm11405_vm13 = vcmp.ne.s16.totalorder %v9079_v54, 0 }
 0x2c0   :  { %7897 = vmatmul.mubr.bf16.gmra.mrb[212].mxu0 %v3157_v25  ;;  %v2815_v25 = vsel %vm11398_vm10, %v10309_v24, 0  ;;  %6292 = vmatprep.mubr.bf16.mxu1 %v10302_v47  ;;  %v3168_v30 = vor.u32 %v3166_v53, %v3164_v52  ;;  %v4326_v47 = vsel %vm2169_vm15, %v10463_v3, 0  ;;  %v4345_v52 = vshll.u32 %v4325_v51, 16  ;;  %v10506_v51 = vld [vmem:[#allocation2 + $0xd8] sm:$0xff] }
 0x2c1   :  { %7900 = vmatprep.mubr.bf16.mxu0 %v3165_v63  ;;  %v2857_v63 = vshrl.u32 %v2815_v25, 16  ;;  %v4350_v9 = vshll.u32 %v4326_v47, 16  ;;  %vm11404_vm15 = vcmp.ne.s16.totalorder %v11288_v20, 0  ;;  %v2818_v54 = vsel %vm11406_vm2, %v10349_v10, 0 }
 0x2c2   :  { %v3173_v53 = vsel %vm1489_vm8, %v3168_v30, %v3172_v6  ;;  %v2816_v6 = vsel %vm1622_vm12, %v10329_v5, 0  ;;  %v10490_v30 = vld [vmem:[#allocation2 + $0xd0] sm:$0xff]  ;;  %vm11409_vm10 = vcmp.ne.s16.totalorder %v9137_v13, 0  ;;  %vm11414_vm2 = vcmp.ne.s16.totalorder %v11302_v21, 0 }
 0x2c3   :  { %v10466_v19 = vpop.f32.mrb[184].mxu0  ;;  %v2859_v56 = vrot.slane %v2857_v63, 7  ;;  %v4352_v35 = vrot.slane %v4350_v9, 1 }
 0x2c4   :  { %11399 = vst [vmem:[#allocation16_spill] sm:$0xff] %v10466_v19  ;;  %v5653_v37 = vpop.f32.mrb[185].mxu0 }
 0x2c5   :  { %v10473_v26 = vpop.f32.mrb[186].mxu0  ;;  %v4347_v37 = vrot.slane %v4345_v52, 1  ;;  %v3189_v52 = vsel %vm1489_vm8, %v10485_v40, %v3188_v60 }
 0x2c6   :  { %11400 = vst [vmem:[#allocation46_spill] sm:$0xff] %v10473_v26  ;;  %v5656_v39 = vpop.f32.mrb[187].mxu0 }
 0x2c7   :  { %6293 = vmatmul.mubr.bf16.gmra.mrb[60].mxu1 %v2855_v46  ;;  %v2860_v39 = vshll.u32 %v2815_v25, 16  ;;  %v4348_v25 = vor.u32 %v4347_v37, %v4343_v44 }
 0x2c8   :  { %7901 = vmatmul.mubr.bf16.gmra.mrb[216].mxu0 %v3173_v53  ;;  %6300 = vmatprep.mubr.bf16.mxu1 %v10309_v24  ;;  %v4328_v24 = vsel %vm11403_vm9, %v10490_v30, 0  ;;  %vm11410_vm9 = vcmp.ne.s16.totalorder %v9239_v12, 0 }
 0x2c9   :  { %7904 = vmatprep.mubr.bf16.mxu0 %v3181_v8  ;;  %v2862_v53 = vor.u32 %v2860_v39, %v2859_v56  ;;  %v2865_v8 = vshrl.u32 %v2816_v6, 16  ;;  %v4353_v31 = vsel %vm1489_vm8, %v4348_v25, %v4352_v35 }
 0x2cb   :  { %v10493_v18 = vpop.f32.mrb[188].mxu0  ;;  %v2863_v9 = vsel %vm1651_vm11, %v2851_v42, %v2862_v53  ;;  %v2867_v60 = vrot.slane %v2865_v8, 7  ;;  %v4329_v42 = vsel %vm11404_vm15, %v10506_v51, 0  ;;  %v4362_v53 = vshrl.u32 %v4327_v1, 16 }
 0x2cc   :  { %11401 = vst [vmem:[#allocation47_spill] sm:$0xff] %v10493_v18  ;;  %v5661_v48 = vpop.f32.mrb[189].mxu0  ;;  %v4358_v18 = vshll.u32 %v4327_v1, 16  ;;  %v4374_v19 = vshll.u32 %v4329_v42, 16  ;;  %vm11411_vm15 = vcmp.ne.s16.totalorder %v9027_v22, 0 }
 0x2cd   :  { %v10498_v63 = vpop.f32.mrb[190].mxu0  ;;  %v4366_v48 = vshll.u32 %v4328_v24, 16 }
 0x2ce   :  { %11402 = vst [vmem:[#allocation48_spill] sm:$0xff] %v10498_v63  ;;  %v5664_v46 = vpop.f32.mrb[191].mxu0  ;;  %v4354_v63 = vshrl.u32 %v4326_v47, 16  ;;  %v4360_v39 = vrot.slane %v4358_v18, 1 }
 0x2cf   :  { %6301 = vmatmul.mubr.bf16.gmra.mrb[64].mxu1 %v2863_v9  ;;  %v10512_v46 = vld [vmem:[#allocation2 + $0xe0] sm:$0xff]  ;;  %v4368_v8 = vrot.slane %v4366_v48, 1  ;;  %v4370_v48 = vshrl.u32 %v4328_v24, 16 }
 0x2d0   :  { %7905 = vmatmul.mubr.bf16.gmra.mrb[220].mxu0 %v3189_v52  ;;  %6308 = vmatprep.mubr.bf16.mxu1 %v10329_v5  ;;  %v4356_v44 = vor.u32 %v4354_v63, %v4352_v35  ;;  %v2868_v52 = vshll.u32 %v2816_v6, 16  ;;  %v4330_v9 = vsel %vm11405_vm13, %v10512_v46, 0  ;;  %v4364_v26 = vor.u32 %v4362_v53, %v4360_v39  ;;  %v10527_v63 = vld [vmem:[#allocation2 + $0xe8] sm:$0xff]  ;;  %v10533_v53 = vld [vmem:[#allocation2 + $0xf0] sm:$0xff] }
 0x2d1   :  { %7908 = vmatprep.mubr.bf16.mxu0 %v4353_v31  ;;  %v2873_v31 = vshrl.u32 %v2817_v17, 16  ;;  %v4382_v35 = vshll.u32 %v4330_v9, 16  ;;  %v4386_v50 = vshrl.u32 %v4330_v9, 16  ;;  %vm11413_vm13 = vcmp.ne.s16.totalorder %v9472_v36, 0 }
 0x2d2   :  { %v2870_v25 = vor.u32 %v2868_v52, %v2867_v60  ;;  %v4361_v6 = vsel %vm1489_vm8, %v4356_v44, %v4360_v39  ;;  %v4369_v20 = vsel %vm1489_vm8, %v4364_v26, %v4368_v8  ;;  %v4372_v26 = vor.u32 %v4370_v48, %v4368_v8  ;;  %v10546_v8 = vld [vmem:[#allocation2 + $0xf8] sm:$0xff] }
 0x2d3   :  { %v10515_v37 = vpop.f32.mrb[64].mxu0  ;;  %v2875_v52 = vrot.slane %v2873_v31, 7  ;;  %v2876_v44 = vshll.u32 %v2817_v17, 16  ;;  %v4384_v31 = vrot.slane %v4382_v35, 1  ;;  %v4333_v13 = vsel %vm11410_vm9, %v10546_v8, 0 }
 0x2d4   :  { %v5702_v47 = vpop.f32.mrb[65].mxu0  ;;  %v2871_v1 = vsel %vm1651_vm11, %v2859_v56, %v2870_v25  ;;  %v4331_v56 = vsel %vm11408_vm14, %v10527_v63, 0  ;;  %v4378_v25 = vshrl.u32 %v4329_v42, 16  ;;  %v4335_v36 = vsel %vm11414_vm2, %v10256_v55, 0 }
 0x2d5   :  { %v10520_v18 = vpop.f32.mrb[66].mxu0  ;;  %v4376_v47 = vrot.slane %v4374_v19, 1  ;;  %vm11415_vm14 = vcmp.ne.s16.totalorder %v9019_v16, 0  ;;  %v4336_v55 = vsel %vm2179_vm7, %v10267_v57, 0  ;;  %vm11417_vm7 = vcmp.ne.s16.totalorder %v9038_v29, 0 }
 0x2d6   :  { %v5705_v5 = vpop.f32.mrb[67].mxu0  ;;  %v2821_v41 = vsel %vm11417_vm7, %v10376_v38, 0  ;;  %vm11418_vm9 = vcmp.ne.s16.totalorder %v9514_v61, 0  ;;  %v11420_v61 = vld [vmem:[#allocation18_spill] sm:$0xff]  ;;  %v4101_v11 = vsel %vm1623_vm3, %v10512_v46, 0  ;;  %vm11458_vm3 = vcmp.ne.s16.totalorder %v9019_v16, 0 }
 0x2d7   :  { %6309 = vmatmul.mubr.bf16.gmra.mrb[68].mxu1 %v2871_v1  ;;  %v2878_v5 = vor.u32 %v2876_v44, %v2875_v52  ;;  %v4380_v1 = vor.u32 %v4378_v25, %v4376_v47  ;;  %v4377_v17 = vsel %vm1489_vm8, %v4372_v26, %v4376_v47  ;;  %v4394_v25 = vshrl.u32 %v4331_v56, 16 }
 0x2d8   :  { %7909 = vmatmul.mubr.bf16.gmra.mrb[224].mxu0 %v4361_v6  ;;  %6316 = vmatprep.mubr.bf16.mxu1 %v10333_v49  ;;  %v2881_v6 = vshrl.u32 %v2818_v54, 16  ;;  %v2819_v47 = vsel %vm11411_vm15, %v10356_v58, 0  ;;  %v4388_v26 = vor.u32 %v4386_v50, %v4384_v31  ;;  %v4410_v50 = vshrl.u32 %v4333_v13, 16 }
 0x2d9   :  { %7912 = vmatprep.mubr.bf16.mxu0 %v4369_v20  ;;  %v4332_v20 = vsel %vm11409_vm10, %v10533_v53, 0  ;;  %v4385_v42 = vsel %vm1489_vm8, %v4380_v1, %v4384_v31  ;;  %v2879_v48 = vsel %vm1651_vm11, %v2867_v60, %v2878_v5  ;;  %v10560_v1 = vld [vmem:[#allocation2 + $0x100] sm:$0xff]  ;;  %vm11416_vm10 = vcmp.ne.s16.totalorder %v9511_v7, 0 }
 0x2da   :  { %v4398_v35 = vshll.u32 %v4332_v20, 16  ;;  %v2883_v44 = vrot.slane %v2881_v6, 7  ;;  %v4406_v6 = vshll.u32 %v4333_v13, 16  ;;  %v2892_v13 = vshll.u32 %v2819_v47, 16 }
 0x2db   :  { %v10536_v39 = vpop.f32.mrb[68].mxu0  ;;  %v2905_v7 = vshrl.u32 %v2821_v41, 16  ;;  %vm11419_vm15 = vcmp.ne.s16.totalorder %v9522_v62, 0 }
 0x2dc   :  { %11407 = vst [vmem:[#allocation49_spill] sm:$0xff] %v10536_v39  ;;  %v5710_v24 = vpop.f32.mrb[69].mxu0  ;;  %v4390_v39 = vshll.u32 %v4331_v56, 16  ;;  %v4400_v5 = vrot.slane %v4398_v35, 1  ;;  %v4334_v56 = vsel %vm11413_vm13, %v10560_v1, 0  ;;  %v4408_v31 = vrot.slane %v4406_v6, 1 }
 0x2dd   :  { %v10541_v19 = vpop.f32.mrb[70].mxu0  ;;  %v4414_v35 = vshll.u32 %v4334_v56, 16  ;;  %vm11421_vm13 = vcmp.ne.s16.totalorder %v11420_v61, 0 }
 0x2de   :  { %v5713_v49 = vpop.f32.mrb[71].mxu0  ;;  %v4392_v24 = vrot.slane %v4390_v39, 1  ;;  %v2889_v39 = vshrl.u32 %v2819_v47, 16  ;;  %v4412_v6 = vor.u32 %v4410_v50, %v4408_v31 }
 0x2df   :  { %6317 = vmatmul.mubr.bf16.gmra.mrb[72].mxu1 %v2879_v48  ;;  %v2884_v49 = vshll.u32 %v2818_v54, 16 }
 0x2e0   :  { %7913 = vmatmul.mubr.bf16.gmra.mrb[228].mxu0 %v4377_v17  ;;  %6324 = vmatprep.mubr.bf16.mxu1 %v10349_v10  ;;  %v4396_v48 = vor.u32 %v4394_v25, %v4392_v24  ;;  %v4393_v10 = vsel %vm1489_vm8, %v4388_v26, %v4392_v24  ;;  %v2820_v24 = vsel %vm11415_vm14, %v10372_v59, 0 }
 0x2e1   :  { %7916 = vmatprep.mubr.bf16.mxu0 %v4385_v42  ;;  %v2886_v17 = vor.u32 %v2884_v49, %v2883_v44  ;;  %v2891_v49 = vrot.slane %v2889_v39, 7  ;;  %v2897_v21 = vshrl.u32 %v2820_v24, 16 }
 0x2e2   :  { %v4401_v54 = vsel %vm1489_vm8, %v4396_v48, %v4400_v5 }
 0x2e3   :  { %v10558_v9 = vpop.f32.mrb[72].mxu0 }
 0x2e4   :  { %11412 = vst [vmem:[#allocation50_spill] sm:$0xff] %v10558_v9  ;;  %v5718_v60 = vpop.f32.mrb[73].mxu0  ;;  %v4402_v9 = vshrl.u32 %v4332_v20, 16 }
 0x2e5   :  { %v10562_v12 = vpop.f32.mrb[74].mxu0  ;;  %v2887_v60 = vsel %vm1651_vm11, %v2875_v52, %v2886_v17  ;;  %v4416_v52 = vrot.slane %v4414_v35, 1  ;;  %v4422_v17 = vshll.u32 %v4335_v36, 16  ;;  %v2899_v35 = vrot.slane %v2897_v21, 7 }
 0x2e6   :  { %v5721_v42 = vpop.f32.mrb[75].mxu0  ;;  %v4404_v25 = vor.u32 %v4402_v9, %v4400_v5  ;;  %v4426_v5 = vshrl.u32 %v4335_v36, 16 }
 0x2e7   :  { %6325 = vmatmul.mubr.bf16.gmra.mrb[76].mxu1 %v2887_v60  ;;  %v2894_v42 = vor.u32 %v2892_v13, %v2891_v49  ;;  %v4417_v9 = vsel %vm1489_vm8, %v4412_v6, %v4416_v52  ;;  %v4424_v47 = vrot.slane %v4422_v17, 1  ;;  %v4337_v60 = vsel %vm11416_vm10, %v10298_v33, 0 }
 0x2e8   :  { %7917 = vmatmul.mubr.bf16.gmra.mrb[232].mxu0 %v4393_v10  ;;  %6332 = vmatprep.mubr.bf16.mxu1 %v10356_v58  ;;  %v4409_v10 = vsel %vm1489_vm8, %v4404_v25, %v4408_v31  ;;  %v4418_v58 = vshrl.u32 %v4334_v56, 16  ;;  %v2900_v31 = vshll.u32 %v2820_v24, 16  ;;  %v4438_v13 = vshll.u32 %v4337_v60, 16 }
 0x2e9   :  { %7920 = vmatprep.mubr.bf16.mxu0 %v4401_v54  ;;  %v4430_v54 = vshll.u32 %v4336_v55, 16  ;;  %v2895_v50 = vsel %vm1651_vm11, %v2883_v44, %v2894_v42  ;;  %v4428_v25 = vor.u32 %v4426_v5, %v4424_v47  ;;  %v4338_v33 = vsel %vm11418_vm9, %v10316_v23, 0 }
 0x2ea   :  { %v4420_v56 = vor.u32 %v4418_v58, %v4416_v52  ;;  %v2902_v6 = vor.u32 %v2900_v31, %v2899_v35  ;;  %v4440_v24 = vrot.slane %v4438_v13, 1  ;;  %v4442_v21 = vshrl.u32 %v4337_v60, 16 }
 0x2eb   :  { %v10577_v20 = vpop.f32.mrb[76].mxu0  ;;  %v4432_v44 = vrot.slane %v4430_v54, 1  ;;  %v2907_v58 = vrot.slane %v2905_v7, 7  ;;  %v2822_v23 = vsel %vm11421_vm13, %v10390_v2, 0  ;;  %v2908_v5 = vshll.u32 %v2821_v41, 16  ;;  %v11422_v7 = vld [vmem:[#allocation37_spill] sm:$0xff] }
 0x2ec   :  { %v5726_v26 = vpop.f32.mrb[77].mxu0  ;;  %v4425_v42 = vsel %vm1489_vm8, %v4420_v56, %v4424_v47  ;;  %v2913_v62 = vshrl.u32 %v2822_v23, 16  ;;  %vm11437_vm10 = vcmp.ne.s16.totalorder %v9524_v28, 0  ;;  %vm11459_vm9 = vcmp.ne.s16.totalorder %v9038_v29, 0 }
 0x2ed   :  { %v10579_v39 = vpop.f32.mrb[78].mxu0  ;;  %v4433_v52 = vsel %vm1489_vm8, %v4428_v25, %v4432_v44  ;;  %v2910_v31 = vor.u32 %v2908_v5, %v2907_v58  ;;  %v4450_v25 = vshrl.u32 %v4338_v33, 16  ;;  %v4105_v16 = vsel %vm11459_vm9, %v10560_v1, 0 }
 0x2ee   :  { %v5729_v48 = vpop.f32.mrb[79].mxu0  ;;  %v2915_v41 = vrot.slane %v2913_v62, 7 }
 0x2ef   :  { %6333 = vmatmul.mubr.bf16.gmra.mrb[80].mxu1 %v2895_v50  ;;  %v4446_v48 = vshll.u32 %v4338_v33, 16  ;;  %v4444_v50 = vor.u32 %v4442_v21, %v4440_v24  ;;  %v2916_v33 = vshll.u32 %v2822_v23, 16 }
 0x2f0   :  { %7921 = vmatmul.mubr.bf16.gmra.mrb[236].mxu0 %v4409_v10  ;;  %6340 = vmatprep.mubr.bf16.mxu1 %v10372_v59  ;;  %v4434_v59 = vshrl.u32 %v4336_v55, 16  ;;  %v2903_v10 = vsel %vm1651_vm11, %v2891_v49, %v2902_v6 }
 0x2f1   :  { %7924 = vmatprep.mubr.bf16.mxu0 %v4417_v9  ;;  %v4339_v9 = vsel %vm11419_vm15, %v10345_v0, 0  ;;  %v4448_v49 = vrot.slane %v4446_v48, 1  ;;  %vm11460_vm15 = vmmov %vm11421_vm13 }
 0x2f2   :  { %v4436_v47 = vor.u32 %v4434_v59, %v4432_v44  ;;  %v4454_v60 = vshll.u32 %v4339_v9, 16  ;;  %v4458_v6 = vshrl.u32 %v4339_v9, 16  ;;  %v2911_v44 = vsel %vm1651_vm11, %v2899_v35, %v2910_v31 }
 0x2f3   :  { %v10594_v57 = vpop.f32.mrb[80].mxu0  ;;  %v4449_v13 = vsel %vm1489_vm8, %v4444_v50, %v4448_v49  ;;  %v2824_v50 = vsel %vm1630_vm1, %v10413_v15, 0 }
 0x2f4   :  { %v5734_v36 = vpop.f32.mrb[81].mxu0 }
 0x2f5   :  { %v10596_v26 = vpop.f32.mrb[82].mxu0  ;;  %v4441_v36 = vsel %vm1489_vm8, %v4436_v47, %v4440_v24 }
 0x2f6   :  { %v5737_v17 = vpop.f32.mrb[83].mxu0 }
 0x2f7   :  { %6341 = vmatmul.mubr.bf16.gmra.mrb[84].mxu1 %v2903_v10  ;;  %v11423_v17 = vld [vmem:[#allocation20_spill] sm:$0xff]  ;;  %v2918_v10 = vor.u32 %v2916_v33, %v2915_v41 }
 0x2f8   :  { %7925 = vmatmul.mubr.bf16.gmra.mrb[240].mxu0 %v4425_v42  ;;  %6348 = vmatprep.mubr.bf16.mxu1 %v10376_v38  ;;  %v4456_v38 = vrot.slane %v4454_v60, 1  ;;  %vm11424_vm2 = vcmp.ne.s16.totalorder %v11423_v17, 0 }
 0x2f9   :  { %7928 = vmatprep.mubr.bf16.mxu0 %v4433_v52  ;;  %v2823_v42 = vsel %vm11424_vm2, %v11422_v7, 0  ;;  %v4452_v52 = vor.u32 %v4450_v25, %v4448_v49  ;;  %vm11461_vm13 = vmmov %vm11424_vm2 }
 0x2fa   :  { %v4460_v21 = vor.u32 %v4458_v6, %v4456_v38  ;;  %v2921_v9 = vshrl.u32 %v2823_v42, 16  ;;  %v2924_v60 = vshll.u32 %v2823_v42, 16 }
 0x2fb   :  { %v10611_v55 = vpop.f32.mrb[84].mxu0  ;;  %v4457_v47 = vsel %vm1489_vm8, %v4452_v52, %v4456_v38 }
 0x2fc   :  { %v5742_v54 = vpop.f32.mrb[85].mxu0  ;;  %v4465_v5 = vsel %vm1489_vm8, %v4460_v21, %v10471_v32 }
 0x2fd   :  { %v10613_v56 = vpop.f32.mrb[86].mxu0  ;;  %v2919_v54 = vsel %vm1651_vm11, %v2907_v58, %v2918_v10 }
 0x2fe   :  { %v5745_v0 = vpop.f32.mrb[87].mxu0 }
 0x2ff   :  { %6349 = vmatmul.mubr.bf16.gmra.mrb[88].mxu1 %v2911_v44 }
 0x300   :  { %7929 = vmatmul.mubr.bf16.gmra.mrb[244].mxu0 %v4441_v36  ;;  %6356 = vmatprep.mubr.bf16.mxu1 %v10390_v2  ;;  %v2923_v2 = vrot.slane %v2921_v9, 7  ;;  %v2929_v36 = vshrl.u32 %v2824_v50, 16  ;;  %v11428_v9 = vld [vmem:[#allocation43_spill] sm:$0xff] }
 0x301   :  { %7932 = vmatprep.mubr.bf16.mxu0 %v4449_v13  ;;  %v11426_v13 = vld [vmem:[#allocation40_spill] sm:$0xff] }
 0x302   :  { %v2926_v0 = vor.u32 %v2924_v60, %v2923_v2  ;;  %v2931_v25 = vrot.slane %v2929_v36, 7  ;;  %v2825_v6 = vsel %vm1631_vm5, %v11426_v13, 0 }
 0x303   :  { %v10622_v59 = vpop.f32.mrb[88].mxu0 }
 0x304   :  { %v5750_v24 = vpop.f32.mrb[89].mxu0  ;;  %v2927_v58 = vsel %vm1651_vm11, %v2915_v41, %v2926_v0 }
 0x305   :  { %v10624_v48 = vpop.f32.mrb[90].mxu0  ;;  %v2937_v24 = vshrl.u32 %v2825_v6, 16 }
 0x306   :  { %v5753_v35 = vpop.f32.mrb[91].mxu0 }
 0x307   :  { %6357 = vmatmul.mubr.bf16.gmra.mrb[92].mxu1 %v2919_v54  ;;  %v2939_v41 = vrot.slane %v2937_v24, 7 }
 0x308   :  { %7933 = vmatmul.mubr.bf16.gmra.mrb[248].mxu0 %v4457_v47  ;;  %6364 = vmatprep.mubr.bf16.mxu1 %v11422_v7  ;;  %v2932_v7 = vshll.u32 %v2824_v50, 16  ;;  %v2826_v47 = vsel %vm1632_vm0, %v11428_v9, 0 }
 0x309   :  { %7936 = vmatprep.mubr.bf16.mxu0 %v4465_v5  ;;  %v2940_v5 = vshll.u32 %v2825_v6, 16 }
 0x30a   :  { %v2934_v33 = vor.u32 %v2932_v7, %v2931_v25  ;;  %v2948_v7 = vshll.u32 %v2826_v47, 16 }
 0x30b   :  { %v10634_v49 = vpop.f32.mrb[92].mxu0  ;;  %v2942_v60 = vor.u32 %v2940_v5, %v2939_v41 }
 0x30c   :  { %v5758_v31 = vpop.f32.mrb[93].mxu0  ;;  %v2935_v10 = vsel %vm1651_vm11, %v2923_v2, %v2934_v33 }
 0x30d   :  { %v10636_v62 = vpop.f32.mrb[94].mxu0  ;;  %v2945_v31 = vshrl.u32 %v2826_v47, 16  ;;  %v2943_v36 = vsel %vm1651_vm11, %v2931_v25, %v2942_v60 }
 0x30e   :  { %v5761_v32 = vpop.f32.mrb[95].mxu0 }
 0x30f   :  { %6365 = vmatmul.mubr.bf16.gmra.mrb[96].mxu1 %v2927_v58  ;;  %v2947_v2 = vrot.slane %v2945_v31, 7  ;;  %v2827_v58 = vsel %vm1633_vm6, %v10448_v34, 0 }
 0x310   :  { %6372 = vmatprep.mubr.bf16.mxu1 %v10413_v15  ;;  %v2953_v24 = vshrl.u32 %v2827_v58, 16  ;;  %v2956_v5 = vshll.u32 %v2827_v58, 16 }
 0x311   :  { %v2950_v33 = vor.u32 %v2948_v7, %v2947_v2 }
 0x312   :  { %v2955_v25 = vrot.slane %v2953_v24, 7 }
 0x313   :  { %v10643_v44 = vpop.f32.mrb[96].mxu0 }
 0x314   :  { %v5766_v42 = vpop.f32.mrb[97].mxu0 }
 0x315   :  { %v10645_v52 = vpop.f32.mrb[98].mxu0 }
 0x316   :  { %v5769_v21 = vpop.f32.mrb[99].mxu0 }
 0x317   :  { %6373 = vmatmul.mubr.bf16.gmra.mrb[100].mxu1 %v2935_v10  ;;  %v2951_v10 = vsel %vm1651_vm11, %v2939_v41, %v2950_v33  ;;  %v11435_v41 = vld [vmem:[#allocation11_spill] sm:$0xff] }
 0x318   :  { %6380 = vmatprep.mubr.bf16.mxu1 %v11426_v13  ;;  %vm11436_vm6 = vcmp.ne.s16.totalorder %v11435_v41, 0 }
 0x31b   :  { %v10652_v15 = vpop.f32.mrb[100].mxu0 }
 0x31c   :  { %v5774_v54 = vpop.f32.mrb[101].mxu0 }
 0x31d   :  { %v10654_v50 = vpop.f32.mrb[102].mxu0  ;;  %v11431_v54 = vld [vmem:[#allocation12_spill] sm:$0xff] }
 0x31e   :  { %v5777_v0 = vpop.f32.mrb[103].mxu0  ;;  %vm11432_vm14 = vcmp.ne.s16.totalorder %v11431_v54, 0 }
 0x31f   :  { %6381 = vmatmul.mubr.bf16.gmra.mrb[104].mxu1 %v2943_v36  ;;  %v4096_v60 = vsel %vm11432_vm14, %v10455_v4, 0  ;;  %v10674_v36 = vor.u32 %v2956_v5, %v2955_v25 }
 0x320   :  { %6388 = vmatprep.mubr.bf16.mxu1 %v11428_v9  ;;  %v4078_v9 = vld [vmem:[#allocation2 + $0xb0] sm:$0x80]  ;;  %v4117_v32 = vshrl.u32 %v4096_v60, 16 }
 0x321   :  { %v4095_v58 = vsel %vm11436_vm6, %v4078_v9, 0  ;;  %v2959_v33 = vsel %vm1651_vm11, %v2947_v2, %v10674_v36  ;;  %v4120_v9 = vshll.u32 %v4096_v60, 16  ;;  %v4098_v60 = vsel %vm1620_vm4, %v10481_v27, 0 }
 0x322   :  { %v4113_v24 = vshrl.u32 %v4095_v58, 16  ;;  %vm11452_vm4 = vcmp.ne.s16.totalorder %v9016_v14, 0 }
 0x323   :  { %v10661_v13 = vpop.f32.mrb[104].mxu0  ;;  %v4102_v45 = vsel %vm11452_vm4, %v10527_v63, 0 }
 0x324   :  { %v5782_v6 = vpop.f32.mrb[105].mxu0  ;;  %v4115_v2 = vrot.slane %v4113_v24, 7 }
 0x325   :  { %v10663_v42 = vpop.f32.mrb[106].mxu0  ;;  %v4324_v6 = vld [vmem:[#allocation2 + $0x138] sm:$0x1] }
 0x326   :  { %v5785_v21 = vpop.f32.mrb[107].mxu0 }
 0x327   :  { %6389 = vmatmul.mubr.bf16.gmra.mrb[108].mxu1 %v2951_v10  ;;  %v4119_v21 = vrot.slane %v4117_v32, 7  ;;  %v11438_v10 = vld [vmem:[#allocation14_spill] sm:$0xff] }
 0x328   :  { %6396 = vmatprep.mubr.bf16.mxu1 %v10448_v34  ;;  %v4341_v34 = vsel %vm11437_vm10, %v4324_v6, 0  ;;  %vm11439_vm7 = vcmp.ne.s16.totalorder %v11438_v10, 0 }
 0x329   :  { %v4097_v25 = vsel %vm11439_vm7, %v10463_v3, 0  ;;  %v4470_v5 = vshll.u32 %v4341_v34, 16  ;;  %v4122_v32 = vor.u32 %v4120_v9, %v4119_v21 }
 0x32a   :  { %v4125_v58 = vshrl.u32 %v4097_v25, 16  ;;  %v4128_v24 = vshll.u32 %v4097_v25, 16 }
 0x32b   :  { %v10669_v31 = vpop.f32.mrb[108].mxu0 }
 0x32c   :  { %11433 = vst [vmem:[#allocation18_spill] sm:$0xff] %v10669_v31  ;;  %v5790_v47 = vpop.f32.mrb[109].mxu0  ;;  %v4127_v34 = vrot.slane %v4125_v58, 7  ;;  %v4136_v58 = vshll.u32 %v4098_v60, 16 }
 0x32d   :  { %v10672_v0 = vpop.f32.mrb[110].mxu0 }
 0x32e   :  { %11434 = vst [vmem:[#allocation37_spill] sm:$0xff] %v10672_v0  ;;  %v5793_v7 = vpop.f32.mrb[111].mxu0 }
 0x32f   :  { %6397 = vmatmul.mubr.bf16.gmra.mrb[112].mxu1 %v2959_v33  ;;  %v4472_v7 = vrot.slane %v4470_v5, 1  ;;  %v4123_v33 = vsel %vm1651_vm11, %v4115_v2, %v4122_v32 }
 0x330   :  { %6404 = vmatprep.mubr.bf16.mxu1 %v10455_v4 }
 0x331   :  { %v4473_v6 = vsel %vm1489_vm8, %v10485_v40, %v4472_v7  ;;  %vm11445_vm8 = vcmp.ne.s16.totalorder %v11397_v43, 0  ;;  %v4100_v43 = vsel %vm1622_vm12, %v10506_v51, 0  ;;  %vm11455_vm12 = vcmp.ne.s16.totalorder %v9027_v22, 0 }
 0x332   :  { %7937 = vmatmul.mubr.bf16.gmra.mrb[252].mxu0 %v4473_v6  ;;  %v4099_v32 = vsel %vm11445_vm8, %v10490_v30, 0  ;;  %v4103_v14 = vsel %vm11455_vm12, %v10533_v53, 0  ;;  %v4104_v22 = vsel %vm11458_vm3, %v10546_v8, 0 }
 0x333   :  { %v10686_v54 = vpop.f32.mrb[112].mxu0  ;;  %v4141_v4 = vshrl.u32 %v4099_v32, 16 }
 0x334   :  { %11440 = vst [vmem:[#allocation20_spill] sm:$0xff] %v10686_v54  ;;  %v5798_v47 = vpop.f32.mrb[113].mxu0 }
 0x335   :  { %v10688_v41 = vpop.f32.mrb[114].mxu0  ;;  %v4130_v47 = vor.u32 %v4128_v24, %v4127_v34 }
 0x336   :  { %11441 = vst [vmem:[#allocation21_spill] sm:$0xff] %v10688_v41  ;;  %v5801_v28 = vpop.f32.mrb[115].mxu0 }
 0x337   :  { %6405 = vmatmul.mubr.bf16.gmra.mrb[116].mxu1 %v4123_v33  ;;  %v4133_v28 = vshrl.u32 %v4098_v60, 16  ;;  %v4131_v7 = vsel %vm1651_vm11, %v4119_v21, %v4130_v47  ;;  %v4143_v21 = vrot.slane %v4141_v4, 7  ;;  %v4144_v47 = vshll.u32 %v4099_v32, 16 }
 0x338   :  { %6412 = vmatprep.mubr.bf16.mxu1 %v10463_v3 }
 0x339   :  { %v4135_v2 = vrot.slane %v4133_v28, 7 }
 0x33b   :  { %v10697_v10 = vpop.f32.mrb[116].mxu0  ;;  %v4138_v33 = vor.u32 %v4136_v58, %v4135_v2 }
 0x33c   :  { %11443 = vst [vmem:[#allocation40_spill] sm:$0xff] %v10697_v10  ;;  %v5806_v5 = vpop.f32.mrb[117].mxu0 }
 0x33d   :  { %v10699_v9 = vpop.f32.mrb[118].mxu0  ;;  %v4139_v5 = vsel %vm1651_vm11, %v4127_v34, %v4138_v33  ;;  %v4152_v33 = vshll.u32 %v4100_v43, 16 }
 0x33e   :  { %11444 = vst [vmem:[#allocation22_spill] sm:$0xff] %v10699_v9  ;;  %v5809_v40 = vpop.f32.mrb[119].mxu0 }
 0x33f   :  { %6413 = vmatmul.mubr.bf16.gmra.mrb[120].mxu1 %v4131_v7  ;;  %v4146_v40 = vor.u32 %v4144_v47, %v4143_v21  ;;  %v4149_v7 = vshrl.u32 %v4100_v43, 16 }
 0x340   :  { %6420 = vmatprep.mubr.bf16.mxu1 %v10481_v27 }
 0x341   :  { %v4151_v34 = vrot.slane %v4149_v7, 7 }
 0x343   :  { %v10706_v3 = vpop.f32.mrb[120].mxu0 }
 0x344   :  { %11446 = vst [vmem:[#allocation43_spill] sm:$0xff] %v10706_v3  ;;  %v5814_v25 = vpop.f32.mrb[121].mxu0  ;;  %v4289_v3 = vld [vmem:[#allocation2 + $0x120] sm:$0xff] }
 0x345   :  { %v10708_v6 = vpop.f32.mrb[122].mxu0  ;;  %v4147_v25 = vsel %vm1651_vm11, %v4135_v2, %v4146_v40  ;;  %v4160_v40 = vshll.u32 %v4101_v11, 16 }
 0x346   :  { %11447 = vst [vmem:[#allocation23_spill] sm:$0xff] %v10708_v6  ;;  %v5817_v24 = vpop.f32.mrb[123].mxu0 }
 0x347   :  { %6421 = vmatmul.mubr.bf16.gmra.mrb[124].mxu1 %v4139_v5  ;;  %v4154_v24 = vor.u32 %v4152_v33, %v4151_v34  ;;  %v4157_v5 = vshrl.u32 %v4101_v11, 16 }
 0x348   :  { %6428 = vmatprep.mubr.bf16.mxu1 %v10490_v30 }
 0x349   :  { %v4159_v2 = vrot.slane %v4157_v5, 7 }
 0x34b   :  { %v10715_v27 = vpop.f32.mrb[124].mxu0 }
 0x34c   :  { %11448 = vst [vmem:[#allocation25_spill] sm:$0xff] %v10715_v27  ;;  %v5822_v60 = vpop.f32.mrb[125].mxu0 }
 0x34d   :  { %v10717_v28 = vpop.f32.mrb[126].mxu0  ;;  %v4155_v60 = vsel %vm1651_vm11, %v4143_v21, %v4154_v24  ;;  %v4168_v24 = vshll.u32 %v4102_v45, 16 }
 0x34e   :  { %11449 = vst [vmem:[#allocation12_spill] sm:$0xff] %v10717_v28  ;;  %v5825_v58 = vpop.f32.mrb[127].mxu0  ;;  %v4288_v28 = vld [vmem:[#allocation2 + $0x118] sm:$0xff] }
 0x34f   :  { %6429 = vmatmul.mubr.bf16.gmra.mrb[0].mxu1 %v4147_v25  ;;  %v4162_v58 = vor.u32 %v4160_v40, %v4159_v2  ;;  %v4165_v25 = vshrl.u32 %v4102_v45, 16  ;;  %v4108_v17 = vsel %vm1630_vm1, %v4288_v28, 0 }
 0x350   :  { %6436 = vmatprep.mubr.bf16.mxu1 %v10506_v51  ;;  %v4216_v0 = vshll.u32 %v4108_v17, 16 }
 0x351   :  { %v4167_v21 = vrot.slane %v4165_v25, 7 }
 0x353   :  { %v10724_v30 = vpop.f32.mrb[128].mxu0 }
 0x354   :  { %11450 = vst [vmem:[#allocation11_spill] sm:$0xff] %v10724_v30  ;;  %v5830_v32 = vpop.f32.mrb[129].mxu0 }
 0x355   :  { %v10726_v4 = vpop.f32.mrb[130].mxu0  ;;  %v4163_v32 = vsel %vm1651_vm11, %v4151_v34, %v4162_v58  ;;  %v4176_v58 = vshll.u32 %v4103_v14, 16 }
 0x356   :  { %11451 = vst [vmem:[#allocation14_spill] sm:$0xff] %v10726_v4  ;;  %v5833_v47 = vpop.f32.mrb[131].mxu0 }
 0x357   :  { %6437 = vmatmul.mubr.bf16.gmra.mrb[4].mxu1 %v4155_v60  ;;  %v4170_v47 = vor.u32 %v4168_v24, %v4167_v21  ;;  %v4173_v60 = vshrl.u32 %v4103_v14, 16 }
 0x358   :  { %6444 = vmatprep.mubr.bf16.mxu1 %v10512_v46 }
 0x359   :  { %v4175_v34 = vrot.slane %v4173_v60, 7 }
 0x35b   :  { %v10733_v51 = vpop.f32.mrb[132].mxu0 }
 0x35c   :  { %11453 = vst [vmem:[#allocation15_spill] sm:$0xff] %v10733_v51  ;;  %v5838_v43 = vpop.f32.mrb[133].mxu0  ;;  %v4287_v51 = vld [vmem:[#allocation2 + $0x110] sm:$0xff] }
 0x35d   :  { %v10735_v7 = vpop.f32.mrb[134].mxu0  ;;  %v4171_v43 = vsel %vm1651_vm11, %v4159_v2, %v4170_v47  ;;  %v4107_v61 = vsel %vm11461_vm13, %v4287_v51, 0 }
 0x35e   :  { %11454 = vst [vmem:[#allocation51_spill] sm:$0xff] %v10735_v7  ;;  %v5841_v33 = vpop.f32.mrb[135].mxu0  ;;  %v4205_v4 = vshrl.u32 %v4107_v61, 16 }
 0x35f   :  { %6445 = vmatmul.mubr.bf16.gmra.mrb[8].mxu1 %v4163_v32  ;;  %v4178_v33 = vor.u32 %v4176_v58, %v4175_v34  ;;  %v4181_v32 = vshrl.u32 %v4104_v22, 16 }
 0x360   :  { %6452 = vmatprep.mubr.bf16.mxu1 %v10527_v63 }
 0x361   :  { %v4179_v2 = vsel %vm1651_vm11, %v4167_v21, %v4178_v33  ;;  %v4183_v14 = vrot.slane %v4181_v32, 7  ;;  %v4286_v21 = vld [vmem:[#allocation2 + $0x108] sm:$0xff]  ;;  %v4192_v32 = vshll.u32 %v4105_v16, 16 }
 0x362   :  { %v4106_v29 = vsel %vm11460_vm15, %v4286_v21, 0 }
 0x363   :  { %v10742_v46 = vpop.f32.mrb[136].mxu0 }
 0x364   :  { %11456 = vst [vmem:[#allocation52_spill] sm:$0xff] %v10742_v46  ;;  %v5846_v11 = vpop.f32.mrb[137].mxu0  ;;  %v4197_v46 = vshrl.u32 %v4106_v29, 16 }
 0x365   :  { %v10744_v5 = vpop.f32.mrb[138].mxu0  ;;  %v4184_v11 = vshll.u32 %v4104_v22, 16 }
 0x366   :  { %11457 = vst [vmem:[#allocation53_spill] sm:$0xff] %v10744_v5  ;;  %v5849_v40 = vpop.f32.mrb[139].mxu0 }
 0x367   :  { %6453 = vmatmul.mubr.bf16.gmra.mrb[12].mxu1 %v4171_v43  ;;  %v4186_v40 = vor.u32 %v4184_v11, %v4183_v14  ;;  %v4189_v43 = vshrl.u32 %v4105_v16, 16  ;;  %v4199_v16 = vrot.slane %v4197_v46, 7  ;;  %v4207_v46 = vrot.slane %v4205_v4, 7 }
 0x368   :  { %6460 = vmatprep.mubr.bf16.mxu1 %v10533_v53 }
 0x369   :  { %v4187_v22 = vsel %vm1651_vm11, %v4175_v34, %v4186_v40  ;;  %v4191_v33 = vrot.slane %v4189_v43, 7  ;;  %v4200_v40 = vshll.u32 %v4106_v29, 16  ;;  %v4208_v29 = vshll.u32 %v4107_v61, 16 }
 0x36b   :  { %v10751_v63 = vpop.f32.mrb[192].mxu0  ;;  %v4194_v11 = vor.u32 %v4192_v32, %v4191_v33  ;;  %v4202_v32 = vor.u32 %v4200_v40, %v4199_v16  ;;  %v4210_v61 = vor.u32 %v4208_v29, %v4207_v46 }
 0x36c   :  { %v10753_v45 = vpop.f32.mrb[193].mxu0 }
 0x36d   :  { %v10755_v25 = vpop.f32.mrb[194].mxu0  ;;  %v4195_v34 = vsel %vm1651_vm11, %v4183_v14, %v4194_v11  ;;  %v4203_v14 = vsel %vm1651_vm11, %v4191_v33, %v4202_v32  ;;  %v4213_v32 = vshrl.u32 %v4108_v17, 16  ;;  %v4211_v41 = vsel %vm1651_vm11, %v4199_v16, %v4210_v61 }
 0x36e   :  { %v10757_v24 = vpop.f32.mrb[195].mxu0 }
 0x36f   :  { %6461 = vmatmul.mubr.bf16.gmra.mrb[16].mxu1 %v4179_v2  ;;  %v4215_v54 = vrot.slane %v4213_v32, 7 }
 0x370   :  { %6468 = vmatprep.mubr.bf16.mxu1 %v10546_v8 }
 0x371   :  { %v4218_v17 = vor.u32 %v4216_v0, %v4215_v54 }
 0x373   :  { %v10764_v53 = vpop.f32.mrb[196].mxu0 }
 0x374   :  { %v10766_v47 = vpop.f32.mrb[197].mxu0 }
 0x375   :  { %v10768_v60 = vpop.f32.mrb[198].mxu0 }
 0x376   :  { %v10770_v58 = vpop.f32.mrb[199].mxu0 }
 0x377   :  { %6469 = vmatmul.mubr.bf16.gmra.mrb[20].mxu1 %v4187_v22 }
 0x378   :  { %6476 = vmatprep.mubr.bf16.mxu1 %v10560_v1 }
 0x37b   :  { %v10776_v8 = vpop.f32.mrb[200].mxu0 }
 0x37c   :  { %v10778_v2 = vpop.f32.mrb[201].mxu0 }
 0x37d   :  { %v10780_v5 = vpop.f32.mrb[202].mxu0 }
 0x37e   :  { %v10782_v7 = vpop.f32.mrb[203].mxu0 }
 0x37f   :  { %6477 = vmatmul.mubr.bf16.gmra.mrb[24].mxu1 %v4195_v34 }
 0x380   :  { %6484 = vmatprep.mubr.bf16.mxu1 %v4286_v21  ;;  %v10801_v21 = vld [vmem:[%s11122_s4] ss:$0 sm:$0xff] }
 0x381   :  { %v7972_v34 = vadd.f32 %v10801_v21, %v10515_v37  ;;  %v7974_v23 = vadd.f32 %v10801_v21, %v10520_v18  ;;  %v4109_v18 = vsel %vm1631_vm5, %v4289_v3, 0 }
 0x382   :  { %v4221_v61 = vshrl.u32 %v4109_v18, 16  ;;  %v4224_v0 = vshll.u32 %v4109_v18, 16 }
 0x383   :  { %v10787_v1 = vpop.f32.mrb[204].mxu0 }
 0x384   :  { %v10789_v43 = vpop.f32.mrb[205].mxu0 }
 0x385   :  { %v10791_v22 = vpop.f32.mrb[206].mxu0 }
 0x386   :  { %v10793_v30 = vpop.f32.mrb[207].mxu0 }
 0x387   :  { %6485 = vmatmul.mubr.bf16.gmra.mrb[28].mxu1 %v4203_v14 }
 0x388   :  { %6492 = vmatprep.mubr.bf16.mxu1 %v4287_v51 }
 0x38a   :  { %v6278_v33 = vpop.f32.mrb[52].mxu1 }
 0x38b   :  { %v10803_v11 = vpop.f32.mrb[208].mxu0  ;;  %v7973_v14 = vadd.f32 %v7972_v34, %v6278_v33  ;;  %v6280_v27 = vpop.f32.mrb[53].mxu1  ;;  %v11463_v34 = vld [vmem:[#allocation49_spill] sm:$0xff] }
 0x38c   :  { %v10807_v40 = vpop.f32.mrb[209].mxu0  ;;  %v6281_v51 = vpop.f32.mrb[54].mxu1  ;;  %v7976_v33 = vadd.f32 %v10801_v21, %v11463_v34  ;;  %v4219_v34 = vsel %vm1651_vm11, %v4207_v46, %v4218_v17 }
 0x38d   :  { %v10809_v4 = vpop.f32.mrb[210].mxu0  ;;  %v6568_v9 = vadd.f32 %v7973_v14, %v10753_v45  ;;  %v7975_v10 = vadd.f32 %v7974_v23, %v6281_v51  ;;  %v6283_v37 = vpop.f32.mrb[55].mxu1  ;;  %v4290_v51 = vld [vmem:[#allocation2 + $0x128] sm:$0xff] }
 0x38e   :  { %v10813_v6 = vpop.f32.mrb[211].mxu0 }
 0x38f   :  { %v6571_v29 = vadd.f32 %v7975_v10, %v10757_v24  ;;  %6493 = vmatmul.mubr.bf16.gmra.mrb[32].mxu1 %v4211_v41  ;;  %v6822_v31 = vmax.f32 %v6568_v9, 0.0  ;;  %v7978_v41 = vadd.f32 %v10801_v21, %v10541_v19  ;;  %v4110_v19 = vsel %vm1632_vm0, %v4290_v51, 0 }
 0x390   :  { %6500 = vmatprep.mubr.bf16.mxu1 %v4288_v28  ;;  %v4229_v17 = vshrl.u32 %v4110_v19, 16 }
 0x391   :  { %v6823_v45 = vmax.f32 %v6571_v29, 0.0 }
 0x392   :  { %v6286_v14 = vpop.f32.mrb[56].mxu1 }
 0x393   :  { %v10820_v27 = vpop.f32.mrb[212].mxu0  ;;  %v7527_v38 = vpack.c.bf16 %v6823_v45, %v6822_v31  ;;  %v7977_v10 = vadd.f32 %v7976_v33, %v6286_v14  ;;  %v6288_v28 = vpop.f32.mrb[57].mxu1  ;;  %v11465_v33 = vld [vmem:[#allocation50_spill] sm:$0xff] }
 0x394   :  { %11462 = vst [vmem:[#allocation54_spill] sm:$0xff] %v10820_v27  ;;  %v10824_v23 = vpop.f32.mrb[213].mxu0  ;;  %v6289_v32 = vpop.f32.mrb[58].mxu1  ;;  %v7980_v45 = vadd.f32 %v10801_v21, %v11465_v33  ;;  %v7984_v33 = vadd.f32 %v10801_v21, %v10577_v20 }
 0x395   :  { %v10826_v16 = vpop.f32.mrb[214].mxu0  ;;  %7528 = vst [vmem:[#allocation7] sm:$0xff] %v7527_v38   ;;  %v6576_v9 = vadd.f32 %v7977_v10, %v10751_v63  ;;  %v7979_v37 = vadd.f32 %v7978_v41, %v6289_v32  ;;  %v6291_v29 = vpop.f32.mrb[59].mxu1 }
 0x396   :  { %11464 = vst [vmem:[#allocation49_spill] sm:$0xff] %v10826_v16  ;;  %v10830_v24 = vpop.f32.mrb[215].mxu0  ;;  %v4223_v16 = vrot.slane %v4221_v61, 7  ;;  %v4231_v29 = vrot.slane %v4229_v17, 7 }
 0x397   :  { %v6579_v27 = vadd.f32 %v7979_v37, %v10755_v25  ;;  %6501 = vmatmul.mubr.bf16.gmra.mrb[36].mxu1 %v4219_v34  ;;  %v6824_v14 = vmax.f32 %v6576_v9, 0.0  ;;  %v7982_v25 = vadd.f32 %v10801_v21, %v10562_v12  ;;  %v4232_v34 = vshll.u32 %v4110_v19, 16 }
 0x398   :  { %6508 = vmatprep.mubr.bf16.mxu1 %v4289_v3  ;;  %v4226_v18 = vor.u32 %v4224_v0, %v4223_v16 }
 0x399   :  { %v6825_v63 = vmax.f32 %v6579_v27, 0.0 }
 0x39a   :  { %v6294_v38 = vpop.f32.mrb[60].mxu1  ;;  %v4227_v37 = vsel %vm1651_vm11, %v4215_v54, %v4226_v18  ;;  %v7986_v54 = vadd.f32 %v10801_v21, %v10579_v39  ;;  %v7988_v39 = vadd.f32 %v10801_v21, %v10594_v57 }
 0x39b   :  { %v10837_v31 = vpop.f32.mrb[216].mxu0  ;;  %v7532_v35 = vpack.c.bf16 %v6825_v63, %v6824_v14  ;;  %v7981_v61 = vadd.f32 %v7980_v45, %v6294_v38  ;;  %v6296_v3 = vpop.f32.mrb[61].mxu1  ;;  %v4234_v38 = vor.u32 %v4232_v34, %v4231_v29 }
 0x39c   :  { %v10841_v41 = vpop.f32.mrb[217].mxu0  ;;  %v6297_v28 = vpop.f32.mrb[62].mxu1 }
 0x39d   :  { %v10843_v46 = vpop.f32.mrb[218].mxu0  ;;  %7684 = vst [vmem:[#allocation7 + $0x8] sm:$0xff] %v7532_v35   ;;  %v6584_v32 = vadd.f32 %v7981_v61, %v10766_v47  ;;  %v7983_v27 = vadd.f32 %v7982_v25, %v6297_v28  ;;  %v6299_v9 = vpop.f32.mrb[63].mxu1  ;;  %v4235_v3 = vsel %vm1651_vm11, %v4223_v16, %v4234_v38  ;;  %v7990_v16 = vadd.f32 %v10801_v21, %v10596_v26 }
 0x39e   :  { %v10847_v10 = vpop.f32.mrb[219].mxu0  ;;  %v7992_v26 = vadd.f32 %v10801_v21, %v10611_v55 }
 0x39f   :  { %v6587_v0 = vadd.f32 %v7983_v27, %v10770_v58  ;;  %6509 = vmatmul.mubr.bf16.gmra.mrb[40].mxu1 %v4227_v37  ;;  %v6826_v45 = vmax.f32 %v6584_v32, 0.0  ;;  %v8475_v27 = vld [vmem:[#allocation2] sm:$0xff] }
 0x3a0   :  { %6516 = vmatprep.mubr.bf16.mxu1 %v4290_v51 }
 0x3a1   :  { %v6827_v14 = vmax.f32 %v6587_v0, 0.0 }
 0x3a2   :  { %v6302_v47 = vpop.f32.mrb[64].mxu1 }
 0x3a3   :  { %v10852_v12 = vpop.f32.mrb[220].mxu0  ;;  %v7537_v19 = vpack.c.bf16 %v6827_v14, %v6826_v45  ;;  %v7985_v58 = vadd.f32 %v7984_v33, %v6302_v47  ;;  %v6304_v18 = vpop.f32.mrb[65].mxu1 }
 0x3a4   :  { %v10856_v63 = vpop.f32.mrb[221].mxu0  ;;  %v6305_v17 = vpop.f32.mrb[66].mxu1 }
 0x3a5   :  { %v10858_v25 = vpop.f32.mrb[222].mxu0  ;;  %7685 = vst [vmem:[#allocation7 + $0x10] sm:$0xff] %v7537_v19   ;;  %v6592_v20 = vadd.f32 %v7985_v58, %v10764_v53  ;;  %v7987_v35 = vadd.f32 %v7986_v54, %v6305_v17  ;;  %v6307_v61 = vpop.f32.mrb[67].mxu1  ;;  %v4243_v19 = vsel %vm1651_vm11, %v4231_v29, %v10674_v36 }
 0x3a6   :  { %v10862_v51 = vpop.f32.mrb[223].mxu0 }
 0x3a7   :  { %v6595_v28 = vadd.f32 %v7987_v35, %v10768_v60  ;;  %6517 = vmatmul.mubr.bf16.gmra.mrb[44].mxu1 %v4235_v3  ;;  %v6828_v9 = vmax.f32 %v6592_v20, 0.0 }
 0x3a8   :  { %6524 = vmatprep.mubr.bf16.mxu1 %v8475_v27 }
 0x3a9   :  { %v6829_v37 = vmax.f32 %v6595_v28, 0.0 }
 0x3aa   :  { %v6310_v0 = vpop.f32.mrb[68].mxu1 }
 0x3ab   :  { %v10867_v32 = vpop.f32.mrb[224].mxu0  ;;  %v7542_v33 = vpack.c.bf16 %v6829_v37, %v6828_v9  ;;  %v7989_v60 = vadd.f32 %v7988_v39, %v6310_v0  ;;  %v6312_v45 = vpop.f32.mrb[69].mxu1 }
 0x3ac   :  { %v10871_v34 = vpop.f32.mrb[225].mxu0  ;;  %v6313_v47 = vpop.f32.mrb[70].mxu1 }
 0x3ad   :  { %v10873_v53 = vpop.f32.mrb[226].mxu0  ;;  %7686 = vst [vmem:[#allocation7 + $0x18] sm:$0xff] %v7542_v33   ;;  %v6600_v38 = vadd.f32 %v7989_v60, %v10778_v2  ;;  %v7991_v57 = vadd.f32 %v7990_v16, %v6313_v47  ;;  %v6315_v54 = vpop.f32.mrb[71].mxu1  ;;  %v7994_v2 = vadd.f32 %v10801_v21, %v10613_v56  ;;  %v7996_v16 = vadd.f32 %v10801_v21, %v10622_v59 }
 0x3ae   :  { %v10877_v14 = vpop.f32.mrb[227].mxu0 }
 0x3af   :  { %v6603_v58 = vadd.f32 %v7991_v57, %v10782_v7  ;;  %6525 = vmatmul.mubr.bf16.gmra.mrb[48].mxu1 %v4243_v19  ;;  %v6830_v17 = vmax.f32 %v6600_v38, 0.0  ;;  %v7998_v38 = vadd.f32 %v10801_v21, %v10624_v48 }
 0x3b1   :  { %v6831_v20 = vmax.f32 %v6603_v58, 0.0 }
 0x3b2   :  { %v6318_v61 = vpop.f32.mrb[72].mxu1 }
 0x3b3   :  { %v10883_v18 = vpop.f32.mrb[228].mxu0  ;;  %v7547_v28 = vpack.c.bf16 %v6831_v20, %v6830_v17  ;;  %v7993_v36 = vadd.f32 %v7992_v26, %v6318_v61  ;;  %v6320_v29 = vpop.f32.mrb[73].mxu1  ;;  %v8000_v61 = vadd.f32 %v10801_v21, %v10634_v49 }
 0x3b4   :  { %v10887_v35 = vpop.f32.mrb[229].mxu0  ;;  %v6321_v27 = vpop.f32.mrb[74].mxu1 }
 0x3b5   :  { %v10889_v3 = vpop.f32.mrb[230].mxu0  ;;  %7687 = vst [vmem:[#allocation7 + $0x20] sm:$0xff] %v7547_v28   ;;  %v6608_v39 = vadd.f32 %v7993_v36, %v10776_v8  ;;  %v7995_v55 = vadd.f32 %v7994_v2, %v6321_v27  ;;  %v6323_v9 = vpop.f32.mrb[75].mxu1  ;;  %v8002_v27 = vadd.f32 %v10801_v21, %v10636_v62 }
 0x3b6   :  { %v10893_v7 = vpop.f32.mrb[231].mxu0 }
 0x3b7   :  { %v6611_v37 = vadd.f32 %v7995_v55, %v10780_v5  ;;  %v6832_v33 = vmax.f32 %v6608_v39, 0.0 }
 0x3b9   :  { %v6833_v56 = vmax.f32 %v6611_v37, 0.0 }
 0x3ba   :  { %v6326_v45 = vpop.f32.mrb[76].mxu1 }
 0x3bb   :  { %v10897_v0 = vpop.f32.mrb[232].mxu0  ;;  %v7552_v8 = vpack.c.bf16 %v6833_v56, %v6832_v33  ;;  %v7997_v57 = vadd.f32 %v7996_v16, %v6326_v45  ;;  %v6328_v54 = vpop.f32.mrb[77].mxu1  ;;  %v8004_v45 = vadd.f32 %v10801_v21, %v10643_v44 }
 0x3bc   :  { %v10901_v60 = vpop.f32.mrb[233].mxu0  ;;  %v6329_v5 = vpop.f32.mrb[78].mxu1 }
 0x3bd   :  { %v10903_v47 = vpop.f32.mrb[234].mxu0  ;;  %7688 = vst [vmem:[#allocation7 + $0x28] sm:$0xff] %v7552_v8   ;;  %v6616_v58 = vadd.f32 %v7997_v57, %v10789_v43  ;;  %v7999_v59 = vadd.f32 %v7998_v38, %v6329_v5  ;;  %v6331_v26 = vpop.f32.mrb[79].mxu1  ;;  %v8006_v5 = vadd.f32 %v10801_v21, %v10645_v52 }
 0x3be   :  { %v10907_v19 = vpop.f32.mrb[235].mxu0 }
 0x3bf   :  { %v6619_v17 = vadd.f32 %v7999_v59, %v10793_v30  ;;  %v6834_v2 = vmax.f32 %v6616_v58, 0.0 }
 0x3c1   :  { %v6835_v48 = vmax.f32 %v6619_v17, 0.0 }
 0x3c2   :  { %v6334_v36 = vpop.f32.mrb[80].mxu1 }
 0x3c3   :  { %v10911_v20 = vpop.f32.mrb[236].mxu0  ;;  %v7557_v43 = vpack.c.bf16 %v6835_v48, %v6834_v2  ;;  %v8001_v39 = vadd.f32 %v8000_v61, %v6334_v36  ;;  %v6336_v55 = vpop.f32.mrb[81].mxu1  ;;  %v8008_v36 = vadd.f32 %v10801_v21, %v10652_v15 }
 0x3c4   :  { %v10915_v28 = vpop.f32.mrb[237].mxu0  ;;  %v6337_v30 = vpop.f32.mrb[82].mxu1 }
 0x3c5   :  { %v10917_v29 = vpop.f32.mrb[238].mxu0  ;;  %7689 = vst [vmem:[#allocation7 + $0x30] sm:$0xff] %v7557_v43   ;;  %v6624_v37 = vadd.f32 %v8001_v39, %v10787_v1  ;;  %v8003_v49 = vadd.f32 %v8002_v27, %v6337_v30  ;;  %v6339_v16 = vpop.f32.mrb[83].mxu1  ;;  %v8010_v30 = vadd.f32 %v10801_v21, %v10654_v50 }
 0x3c6   :  { %v10921_v9 = vpop.f32.mrb[239].mxu0 }
 0x3c7   :  { %v6627_v33 = vadd.f32 %v8003_v49, %v10791_v22  ;;  %v6836_v38 = vmax.f32 %v6624_v37, 0.0 }
 0x3c9   :  { %v6837_v62 = vmax.f32 %v6627_v33, 0.0 }
 0x3ca   :  { %v6342_v57 = vpop.f32.mrb[84].mxu1 }
 0x3cb   :  { %v10925_v56 = vpop.f32.mrb[240].mxu0  ;;  %v7562_v1 = vpack.c.bf16 %v6837_v62, %v6836_v38  ;;  %v8005_v58 = vadd.f32 %v8004_v45, %v6342_v57  ;;  %v6344_v59 = vpop.f32.mrb[85].mxu1  ;;  %v8012_v57 = vadd.f32 %v10801_v21, %v10661_v13 }
 0x3cc   :  { %v10929_v8 = vpop.f32.mrb[241].mxu0  ;;  %v6345_v22 = vpop.f32.mrb[86].mxu1 }
 0x3cd   :  { %v10931_v54 = vpop.f32.mrb[242].mxu0  ;;  %7690 = vst [vmem:[#allocation7 + $0x38] sm:$0xff] %v7562_v1   ;;  %v6632_v17 = vadd.f32 %v8005_v58, %v10807_v40  ;;  %v8007_v44 = vadd.f32 %v8006_v5, %v6345_v22  ;;  %v6347_v61 = vpop.f32.mrb[87].mxu1  ;;  %v8014_v22 = vadd.f32 %v10801_v21, %v10663_v42  ;;  %v11467_v42 = vld [vmem:[#allocation37_spill] sm:$0xff] }
 0x3ce   :  { %v10935_v26 = vpop.f32.mrb[243].mxu0 }
 0x3cf   :  { %v6635_v2 = vadd.f32 %v8007_v44, %v10813_v6  ;;  %v6838_v27 = vmax.f32 %v6632_v17, 0.0 }
 0x3d1   :  { %v6839_v52 = vmax.f32 %v6635_v2, 0.0 }
 0x3d2   :  { %v6350_v39 = vpop.f32.mrb[88].mxu1 }
 0x3d3   :  { %v10939_v48 = vpop.f32.mrb[244].mxu0  ;;  %v7567_v40 = vpack.c.bf16 %v6839_v52, %v6838_v27  ;;  %v8009_v37 = vadd.f32 %v8008_v36, %v6350_v39  ;;  %v6352_v49 = vpop.f32.mrb[89].mxu1  ;;  %v11466_v52 = vld [vmem:[#allocation18_spill] sm:$0xff] }
 0x3d4   :  { %v10943_v43 = vpop.f32.mrb[245].mxu0  ;;  %v6353_v6 = vpop.f32.mrb[90].mxu1  ;;  %v8016_v39 = vadd.f32 %v10801_v21, %v11466_v52  ;;  %v8018_v49 = vadd.f32 %v10801_v21, %v11467_v42  ;;  %v11472_v42 = vld [vmem:[#allocation40_spill] sm:$0xff] }
 0x3d5   :  { %v10945_v55 = vpop.f32.mrb[246].mxu0  ;;  %7691 = vst [vmem:[#allocation7 + $0x40] sm:$0xff] %v7567_v40   ;;  %v6640_v33 = vadd.f32 %v8009_v37, %v10803_v11  ;;  %v8011_v15 = vadd.f32 %v8010_v30, %v6353_v6  ;;  %v6355_v45 = vpop.f32.mrb[91].mxu1 }
 0x3d6   :  { %v10949_v16 = vpop.f32.mrb[247].mxu0 }
 0x3d7   :  { %v6643_v38 = vadd.f32 %v8011_v15, %v10809_v4  ;;  %v6840_v5 = vmax.f32 %v6640_v33, 0.0 }
 0x3d9   :  { %v6841_v50 = vmax.f32 %v6643_v38, 0.0  ;;  %v11468_v38 = vld [vmem:[#allocation54_spill] sm:$0xff] }
 0x3da   :  { %v6358_v58 = vpop.f32.mrb[92].mxu1 }
 0x3db   :  { %v10953_v62 = vpop.f32.mrb[248].mxu0  ;;  %v7572_v11 = vpack.c.bf16 %v6841_v50, %v6840_v5  ;;  %v8013_v17 = vadd.f32 %v8012_v57, %v6358_v58  ;;  %v6360_v44 = vpop.f32.mrb[93].mxu1  ;;  %v11469_v50 = vld [vmem:[#allocation49_spill] sm:$0xff]  ;;  %v11470_v58 = vld [vmem:[#allocation20_spill] sm:$0xff] }
 0x3dc   :  { %v10957_v1 = vpop.f32.mrb[249].mxu0  ;;  %v6361_v4 = vpop.f32.mrb[94].mxu1 }
 0x3dd   :  { %v10959_v59 = vpop.f32.mrb[250].mxu0  ;;  %7692 = vst [vmem:[#allocation7 + $0x48] sm:$0xff] %v7572_v11   ;;  %v6648_v2 = vadd.f32 %v8013_v17, %v10824_v23  ;;  %v8015_v13 = vadd.f32 %v8014_v22, %v6361_v4  ;;  %v6363_v36 = vpop.f32.mrb[95].mxu1  ;;  %v8020_v22 = vadd.f32 %v10801_v21, %v11470_v58  ;;  %v11471_v4 = vld [vmem:[#allocation21_spill] sm:$0xff] }
 0x3de   :  { %v10963_v61 = vpop.f32.mrb[251].mxu0 }
 0x3df   :  { %v6651_v27 = vadd.f32 %v8015_v13, %v10830_v24  ;;  %v6842_v30 = vmax.f32 %v6648_v2, 0.0  ;;  %v8022_v2 = vadd.f32 %v10801_v21, %v11471_v4 }
 0x3e1   :  { %v6843_v40 = vmax.f32 %v6651_v27, 0.0 }
 0x3e2   :  { %v6366_v37 = vpop.f32.mrb[96].mxu1 }
 0x3e3   :  { %v7577_v6 = vpack.c.bf16 %v6843_v40, %v6842_v30  ;;  %v8017_v33 = vadd.f32 %v8016_v39, %v6366_v37  ;;  %v6368_v15 = vpop.f32.mrb[97].mxu1 }
 0x3e4   :  { %v6369_v45 = vpop.f32.mrb[98].mxu1 }
 0x3e5   :  { %7693 = vst [vmem:[#allocation7 + $0x50] sm:$0xff] %v7577_v6   ;;  %v6656_v23 = vadd.f32 %v8017_v33, %v11468_v38  ;;  %v8019_v57 = vadd.f32 %v8018_v49, %v6369_v45  ;;  %v6371_v5 = vpop.f32.mrb[99].mxu1  ;;  %v8024_v49 = vadd.f32 %v10801_v21, %v11472_v42  ;;  %v11473_v45 = vld [vmem:[#allocation22_spill] sm:$0xff] }
 0x3e6   :  { %v8026_v38 = vadd.f32 %v10801_v21, %v11473_v45 }
 0x3e7   :  { %v6659_v24 = vadd.f32 %v8019_v57, %v11469_v50  ;;  %v6844_v11 = vmax.f32 %v6656_v23, 0.0 }
 0x3e9   :  { %v6845_v17 = vmax.f32 %v6659_v24, 0.0 }
 0x3ea   :  { %v6374_v44 = vpop.f32.mrb[100].mxu1 }
 0x3eb   :  { %v7582_v13 = vpack.c.bf16 %v6845_v17, %v6844_v11  ;;  %v8021_v36 = vadd.f32 %v8020_v22, %v6374_v44  ;;  %v6376_v27 = vpop.f32.mrb[101].mxu1  ;;  %v11474_v22 = vld [vmem:[#allocation43_spill] sm:$0xff] }
 0x3ec   :  { %v6377_v52 = vpop.f32.mrb[102].mxu1  ;;  %v8028_v11 = vadd.f32 %v10801_v21, %v11474_v22 }
 0x3ed   :  { %7694 = vst [vmem:[#allocation7 + $0x58] sm:$0xff] %v7582_v13   ;;  %v6664_v39 = vadd.f32 %v8021_v36, %v10841_v41  ;;  %v8023_v30 = vadd.f32 %v8022_v2, %v6377_v52  ;;  %v6379_v40 = vpop.f32.mrb[103].mxu1  ;;  %v11475_v2 = vld [vmem:[#allocation23_spill] sm:$0xff] }
 0x3ee   :  { %v8030_v13 = vadd.f32 %v10801_v21, %v11475_v2 }
 0x3ef   :  { %v6667_v37 = vadd.f32 %v8023_v30, %v10847_v10  ;;  %v6846_v6 = vmax.f32 %v6664_v39, 0.0 }
 0x3f1   :  { %v6847_v33 = vmax.f32 %v6667_v37, 0.0  ;;  %v11476_v37 = vld [vmem:[#allocation25_spill] sm:$0xff] }
 0x3f2   :  { %v6382_v15 = vpop.f32.mrb[104].mxu1  ;;  %v8032_v42 = vadd.f32 %v10801_v21, %v11476_v37 }
 0x3f3   :  { %v7587_v23 = vpack.c.bf16 %v6847_v33, %v6846_v6  ;;  %v8025_v57 = vadd.f32 %v8024_v49, %v6382_v15  ;;  %v6384_v5 = vpop.f32.mrb[105].mxu1  ;;  %v11477_v15 = vld [vmem:[#allocation12_spill] sm:$0xff] }
 0x3f4   :  { %v6385_v50 = vpop.f32.mrb[106].mxu1  ;;  %v8034_v45 = vadd.f32 %v10801_v21, %v11477_v15 }
 0x3f5   :  { %7695 = vst [vmem:[#allocation7 + $0x60] sm:$0xff] %v7587_v23   ;;  %v6672_v41 = vadd.f32 %v8025_v57, %v10837_v31  ;;  %v8027_v24 = vadd.f32 %v8026_v38, %v6385_v50  ;;  %v6387_v58 = vpop.f32.mrb[107].mxu1 }
 0x3f7   :  { %v6675_v10 = vadd.f32 %v8027_v24, %v10843_v46  ;;  %v6848_v17 = vmax.f32 %v6672_v41, 0.0 }
 0x3f9   :  { %v6849_v44 = vmax.f32 %v6675_v10, 0.0  ;;  %v11478_v10 = vld [vmem:[#allocation11_spill] sm:$0xff] }
 0x3fa   :  { %v6390_v4 = vpop.f32.mrb[108].mxu1  ;;  %v8036_v22 = vadd.f32 %v10801_v21, %v11478_v10 }
 0x3fb   :  { %v7592_v36 = vpack.c.bf16 %v6849_v44, %v6848_v17  ;;  %v8029_v27 = vadd.f32 %v8028_v11, %v6390_v4  ;;  %v6392_v52 = vpop.f32.mrb[109].mxu1 }
 0x3fc   :  { %v6393_v39 = vpop.f32.mrb[110].mxu1 }
 0x3fd   :  { %7696 = vst [vmem:[#allocation7 + $0x68] sm:$0xff] %v7592_v36   ;;  %v6680_v31 = vadd.f32 %v8029_v27, %v10856_v63  ;;  %v8031_v30 = vadd.f32 %v8030_v13, %v6393_v39  ;;  %v6395_v40 = vpop.f32.mrb[111].mxu1  ;;  %v11479_v13 = vld [vmem:[#allocation14_spill] sm:$0xff] }
 0x3ff   :  { %v6683_v46 = vadd.f32 %v8031_v30, %v10862_v51  ;;  %v6850_v49 = vmax.f32 %v6680_v31, 0.0 }
 0x401   :  { %v6851_v6 = vmax.f32 %v6683_v46, 0.0  ;;  %v11480_v46 = vld [vmem:[#allocation15_spill] sm:$0xff] }
 0x402   :  { %v6398_v33 = vpop.f32.mrb[112].mxu1  ;;  %v8040_v37 = vadd.f32 %v10801_v21, %v11480_v46  ;;  %v11485_v46 = vld [vmem:[#allocation13_spill] sm:$0xff] }
 0x403   :  { %v7597_v38 = vpack.c.bf16 %v6851_v6, %v6850_v49  ;;  %v8033_v23 = vadd.f32 %v8032_v42, %v6398_v33  ;;  %v6400_v57 = vpop.f32.mrb[113].mxu1  ;;  %v11481_v33 = vld [vmem:[#allocation51_spill] sm:$0xff] }
 0x404   :  { %v6401_v5 = vpop.f32.mrb[114].mxu1  ;;  %v8042_v15 = vadd.f32 %v10801_v21, %v11481_v33 }
 0x405   :  { %7697 = vst [vmem:[#allocation7 + $0x70] sm:$0xff] %v7597_v38   ;;  %v6688_v63 = vadd.f32 %v8033_v23, %v10852_v12  ;;  %v8035_v50 = vadd.f32 %v8034_v45, %v6401_v5  ;;  %v6403_v41 = vpop.f32.mrb[115].mxu1  ;;  %v10997_v24 = vpop.f32.mrb[252].mxu0  ;;  %v8038_v12 = vadd.f32 %v10801_v21, %v11479_v13 }
 0x406   :  { %v10999_v58 = vpop.f32.mrb[253].mxu0 }
 0x407   :  { %v6691_v51 = vadd.f32 %v8035_v50, %v10858_v25  ;;  %v6852_v11 = vmax.f32 %v6688_v63, 0.0  ;;  %v11003_v44 = vpop.f32.mrb[254].mxu0  ;;  %v11482_v50 = vld [vmem:[#allocation52_spill] sm:$0xff] }
 0x408   :  { %v11005_v2 = vpop.f32.mrb[255].mxu0  ;;  %v8044_v41 = vadd.f32 %v10801_v21, %v11482_v50 }
 0x409   :  { %v6853_v17 = vmax.f32 %v6691_v51, 0.0 }
 0x40a   :  { %v6406_v4 = vpop.f32.mrb[116].mxu1 }
 0x40b   :  { %v7602_v36 = vpack.c.bf16 %v6853_v17, %v6852_v11  ;;  %v8037_v27 = vadd.f32 %v8036_v22, %v6406_v4  ;;  %v6408_v25 = vpop.f32.mrb[117].mxu1  ;;  %v11483_v11 = vld [vmem:[#allocation53_spill] sm:$0xff] }
 0x40c   :  { %v6409_v52 = vpop.f32.mrb[118].mxu1  ;;  %v8046_v17 = vadd.f32 %v10801_v21, %v11483_v11 }
 0x40d   :  { %7698 = vst [vmem:[#allocation7 + $0x78] sm:$0xff] %v7602_v36   ;;  %v6696_v39 = vadd.f32 %v8037_v27, %v10871_v34  ;;  %v8039_v31 = vadd.f32 %v8038_v12, %v6409_v52  ;;  %v6411_v30 = vpop.f32.mrb[119].mxu1  ;;  %v11484_v52 = vld [vmem:[#allocation10_spill] sm:$0xff] }
 0x40f   :  { %v6699_v40 = vadd.f32 %v8039_v31, %v10877_v14  ;;  %v6854_v42 = vmax.f32 %v6696_v39, 0.0  ;;  %v5564_v39 = vadd.f32 %v10801_v21, %v11484_v52 }
 0x411   :  { %v6855_v49 = vmax.f32 %v6699_v40, 0.0 }
 0x412   :  { %v6414_v6 = vpop.f32.mrb[120].mxu1 }
 0x413   :  { %v7607_v45 = vpack.c.bf16 %v6855_v49, %v6854_v42  ;;  %v8041_v38 = vadd.f32 %v8040_v37, %v6414_v6  ;;  %v6416_v23 = vpop.f32.mrb[121].mxu1  ;;  %v5567_v37 = vadd.f32 %v10801_v21, %v11485_v46 }
 0x414   :  { %v6417_v57 = vpop.f32.mrb[122].mxu1 }
 0x415   :  { %7699 = vst [vmem:[#allocation7 + $0x80] sm:$0xff] %v7607_v45   ;;  %v6704_v34 = vadd.f32 %v8041_v38, %v10867_v32  ;;  %v8043_v5 = vadd.f32 %v8042_v15, %v6417_v57  ;;  %v6419_v63 = vpop.f32.mrb[123].mxu1  ;;  %v11486_v38 = vld [vmem:[#allocation17_spill] sm:$0xff] }
 0x416   :  { %v5572_v23 = vadd.f32 %v10801_v21, %v11486_v38  ;;  %v11487_v63 = vld [vmem:[#allocation19_spill] sm:$0xff] }
 0x417   :  { %v6707_v14 = vadd.f32 %v8043_v5, %v10873_v53  ;;  %v6856_v51 = vmax.f32 %v6704_v34, 0.0 }
 0x419   :  { %v6857_v10 = vmax.f32 %v6707_v14, 0.0  ;;  %v5575_v14 = vadd.f32 %v10801_v21, %v11487_v63 }
 0x41a   :  { %v6422_v22 = vpop.f32.mrb[124].mxu1 }
 0x41b   :  { %v7612_v4 = vpack.c.bf16 %v6857_v10, %v6856_v51  ;;  %v8045_v13 = vadd.f32 %v8044_v41, %v6422_v22  ;;  %v6424_v12 = vpop.f32.mrb[125].mxu1 }
 0x41c   :  { %v6425_v36 = vpop.f32.mrb[126].mxu1 }
 0x41d   :  { %7700 = vst [vmem:[#allocation7 + $0x88] sm:$0xff] %v7612_v4   ;;  %v6712_v32 = vadd.f32 %v8045_v13, %v10887_v35  ;;  %v8047_v27 = vadd.f32 %v8046_v17, %v6425_v36  ;;  %v6427_v25 = vpop.f32.mrb[127].mxu1  ;;  %v11488_v17 = vld [vmem:[#allocation24_spill] sm:$0xff] }
 0x41e   :  { %v5580_v4 = vadd.f32 %v10801_v21, %v11488_v17  ;;  %v11494_v17 = vld [vmem:[#allocation28_spill] sm:$0xff] }
 0x41f   :  { %v6715_v53 = vadd.f32 %v8047_v27, %v10893_v7  ;;  %v6858_v31 = vmax.f32 %v6712_v32, 0.0  ;;  %v11489_v32 = vld [vmem:[#allocation29_spill] sm:$0xff] }
 0x420   :  { %v5583_v27 = vadd.f32 %v10801_v21, %v11489_v32  ;;  %v11495_v32 = vld [vmem:[#allocation32_spill] sm:$0xff] }
 0x421   :  { %v6859_v30 = vmax.f32 %v6715_v53, 0.0 }
 0x422   :  { %v6430_v40 = vpop.f32.mrb[0].mxu1 }
 0x423   :  { %v7617_v42 = vpack.c.bf16 %v6859_v30, %v6858_v31  ;;  %v8049_v49 = vadd.f32 %v6430_v40, %v5564_v39  ;;  %v6432_v6 = vpop.f32.mrb[1].mxu1  ;;  %v11490_v40 = vld [vmem:[#allocation26_spill] sm:$0xff] }
 0x424   :  { %v6433_v33 = vpop.f32.mrb[2].mxu1  ;;  %v5588_v46 = vadd.f32 %v10801_v21, %v11490_v40  ;;  %v11491_v6 = vld [vmem:[#allocation27_spill] sm:$0xff] }
 0x425   :  { %7701 = vst [vmem:[#allocation7 + $0x90] sm:$0xff] %v7617_v42   ;;  %v6720_v35 = vadd.f32 %v8049_v49, %v10883_v18  ;;  %v8051_v15 = vadd.f32 %v6433_v33, %v5567_v37  ;;  %v6435_v45 = vpop.f32.mrb[3].mxu1  ;;  %v5591_v33 = vadd.f32 %v10801_v21, %v11491_v6 }
 0x427   :  { %v6723_v7 = vadd.f32 %v8051_v15, %v10889_v3  ;;  %v6860_v57 = vmax.f32 %v6720_v35, 0.0 }
 0x429   :  { %v6861_v34 = vmax.f32 %v6723_v7, 0.0 }
 0x42a   :  { %v6438_v5 = vpop.f32.mrb[4].mxu1 }
 0x42b   :  { %v7622_v50 = vpack.c.bf16 %v6861_v34, %v6860_v57  ;;  %v8053_v41 = vadd.f32 %v6438_v5, %v5572_v23  ;;  %v6440_v51 = vpop.f32.mrb[5].mxu1  ;;  %v11492_v57 = vld [vmem:[#allocation30_spill] sm:$0xff] }
 0x42c   :  { %v6441_v10 = vpop.f32.mrb[6].mxu1  ;;  %v5596_v34 = vadd.f32 %v10801_v21, %v11492_v57 }
 0x42d   :  { %7702 = vst [vmem:[#allocation7 + $0x98] sm:$0xff] %v7622_v50   ;;  %v6728_v18 = vadd.f32 %v8053_v41, %v10901_v60  ;;  %v8055_v22 = vadd.f32 %v6441_v10, %v5575_v14  ;;  %v6443_v11 = vpop.f32.mrb[7].mxu1  ;;  %v11493_v50 = vld [vmem:[#allocation31_spill] sm:$0xff] }
 0x42e   :  { %v5599_v41 = vadd.f32 %v10801_v21, %v11493_v50 }
 0x42f   :  { %v6731_v3 = vadd.f32 %v8055_v22, %v10907_v19  ;;  %v6862_v13 = vmax.f32 %v6728_v18, 0.0 }
 0x431   :  { %v6863_v12 = vmax.f32 %v6731_v3, 0.0 }
 0x432   :  { %v6446_v36 = vpop.f32.mrb[8].mxu1 }
 0x433   :  { %v7627_v25 = vpack.c.bf16 %v6863_v12, %v6862_v13  ;;  %v8057_v53 = vadd.f32 %v6446_v36, %v5580_v4  ;;  %v6448_v52 = vpop.f32.mrb[9].mxu1  ;;  %v5604_v4 = vadd.f32 %v10801_v21, %v11494_v17 }
 0x434   :  { %v6449_v39 = vpop.f32.mrb[10].mxu1 }
 0x435   :  { %7703 = vst [vmem:[#allocation7 + $0xa0] sm:$0xff] %v7627_v25   ;;  %v6736_v60 = vadd.f32 %v8057_v53, %v10897_v0  ;;  %v8059_v31 = vadd.f32 %v6449_v39, %v5583_v27  ;;  %v6451_v30 = vpop.f32.mrb[11].mxu1  ;;  %v5607_v27 = vadd.f32 %v10801_v21, %v11495_v32 }
 0x436   :  { %v11496_v30 = vld [vmem:[#allocation33_spill] sm:$0xff] }
 0x437   :  { %v6739_v19 = vadd.f32 %v8059_v31, %v10903_v47  ;;  %v6864_v37 = vmax.f32 %v6736_v60, 0.0 }
 0x439   :  { %v6865_v42 = vmax.f32 %v6739_v19, 0.0  ;;  %v5612_v19 = vadd.f32 %v10801_v21, %v11496_v30 }
 0x43a   :  { %v6454_v49 = vpop.f32.mrb[12].mxu1 }
 0x43b   :  { %v7632_v35 = vpack.c.bf16 %v6865_v42, %v6864_v37  ;;  %v8061_v15 = vadd.f32 %v6454_v49, %v5588_v46  ;;  %v6456_v45 = vpop.f32.mrb[13].mxu1  ;;  %v11497_v42 = vld [vmem:[#allocation34_spill] sm:$0xff] }
 0x43c   :  { %v6457_v7 = vpop.f32.mrb[14].mxu1  ;;  %v5615_v49 = vadd.f32 %v10801_v21, %v11497_v42  ;;  %v11504_v42 = vld [vmem:[#allocation44_spill] sm:$0xff] }
 0x43d   :  { %7704 = vst [vmem:[#allocation7 + $0xa8] sm:$0xff] %v7632_v35   ;;  %v6744_v0 = vadd.f32 %v8061_v15, %v10915_v28  ;;  %v8063_v38 = vadd.f32 %v6457_v7, %v5591_v33  ;;  %v6459_v23 = vpop.f32.mrb[15].mxu1 }
 0x43f   :  { %v6747_v47 = vadd.f32 %v8063_v38, %v10921_v9  ;;  %v6866_v5 = vmax.f32 %v6744_v0, 0.0  ;;  %v11498_v0 = vld [vmem:[#allocation35_spill] sm:$0xff] }
 0x440   :  { %v5620_v38 = vadd.f32 %v10801_v21, %v11498_v0 }
 0x441   :  { %v6867_v63 = vmax.f32 %v6747_v47, 0.0 }
 0x442   :  { %v6462_v14 = vpop.f32.mrb[16].mxu1 }
 0x443   :  { %v7637_v51 = vpack.c.bf16 %v6867_v63, %v6866_v5  ;;  %v8065_v10 = vadd.f32 %v6462_v14, %v5596_v34  ;;  %v6464_v18 = vpop.f32.mrb[17].mxu1  ;;  %v11499_v34 = vld [vmem:[#allocation36_spill] sm:$0xff] }
 0x444   :  { %v6465_v22 = vpop.f32.mrb[18].mxu1  ;;  %v5623_v5 = vadd.f32 %v10801_v21, %v11499_v34  ;;  %v11500_v18 = vld [vmem:[#allocation38_spill] sm:$0xff] }
 0x445   :  { %7705 = vst [vmem:[#allocation7 + $0xb0] sm:$0xff] %v7637_v51   ;;  %v6752_v28 = vadd.f32 %v8065_v10, %v10911_v20  ;;  %v8067_v11 = vadd.f32 %v6465_v22, %v5599_v41  ;;  %v6467_v3 = vpop.f32.mrb[19].mxu1  ;;  %v5628_v22 = vadd.f32 %v10801_v21, %v11500_v18 }
 0x447   :  { %v6755_v9 = vadd.f32 %v8067_v11, %v10917_v29  ;;  %v6868_v13 = vmax.f32 %v6752_v28, 0.0 }
 0x449   :  { %v6869_v12 = vmax.f32 %v6755_v9, 0.0  ;;  %v11501_v9 = vld [vmem:[#allocation39_spill] sm:$0xff] }
 0x44a   :  { %v6470_v36 = vpop.f32.mrb[20].mxu1  ;;  %v5631_v17 = vadd.f32 %v10801_v21, %v11501_v9 }
 0x44b   :  { %v7642_v25 = vpack.c.bf16 %v6869_v12, %v6868_v13  ;;  %v8069_v53 = vadd.f32 %v6470_v36, %v5604_v4  ;;  %v6472_v52 = vpop.f32.mrb[21].mxu1 }
 0x44c   :  { %v6473_v39 = vpop.f32.mrb[22].mxu1 }
 0x44d   :  { %7706 = vst [vmem:[#allocation7 + $0xb8] sm:$0xff] %v7642_v25   ;;  %v6760_v20 = vadd.f32 %v8069_v53, %v10929_v8  ;;  %v8071_v60 = vadd.f32 %v6473_v39, %v5607_v27  ;;  %v6475_v31 = vpop.f32.mrb[23].mxu1  ;;  %v11502_v25 = vld [vmem:[#allocation41_spill] sm:$0xff] }
 0x44e   :  { %v5636_v53 = vadd.f32 %v10801_v21, %v11502_v25 }
 0x44f   :  { %v6763_v29 = vadd.f32 %v8071_v60, %v10935_v26  ;;  %v6870_v40 = vmax.f32 %v6760_v20, 0.0  ;;  %v11503_v60 = vld [vmem:[#allocation42_spill] sm:$0xff] }
 0x450   :  { %v5639_v31 = vadd.f32 %v10801_v21, %v11503_v60 }
 0x451   :  { %v6871_v46 = vmax.f32 %v6763_v29, 0.0 }
 0x452   :  { %v6478_v37 = vpop.f32.mrb[24].mxu1 }
 0x453   :  { %v7647_v6 = vpack.c.bf16 %v6871_v46, %v6870_v40  ;;  %v8073_v33 = vadd.f32 %v6478_v37, %v5612_v19  ;;  %v6480_v35 = vpop.f32.mrb[25].mxu1 }
 0x454   :  { %v6481_v15 = vpop.f32.mrb[26].mxu1 }
 0x455   :  { %7707 = vst [vmem:[#allocation7 + $0xc0] sm:$0xff] %v7647_v6   ;;  %v6768_v8 = vadd.f32 %v8073_v33, %v10925_v56  ;;  %v8075_v45 = vadd.f32 %v6481_v15, %v5615_v49  ;;  %v6483_v7 = vpop.f32.mrb[27].mxu1  ;;  %v5644_v49 = vadd.f32 %v10801_v21, %v11504_v42  ;;  %v11505_v15 = vld [vmem:[#allocation45_spill] sm:$0xff] }
 0x457   :  { %v6771_v26 = vadd.f32 %v8075_v45, %v10931_v54  ;;  %v6872_v23 = vmax.f32 %v6768_v8, 0.0  ;;  %v5647_v8 = vadd.f32 %v10801_v21, %v11505_v15 }
 0x459   :  { %v6873_v47 = vmax.f32 %v6771_v26, 0.0 }
 0x45a   :  { %v6486_v57 = vpop.f32.mrb[28].mxu1 }
 0x45b   :  { %v7652_v63 = vpack.c.bf16 %v6873_v47, %v6872_v23  ;;  %v8077_v14 = vadd.f32 %v6486_v57, %v5620_v38  ;;  %v6488_v50 = vpop.f32.mrb[29].mxu1  ;;  %v11506_v47 = vld [vmem:[#allocation16_spill] sm:$0xff] }
 0x45c   :  { %v6489_v41 = vpop.f32.mrb[30].mxu1  ;;  %v5652_v57 = vadd.f32 %v10801_v21, %v11506_v47 }
 0x45d   :  { %7708 = vst [vmem:[#allocation7 + $0xc8] sm:$0xff] %v7652_v63   ;;  %v6776_v56 = vadd.f32 %v8077_v14, %v10943_v43  ;;  %v8079_v51 = vadd.f32 %v6489_v41, %v5623_v5  ;;  %v6491_v10 = vpop.f32.mrb[31].mxu1  ;;  %v11507_v14 = vld [vmem:[#allocation46_spill] sm:$0xff] }
 0x45e   :  { %v5655_v50 = vadd.f32 %v10801_v21, %v11507_v14 }
 0x45f   :  { %v6779_v54 = vadd.f32 %v8079_v51, %v10949_v16  ;;  %v6874_v28 = vmax.f32 %v6776_v56, 0.0 }
 0x461   :  { %v6875_v11 = vmax.f32 %v6779_v54, 0.0 }
 0x462   :  { %v6494_v3 = vpop.f32.mrb[32].mxu1 }
 0x463   :  { %v7657_v4 = vpack.c.bf16 %v6875_v11, %v6874_v28  ;;  %v8081_v13 = vadd.f32 %v6494_v3, %v5628_v22  ;;  %v6496_v12 = vpop.f32.mrb[33].mxu1  ;;  %v11508_v22 = vld [vmem:[#allocation47_spill] sm:$0xff] }
 0x464   :  { %v6497_v36 = vpop.f32.mrb[34].mxu1  ;;  %v5660_v28 = vadd.f32 %v10801_v21, %v11508_v22 }
 0x465   :  { %7709 = vst [vmem:[#allocation7 + $0xd0] sm:$0xff] %v7657_v4   ;;  %v6784_v43 = vadd.f32 %v8081_v13, %v10939_v48  ;;  %v8083_v32 = vadd.f32 %v6497_v36, %v5631_v17  ;;  %v6499_v27 = vpop.f32.mrb[35].mxu1  ;;  %v8476_v17 = vld [vmem:[%s11122_s4] ss:$0 sm:$0xff]  ;;  %v11509_v4 = vld [vmem:[#allocation48_spill] sm:$0xff]  ;;  %s8499_s4 = scalar_lea.vmem %s7212_s9, 4096 }
 0x466   :  { %v5663_v13 = vadd.f32 %v8476_v17, %v11509_v4  ;;  %p8500_p8 = scmp.ne.s32.totalorder %s7212_s9, %s8499_s4  ;;  %p8505_p10 = scmp.lt.s32.totalorder %s8499_s4, %s8499_s4 }
 0x467   :  { %v6787_v16 = vadd.f32 %v8083_v32, %v10945_v55  ;;  %v6876_v52 = vmax.f32 %v6784_v43, 0.0 }
 0x468   :  { %p8506_p11 = por %p8505_p10, %p8504_p9 }
 0x469   :  { %v6877_v39 = vmax.f32 %v6787_v16, 0.0 }
 0x46a   :  { %v6502_v20 = vpop.f32.mrb[36].mxu1  ;;  %p8507_p12 = pnand %p8506_p11, %p8500_p8 }
 0x46b   :  { %v7662_v29 = vpack.c.bf16 %v6877_v39, %v6876_v52  ;;  %v8085_v30 = vadd.f32 %v6502_v20, %v5636_v53  ;;  %v6504_v19 = vpop.f32.mrb[37].mxu1 }
 0x46c   :  { %v6505_v40 = vpop.f32.mrb[38].mxu1 }
 0x46d   :  { %7710 = vst [vmem:[#allocation7 + $0xd8] sm:$0xff] %v7662_v29   ;;  %v6792_v48 = vadd.f32 %v8085_v30, %v10957_v1  ;;  %v8087_v46 = vadd.f32 %v6505_v40, %v5639_v31  ;;  %v6507_v37 = vpop.f32.mrb[39].mxu1 }
 0x46f   :  { %v6795_v55 = vadd.f32 %v8087_v46, %v10963_v61  ;;  %v6878_v6 = vmax.f32 %v6792_v48, 0.0 }
 0x471   :  { %v6879_v33 = vmax.f32 %v6795_v55, 0.0 }
 0x472   :  { %v6510_v35 = vpop.f32.mrb[40].mxu1 }
 0x473   :  { %v7667_v45 = vpack.c.bf16 %v6879_v33, %v6878_v6  ;;  %v8089_v7 = vadd.f32 %v6510_v35, %v5644_v49  ;;  %v6512_v26 = vpop.f32.mrb[41].mxu1 }
 0x474   :  { %v6513_v0 = vpop.f32.mrb[42].mxu1 }
 0x475   :  { %7711 = vst [vmem:[#allocation7 + $0xe0] sm:$0xff] %v7667_v45   ;;  %v6800_v1 = vadd.f32 %v8089_v7, %v10953_v62  ;;  %v8091_v38 = vadd.f32 %v6513_v0, %v5647_v8  ;;  %v6515_v23 = vpop.f32.mrb[43].mxu1 }
 0x477   :  { %v6803_v61 = vadd.f32 %v8091_v38, %v10959_v59  ;;  %v6880_v34 = vmax.f32 %v6800_v1, 0.0 }
 0x479   :  { %v6881_v5 = vmax.f32 %v6803_v61, 0.0 }
 0x47a   :  { %v6518_v63 = vpop.f32.mrb[44].mxu1 }
 0x47b   :  { %v7672_v41 = vpack.c.bf16 %v6881_v5, %v6880_v34  ;;  %v8093_v56 = vadd.f32 %v6518_v63, %v5652_v57  ;;  %v6520_v51 = vpop.f32.mrb[45].mxu1 }
 0x47c   :  { %v6521_v10 = vpop.f32.mrb[46].mxu1 }
 0x47d   :  { %7712 = vst [vmem:[#allocation7 + $0xe8] sm:$0xff] %v7672_v41   ;;  %v8095_v54 = vadd.f32 %v6521_v10, %v5655_v50  ;;  %v6808_v62 = vadd.f32 %v8093_v56, %v10999_v58  ;;  %v6523_v18 = vpop.f32.mrb[47].mxu1 }
 0x47f   :  { %v6811_v59 = vadd.f32 %v8095_v54, %v11005_v2  ;;  %v6882_v11 = vmax.f32 %v6808_v62, 0.0 }
 0x481   :  { %v6883_v3 = vmax.f32 %v6811_v59, 0.0 }
 0x482   :  { %v6526_v9 = vpop.f32.mrb[48].mxu1 }
 0x483   :  { %v7677_v12 = vpack.c.bf16 %v6883_v3, %v6882_v11  ;;  %v8097_v36 = vadd.f32 %v6526_v9, %v5660_v28  ;;  %v6528_v43 = vpop.f32.mrb[49].mxu1 }
 0x484   :  { %v6529_v32 = vpop.f32.mrb[50].mxu1 }
 0x485   :  { %7713 = vst [vmem:[#allocation7 + $0xf0] sm:$0xff] %v7677_v12   ;;  %v6816_v58 = vadd.f32 %v8097_v36, %v10997_v24  ;;  %v8099_v2 = vadd.f32 %v6529_v32, %v5663_v13  ;;  %v6531_v27 = vpop.f32.mrb[51].mxu1 }
 0x487   :  { %v6819_v21 = vadd.f32 %v8099_v2, %v11003_v44  ;;  %v6884_v16 = vmax.f32 %v6816_v58, 0.0 }
 0x489   :  { %v6885_v25 = vmax.f32 %v6819_v21, 0.0 }
 0x48b   :  { %v7682_v53 = vpack.c.bf16 %v6885_v25, %v6884_v16 }
 0x48d   :  { %7714 = vst [vmem:[#allocation7 + $0xf8] sm:$0xff] %v7682_v53  }
 0x48e   :  { %8510 = shalt.err (!%p8507_p12)
}
 0x48f   :  { %s8511_s12 = scalar_lea.hbm %s11123_s5, 4096 }
 0x490   :  { %p8512_p13 = scmp.ne.s32.totalorder %s11123_s5, %s8511_s12  ;;  %p8515_p0 = scmp.lt.u32.totalorder %s8511_s12, %s11123_s5 }
 0x492   :  { %p8517_p1 = pnand %p8515_p0, %p8512_p13 }
 0x494   :  { %8520 = shalt.err (!%p8517_p1)
}
 0x495   :  { %7217 = dma.vmem_to_hbm [thread:$0]  %s7212_s9, 4096, %s11123_s5, [#allocation6], %s8526_s28, %s8526_s28, %s8527_s29  }
 0x496   :  { %8523 = dma.done.wait [#allocation6], 4096  }
 0x497   :  { %8524 = vsyncadd [#allocation6], 4294963200 }
 0x498   :  { %7221 = vsyncpa [#allocation5], 1 }
 0x499   :  { %7222 = vsyncpa [#allocation6], 1 }

</bundles_post_ra>
